<compile_context>
chip_gen: v5e
topology: v5e:2x2
jax: 0.10.0
libtpu: 0.0.40
codegen_flags: <defaults>
</compile_context>

<pallas_src>
import jax
import jax.numpy as jnp
from jax import lax
from jax.experimental import pallas as pl
from jax.experimental.pallas import tpu as pltpu

PADL = 8     # sublane-aligned row/col offset inside the conv2 staging scratch
LANE = 128   # TPU lane width


def _round_up(x, m):
    return (x + m - 1) // m * m


def _make_kernel(H, W, CP, RB):
    """Build the kernel for static shapes H, W, padded channels CP, row-block RB."""
    n_blocks = H // RB
    M = RB * W  # matmul M dimension per row block

    def kernel(x_ref, w1_ref, s1_ref, b1_ref, w2_ref, s2_ref, b2_ref,
               o_ref, mid_ref):
        # x_ref  : (1, H+2, W+2, CP) f32   spatially padded, channel-padded input
        # w*_ref : (9, CP, CP)       bf16  conv taps, tap = dy*3 + dx
        # s*/b*  : (1, CP)           f32   folded BN scale / bias
        # o_ref  : (1, H, W, CP)     f32
        # mid_ref: (PADL+H+8, PADL+W+8, CP) f32 scratch: padded relu(bn1(conv1))

        # Hoist BN scale/bias loads out of the loops.
        s1 = s1_ref[...]
        b1 = b1_ref[...]
        s2 = s2_ref[...]
        b2 = b2_ref[...]

        # Zero only the halo border that conv2 reads; the interior is fully
        # overwritten by conv1.  Done every grid step (not only program_id==0):
        # with a megacore-parallel batch axis each core has a private scratch,
        # and its first step may not be program_id 0.  Cost: 4 tiny stores.
        zrow = jnp.zeros((1, W + 2, CP), jnp.float32)
        mid_ref[PADL - 1:PADL, PADL - 1:PADL + W + 1, :] = zrow
        mid_ref[PADL + H:PADL + H + 1, PADL - 1:PADL + W + 1, :] = zrow
        zcol = jnp.zeros((H, 1, CP), jnp.float32)
        mid_ref[PADL:PADL + H, PADL - 1:PADL, :] = zcol
        mid_ref[PADL:PADL + H, PADL + W:PADL + W + 1, :] = zcol

        # ---- conv1 (3x3, stride 1) + bn1 + relu, RB rows (M = RB*W) at a time ----
        def conv1_block(r, carry):
            r0 = pl.multiple_of(r * RB, RB)
            acc = None
            for dy in range(3):
                # One full-width slab per (r, dy); dx windows sliced in-register.
                slab = x_ref[0, pl.ds(r0 + dy, RB), :, :]
                for dx in range(3):
                    patch = slab[:, dx:dx + W, :].reshape(M, CP)
                    d = jnp.dot(patch.astype(jnp.bfloat16),
                                w1_ref[dy * 3 + dx],
                                preferred_element_type=jnp.float32)
                    acc = d if acc is None else acc + d
            blk = jnp.maximum(acc * s1 + b1, 0.0)
            mid_ref[pl.ds(PADL + r0, RB), PADL:PADL + W, :] = blk.reshape(RB, W, CP)
            return carry

        lax.fori_loop(0, n_blocks, conv1_block, 0)

        # ---- conv2 (3x3, stride 1) + bn2 + residual add + relu ----
        def conv2_block(r, carry):
            r0 = pl.multiple_of(r * RB, RB)
            acc = None
            for dy in range(3):
                slab = mid_ref[pl.ds(PADL - 1 + r0 + dy, RB),
                               PADL - 1:PADL + W + 1, :]
                for dx in range(3):
                    patch = slab[:, dx:dx + W, :].reshape(M, CP)
                    d = jnp.dot(patch.astype(jnp.bfloat16),
                                w2_ref[dy * 3 + dx],
                                preferred_element_type=jnp.float32)
                    acc = d if acc is None else acc + d
            ident = x_ref[0, pl.ds(1 + r0, RB), 1:1 + W, :].reshape(M, CP)
            blk = jnp.maximum(acc * s2 + b2 + ident, 0.0)
            o_ref[0, pl.ds(r0, RB), :, :] = blk.reshape(RB, W, CP).astype(o_ref.dtype)
            return carry

        lax.fori_loop(0, n_blocks, conv2_block, 0)

    return kernel


def fold_bn(gamma, beta, mean, var, eps=1e-5):
    scale = gamma / jnp.sqrt(var + eps)
    bias = beta - mean * scale
    return scale.astype(jnp.float32), bias.astype(jnp.float32)


def basic_block_forward(x_nchw, params):
    """x_nchw: (N, C, H, W) float32.  Returns (N, C, H, W) float32."""
    N, C, H, W = x_nchw.shape
    Cout = params["w1"].shape[0]
    assert Cout == C, "identity residual requires in_planes == out_planes"
    assert W % 8 == 0, "kernel assumes W is a multiple of 8 (sublane tiling)"

    CP = max(LANE, _round_up(C, LANE))          # lane-dense padded channel count

    # Row-block size: target M = RB*W ~= 128 matmul rows, RB must divide H.
    # TODO(synk): on v6e/v7x, M=256 amortizes MXU issue further but needs a
    #             VMEM accumulator alongside the row slab to avoid vreg spills.
    RB = min(H, max(1, 128 // W))
    while H % RB:
        RB -= 1

    # NCHW -> NHWC, spatial pad 1 (conv3x3 padding=1), channel pad to CP.
    x = jnp.transpose(x_nchw, (0, 2, 3, 1)).astype(jnp.float32)
    xp = jnp.pad(x, ((0, 0), (1, 1), (1, 1), (0, CP - C)))

    def pack_w(w):  # (Cout, Cin, 3, 3) -> (9, CP, CP) bf16, zero-padded channels
        w = jnp.transpose(w, (2, 3, 1, 0)).reshape(9, C, Cout).astype(jnp.float32)
        w = jnp.pad(w, ((0, 0), (0, CP - C), (0, CP - Cout)))
        return w.astype(jnp.bfloat16)

    w1 = pack_w(params["w1"])
    w2 = pack_w(params["w2"])
    s1, b1 = fold_bn(params["g1"], params["be1"], params["m1"], params["v1"])
    s2, b2 = fold_bn(params["g2"], params["be2"], params["m2"], params["v2"])
    pad_c = lambda v: jnp.pad(v, (0, CP - Cout)).reshape(1, CP)
    s1, b1, s2, b2 = pad_c(s1), pad_c(b1), pad_c(s2), pad_c(b2)

    flops = 4 * 9 * N * H * W * CP * CP                      # two 3x3 convs (MXU)
    bytes_accessed = (xp.size * 4 + (w1.size + w2.size) * 2
                      + 4 * CP * 4 + N * H * W * CP * 4)

    out_nhwc = pl.pallas_call(
        _make_kernel(H, W, CP, RB),
        out_shape=jax.ShapeDtypeStruct((N, H, W, CP), jnp.float32),
        grid_spec=pltpu.PrefetchScalarGridSpec(
            num_scalar_prefetch=0,
            grid=(N,),
            in_specs=[
                pl.BlockSpec((1, H + 2, W + 2, CP), lambda n: (n, 0, 0, 0)),
                pl.BlockSpec((9, CP, CP), lambda n: (0, 0, 0)),
                pl.BlockSpec((1, CP), lambda n: (0, 0)),
                pl.BlockSpec((1, CP), lambda n: (0, 0)),
                pl.BlockSpec((9, CP, CP), lambda n: (0, 0, 0)),
                pl.BlockSpec((1, CP), lambda n: (0, 0)),
                pl.BlockSpec((1, CP), lambda n: (0, 0)),
            ],
            out_specs=pl.BlockSpec((1, H, W, CP), lambda n: (n, 0, 0, 0)),
            scratch_shapes=[pltpu.VMEM((PADL + H + 8, PADL + W + 8, CP),
                                       jnp.float32)],
        ),
        compiler_params=pltpu.CompilerParams(dimension_semantics=("parallel",)),
        cost_estimate=pl.CostEstimate(flops=flops, transcendentals=0,
                                      bytes_accessed=bytes_accessed),
    )(xp, w1, s1, b1, w2, s2, b2)

    # Drop padded channels, back to PyTorch NCHW convention.
    return jnp.transpose(out_nhwc[..., :C], (0, 3, 1, 2))


def ref_forward(x_nchw, p):
    """Pure-JAX f32 reference (inference-mode BN) for verification."""
    dn = ("NCHW", "OIHW", "NCHW")

    def conv(x, w):
        return jax.lax.conv_general_dilated(
            x, w, window_strides=(1, 1), padding=((1, 1), (1, 1)),
            dimension_numbers=dn)

    def bn(x, g, b, m, v, eps=1e-5):
        rs = lambda a: a.reshape(1, -1, 1, 1)
        return (x - rs(m)) / jnp.sqrt(rs(v) + eps) * rs(g) + rs(b)

    out = jax.nn.relu(bn(conv(x_nchw, p["w1"]), p["g1"], p["be1"], p["m1"], p["v1"]))
    out = bn(conv(out, p["w2"]), p["g2"], p["be2"], p["m2"], p["v2"])
    return jax.nn.relu(out + x_nchw)


def init_params(key, planes):
    ks = jax.random.split(key, 8)
    fan_in = planes * 9
    std = (2.0 / fan_in) ** 0.5
    return {
        "w1": std * jax.random.normal(ks[0], (planes, planes, 3, 3), jnp.float32),
        "w2": std * jax.random.normal(ks[1], (planes, planes, 3, 3), jnp.float32),
        "g1": 1.0 + 0.1 * jax.random.normal(ks[2], (planes,), jnp.float32),
        "be1": 0.1 * jax.random.normal(ks[3], (planes,), jnp.float32),
        "m1": 0.1 * jax.random.normal(ks[4], (planes,), jnp.float32),
        "v1": jax.random.uniform(ks[5], (planes,), jnp.float32, 0.5, 1.5),
        "g2": 1.0 + 0.1 * jax.random.normal(ks[6], (planes,), jnp.float32),
        "be2": 0.1 * jax.random.normal(ks[7], (planes,), jnp.float32),
        "m2": 0.05 * jnp.arange(planes, dtype=jnp.float32),
        "v2": 1.0 + 0.1 * jnp.arange(planes, dtype=jnp.float32),
    }


if __name__ == "__main__":
    key = jax.random.PRNGKey(0)
    kx, kp = jax.random.split(key)

    N, C, H, W = 2, 4, 16, 16
    x = jax.random.normal(kx, (N, C, H, W), jnp.float32)
    params = init_params(kp, C)

    out = jax.jit(basic_block_forward)(x, params)
    out = jax.block_until_ready(out)

    ref = jax.block_until_ready(ref_forward(x, params))
    assert out.shape == (N, C, H, W)
    # bf16 MXU operands (f32 accumulation) => relax tolerance vs pure-f32 ref.
    assert bool(jnp.allclose(out, ref, atol=5e-2, rtol=5e-2)), (
        f"max abs err = {float(jnp.max(jnp.abs(out - ref)))}")

    print("KERNEL_OK")
</pallas_src>

<mosaic_0001>
module attributes {stable_mosaic.version = 11 : i64} {
  func.func @kernel(%arg0: i32, %arg1: memref<1x18x18x128xf32, #tpu.memory_space<vmem>>, %arg2: memref<9x128x128xbf16, #tpu.memory_space<vmem>>, %arg3: memref<1x128xf32, #tpu.memory_space<vmem>>, %arg4: memref<1x128xf32, #tpu.memory_space<vmem>>, %arg5: memref<9x128x128xbf16, #tpu.memory_space<vmem>>, %arg6: memref<1x128xf32, #tpu.memory_space<vmem>>, %arg7: memref<1x128xf32, #tpu.memory_space<vmem>>, %arg8: memref<1x16x16x128xf32, #tpu.memory_space<vmem>>, %arg9: memref<32x32x128xf32, #tpu.memory_space<vmem>>) attributes {dimension_semantics = [#tpu.dimension_semantics<parallel>], iteration_bounds = array<i64: 2>, scalar_prefetch = 0 : i64, scratch_operands = 1 : i64, tpu.core_type = #tpu.core_type<tc>, window_params = [{transform_indices = @transform_0, window_bounds = array<i64: 1, 18, 18, 128>}, {pipeline_mode = #tpu.pipeline_mode<synchronous>, transform_indices = @transform_1, window_bounds = array<i64: 9, 128, 128>}, {pipeline_mode = #tpu.pipeline_mode<synchronous>, transform_indices = @transform_2, window_bounds = array<i64: 1, 128>}, {pipeline_mode = #tpu.pipeline_mode<synchronous>, transform_indices = @transform_3, window_bounds = array<i64: 1, 128>}, {pipeline_mode = #tpu.pipeline_mode<synchronous>, transform_indices = @transform_4, window_bounds = array<i64: 9, 128, 128>}, {pipeline_mode = #tpu.pipeline_mode<synchronous>, transform_indices = @transform_5, window_bounds = array<i64: 1, 128>}, {pipeline_mode = #tpu.pipeline_mode<synchronous>, transform_indices = @transform_6, window_bounds = array<i64: 1, 128>}, {transform_indices = @transform_7, window_bounds = array<i64: 1, 16, 16, 128>}]} {
    %c0 = arith.constant 0 : index
    %c0_0 = arith.constant 0 : index
    %0 = vector.load %arg3[%c0, %c0_0] : memref<1x128xf32, #tpu.memory_space<vmem>>, vector<1x128xf32>
    %c0_1 = arith.constant 0 : index
    %c0_2 = arith.constant 0 : index
    %1 = vector.load %arg4[%c0_1, %c0_2] : memref<1x128xf32, #tpu.memory_space<vmem>>, vector<1x128xf32>
    %c0_3 = arith.constant 0 : index
    %c0_4 = arith.constant 0 : index
    %2 = vector.load %arg6[%c0_3, %c0_4] : memref<1x128xf32, #tpu.memory_space<vmem>>, vector<1x128xf32>
    %c0_5 = arith.constant 0 : index
    %c0_6 = arith.constant 0 : index
    %3 = vector.load %arg7[%c0_5, %c0_6] : memref<1x128xf32, #tpu.memory_space<vmem>>, vector<1x128xf32>
    %cst = arith.constant 0.000000e+00 : f32
    %4 = vector.broadcast %cst : f32 to vector<1x18x128xf32>
    %c7 = arith.constant 7 : index
    %c7_7 = arith.constant 7 : index
    %c0_8 = arith.constant 0 : index
    %5 = vector.load %arg9[%c7, %c7_7, %c0_8] : memref<32x32x128xf32, #tpu.memory_space<vmem>>, vector<1x18x128xf32>
    tpu.vector_store %arg9[%c7, %c7_7, %c0_8], %4 {strides = array<i32>} : memref<32x32x128xf32, #tpu.memory_space<vmem>>, vector<1x18x128xf32>,
    %c24 = arith.constant 24 : index
    %c7_9 = arith.constant 7 : index
    %c0_10 = arith.constant 0 : index
    %6 = vector.load %arg9[%c24, %c7_9, %c0_10] : memref<32x32x128xf32, #tpu.memory_space<vmem>>, vector<1x18x128xf32>
    tpu.vector_store %arg9[%c24, %c7_9, %c0_10], %4 {strides = array<i32>} : memref<32x32x128xf32, #tpu.memory_space<vmem>>, vector<1x18x128xf32>,
    %cst_11 = arith.constant 0.000000e+00 : f32
    %7 = vector.broadcast %cst_11 : f32 to vector<16x1x128xf32>
    %c8 = arith.constant 8 : index
    %c7_12 = arith.constant 7 : index
    %c0_13 = arith.constant 0 : index
    %8 = vector.load %arg9[%c8, %c7_12, %c0_13] : memref<32x32x128xf32, #tpu.memory_space<vmem>>, vector<16x1x128xf32>
    tpu.vector_store %arg9[%c8, %c7_12, %c0_13], %7 {strides = array<i32>} : memref<32x32x128xf32, #tpu.memory_space<vmem>>, vector<16x1x128xf32>,
    %c8_14 = arith.constant 8 : index
    %c24_15 = arith.constant 24 : index
    %c0_16 = arith.constant 0 : index
    %9 = vector.load %arg9[%c8_14, %c24_15, %c0_16] : memref<32x32x128xf32, #tpu.memory_space<vmem>>, vector<16x1x128xf32>
    tpu.vector_store %arg9[%c8_14, %c24_15, %c0_16], %7 {strides = array<i32>} : memref<32x32x128xf32, #tpu.memory_space<vmem>>, vector<16x1x128xf32>,
    %c0_i32 = arith.constant 0 : i32
    %c2_i32 = arith.constant 2 : i32
    %10 = arith.addi %c0_i32, %c2_i32 : i32
    %c1_i32 = arith.constant 1 : i32
    scf.for %arg10 = %c0_i32 to %10 step %c1_i32  : i32 {
      %c8_i32 = arith.constant 8 : i32
      %12 = arith.muli %arg10, %c8_i32 : i32
      %13 = tpu.assume_multiple %12, 8 : i32
      %c0_i32_22 = arith.constant 0 : i32
      %14 = arith.addi %13, %c0_i32_22 : i32
      %c0_23 = arith.constant 0 : index
      %15 = arith.index_cast %14 : i32 to index
      %c0_24 = arith.constant 0 : index
      %c0_25 = arith.constant 0 : index
      %16 = vector.load %arg1[%c0_23, %15, %c0_24, %c0_25] : memref<1x18x18x128xf32, #tpu.memory_space<vmem>>, vector<1x8x18x128xf32>
      %17 = vector.shape_cast %16 : vector<1x8x18x128xf32> to vector<8x18x128xf32>
      %18 = vector.extract_strided_slice %17 {offsets = [0, 0, 0], sizes = [8, 16, 128], strides = [1, 1, 1]} : vector<8x18x128xf32> to vector<8x16x128xf32>
      %19 = vector.shape_cast %18 : vector<8x16x128xf32> to vector<128x128xf32>
      %20 = arith.truncf %19 : vector<128x128xf32> to vector<128x128xbf16>
      %c0_26 = arith.constant 0 : index
      %c0_27 = arith.constant 0 : index
      %c0_28 = arith.constant 0 : index
      %21 = vector.load %arg2[%c0_26, %c0_27, %c0_28] : memref<9x128x128xbf16, #tpu.memory_space<vmem>>, vector<1x128x128xbf16>
      %22 = vector.shape_cast %21 : vector<1x128x128xbf16> to vector<128x128xbf16>
      %cst_29 = arith.constant dense<0.000000e+00> : vector<128x128xf32>
      %23 = tpu.matmul %20, %22, %cst_29 {dimension_numbers = #tpu.dot_dimension_numbers<[1], [0], [0], [1], [0, 0, 1, 1], [], []>} : vector<128x128xbf16>, vector<128x128xbf16>, vector<128x128xf32> -> vector<128x128xf32>
      %24 = vector.extract_strided_slice %17 {offsets = [0, 1, 0], sizes = [8, 16, 128], strides = [1, 1, 1]} : vector<8x18x128xf32> to vector<8x16x128xf32>
      %25 = vector.shape_cast %24 : vector<8x16x128xf32> to vector<128x128xf32>
      %26 = arith.truncf %25 : vector<128x128xf32> to vector<128x128xbf16>
      %c1 = arith.constant 1 : index
      %c0_30 = arith.constant 0 : index
      %c0_31 = arith.constant 0 : index
      %27 = vector.load %arg2[%c1, %c0_30, %c0_31] : memref<9x128x128xbf16, #tpu.memory_space<vmem>>, vector<1x128x128xbf16>
      %28 = vector.shape_cast %27 : vector<1x128x128xbf16> to vector<128x128xbf16>
      %cst_32 = arith.constant dense<0.000000e+00> : vector<128x128xf32>
      %29 = tpu.matmul %26, %28, %cst_32 {dimension_numbers = #tpu.dot_dimension_numbers<[1], [0], [0], [1], [0, 0, 1, 1], [], []>} : vector<128x128xbf16>, vector<128x128xbf16>, vector<128x128xf32> -> vector<128x128xf32>
      %30 = arith.addf %23, %29 : vector<128x128xf32>
      %31 = vector.extract_strided_slice %17 {offsets = [0, 2, 0], sizes = [8, 16, 128], strides = [1, 1, 1]} : vector<8x18x128xf32> to vector<8x16x128xf32>
      %32 = vector.shape_cast %31 : vector<8x16x128xf32> to vector<128x128xf32>
      %33 = arith.truncf %32 : vector<128x128xf32> to vector<128x128xbf16>
      %c2 = arith.constant 2 : index
      %c0_33 = arith.constant 0 : index
      %c0_34 = arith.constant 0 : index
      %34 = vector.load %arg2[%c2, %c0_33, %c0_34] : memref<9x128x128xbf16, #tpu.memory_space<vmem>>, vector<1x128x128xbf16>
      %35 = vector.shape_cast %34 : vector<1x128x128xbf16> to vector<128x128xbf16>
      %cst_35 = arith.constant dense<0.000000e+00> : vector<128x128xf32>
      %36 = tpu.matmul %33, %35, %cst_35 {dimension_numbers = #tpu.dot_dimension_numbers<[1], [0], [0], [1], [0, 0, 1, 1], [], []>} : vector<128x128xbf16>, vector<128x128xbf16>, vector<128x128xf32> -> vector<128x128xf32>
      %37 = arith.addf %30, %36 : vector<128x128xf32>
      %c1_i32_36 = arith.constant 1 : i32
      %38 = arith.addi %13, %c1_i32_36 : i32
      %c0_37 = arith.constant 0 : index
      %39 = arith.index_cast %38 : i32 to index
      %c0_38 = arith.constant 0 : index
      %c0_39 = arith.constant 0 : index
      %40 = vector.load %arg1[%c0_37, %39, %c0_38, %c0_39] : memref<1x18x18x128xf32, #tpu.memory_space<vmem>>, vector<1x8x18x128xf32>
      %41 = vector.shape_cast %40 : vector<1x8x18x128xf32> to vector<8x18x128xf32>
      %42 = vector.extract_strided_slice %41 {offsets = [0, 0, 0], sizes = [8, 16, 128], strides = [1, 1, 1]} : vector<8x18x128xf32> to vector<8x16x128xf32>
      %43 = vector.shape_cast %42 : vector<8x16x128xf32> to vector<128x128xf32>
      %44 = arith.truncf %43 : vector<128x128xf32> to vector<128x128xbf16>
      %c3 = arith.constant 3 : index
      %c0_40 = arith.constant 0 : index
      %c0_41 = arith.constant 0 : index
      %45 = vector.load %arg2[%c3, %c0_40, %c0_41] : memref<9x128x128xbf16, #tpu.memory_space<vmem>>, vector<1x128x128xbf16>
      %46 = vector.shape_cast %45 : vector<1x128x128xbf16> to vector<128x128xbf16>
      %cst_42 = arith.constant dense<0.000000e+00> : vector<128x128xf32>
      %47 = tpu.matmul %44, %46, %cst_42 {dimension_numbers = #tpu.dot_dimension_numbers<[1], [0], [0], [1], [0, 0, 1, 1], [], []>} : vector<128x128xbf16>, vector<128x128xbf16>, vector<128x128xf32> -> vector<128x128xf32>
      %48 = arith.addf %37, %47 : vector<128x128xf32>
      %49 = vector.extract_strided_slice %41 {offsets = [0, 1, 0], sizes = [8, 16, 128], strides = [1, 1, 1]} : vector<8x18x128xf32> to vector<8x16x128xf32>
      %50 = vector.shape_cast %49 : vector<8x16x128xf32> to vector<128x128xf32>
      %51 = arith.truncf %50 : vector<128x128xf32> to vector<128x128xbf16>
      %c4 = arith.constant 4 : index
      %c0_43 = arith.constant 0 : index
      %c0_44 = arith.constant 0 : index
      %52 = vector.load %arg2[%c4, %c0_43, %c0_44] : memref<9x128x128xbf16, #tpu.memory_space<vmem>>, vector<1x128x128xbf16>
      %53 = vector.shape_cast %52 : vector<1x128x128xbf16> to vector<128x128xbf16>
      %cst_45 = arith.constant dense<0.000000e+00> : vector<128x128xf32>
      %54 = tpu.matmul %51, %53, %cst_45 {dimension_numbers = #tpu.dot_dimension_numbers<[1], [0], [0], [1], [0, 0, 1, 1], [], []>} : vector<128x128xbf16>, vector<128x128xbf16>, vector<128x128xf32> -> vector<128x128xf32>
      %55 = arith.addf %48, %54 : vector<128x128xf32>
      %56 = vector.extract_strided_slice %41 {offsets = [0, 2, 0], sizes = [8, 16, 128], strides = [1, 1, 1]} : vector<8x18x128xf32> to vector<8x16x128xf32>
      %57 = vector.shape_cast %56 : vector<8x16x128xf32> to vector<128x128xf32>
      %58 = arith.truncf %57 : vector<128x128xf32> to vector<128x128xbf16>
      %c5 = arith.constant 5 : index
      %c0_46 = arith.constant 0 : index
      %c0_47 = arith.constant 0 : index
      %59 = vector.load %arg2[%c5, %c0_46, %c0_47] : memref<9x128x128xbf16, #tpu.memory_space<vmem>>, vector<1x128x128xbf16>
      %60 = vector.shape_cast %59 : vector<1x128x128xbf16> to vector<128x128xbf16>
      %cst_48 = arith.constant dense<0.000000e+00> : vector<128x128xf32>
      %61 = tpu.matmul %58, %60, %cst_48 {dimension_numbers = #tpu.dot_dimension_numbers<[1], [0], [0], [1], [0, 0, 1, 1], [], []>} : vector<128x128xbf16>, vector<128x128xbf16>, vector<128x128xf32> -> vector<128x128xf32>
      %62 = arith.addf %55, %61 : vector<128x128xf32>
      %c2_i32_49 = arith.constant 2 : i32
      %63 = arith.addi %13, %c2_i32_49 : i32
      %c0_50 = arith.constant 0 : index
      %64 = arith.index_cast %63 : i32 to index
      %c0_51 = arith.constant 0 : index
      %c0_52 = arith.constant 0 : index
      %65 = vector.load %arg1[%c0_50, %64, %c0_51, %c0_52] : memref<1x18x18x128xf32, #tpu.memory_space<vmem>>, vector<1x8x18x128xf32>
      %66 = vector.shape_cast %65 : vector<1x8x18x128xf32> to vector<8x18x128xf32>
      %67 = vector.extract_strided_slice %66 {offsets = [0, 0, 0], sizes = [8, 16, 128], strides = [1, 1, 1]} : vector<8x18x128xf32> to vector<8x16x128xf32>
      %68 = vector.shape_cast %67 : vector<8x16x128xf32> to vector<128x128xf32>
      %69 = arith.truncf %68 : vector<128x128xf32> to vector<128x128xbf16>
      %c6 = arith.constant 6 : index
      %c0_53 = arith.constant 0 : index
      %c0_54 = arith.constant 0 : index
      %70 = vector.load %arg2[%c6, %c0_53, %c0_54] : memref<9x128x128xbf16, #tpu.memory_space<vmem>>, vector<1x128x128xbf16>
      %71 = vector.shape_cast %70 : vector<1x128x128xbf16> to vector<128x128xbf16>
      %cst_55 = arith.constant dense<0.000000e+00> : vector<128x128xf32>
      %72 = tpu.matmul %69, %71, %cst_55 {dimension_numbers = #tpu.dot_dimension_numbers<[1], [0], [0], [1], [0, 0, 1, 1], [], []>} : vector<128x128xbf16>, vector<128x128xbf16>, vector<128x128xf32> -> vector<128x128xf32>
      %73 = arith.addf %62, %72 : vector<128x128xf32>
      %74 = vector.extract_strided_slice %66 {offsets = [0, 1, 0], sizes = [8, 16, 128], strides = [1, 1, 1]} : vector<8x18x128xf32> to vector<8x16x128xf32>
      %75 = vector.shape_cast %74 : vector<8x16x128xf32> to vector<128x128xf32>
      %76 = arith.truncf %75 : vector<128x128xf32> to vector<128x128xbf16>
      %c7_56 = arith.constant 7 : index
      %c0_57 = arith.constant 0 : index
      %c0_58 = arith.constant 0 : index
      %77 = vector.load %arg2[%c7_56, %c0_57, %c0_58] : memref<9x128x128xbf16, #tpu.memory_space<vmem>>, vector<1x128x128xbf16>
      %78 = vector.shape_cast %77 : vector<1x128x128xbf16> to vector<128x128xbf16>
      %cst_59 = arith.constant dense<0.000000e+00> : vector<128x128xf32>
      %79 = tpu.matmul %76, %78, %cst_59 {dimension_numbers = #tpu.dot_dimension_numbers<[1], [0], [0], [1], [0, 0, 1, 1], [], []>} : vector<128x128xbf16>, vector<128x128xbf16>, vector<128x128xf32> -> vector<128x128xf32>
      %80 = arith.addf %73, %79 : vector<128x128xf32>
      %81 = vector.extract_strided_slice %66 {offsets = [0, 2, 0], sizes = [8, 16, 128], strides = [1, 1, 1]} : vector<8x18x128xf32> to vector<8x16x128xf32>
      %82 = vector.shape_cast %81 : vector<8x16x128xf32> to vector<128x128xf32>
      %83 = arith.truncf %82 : vector<128x128xf32> to vector<128x128xbf16>
      %c8_60 = arith.constant 8 : index
      %c0_61 = arith.constant 0 : index
      %c0_62 = arith.constant 0 : index
      %84 = vector.load %arg2[%c8_60, %c0_61, %c0_62] : memref<9x128x128xbf16, #tpu.memory_space<vmem>>, vector<1x128x128xbf16>
      %85 = vector.shape_cast %84 : vector<1x128x128xbf16> to vector<128x128xbf16>
      %cst_63 = arith.constant dense<0.000000e+00> : vector<128x128xf32>
      %86 = tpu.matmul %83, %85, %cst_63 {dimension_numbers = #tpu.dot_dimension_numbers<[1], [0], [0], [1], [0, 0, 1, 1], [], []>} : vector<128x128xbf16>, vector<128x128xbf16>, vector<128x128xf32> -> vector<128x128xf32>
      %87 = arith.addf %80, %86 : vector<128x128xf32>
      %88 = vector.broadcast %0 : vector<1x128xf32> to vector<128x128xf32>
      %89 = arith.mulf %87, %88 : vector<128x128xf32>
      %90 = vector.broadcast %1 : vector<1x128xf32> to vector<128x128xf32>
      %91 = arith.addf %89, %90 : vector<128x128xf32>
      %cst_64 = arith.constant 0.000000e+00 : f32
      %92 = vector.broadcast %cst_64 : f32 to vector<128x128xf32>
      %93 = arith.maximumf %91, %92 : vector<128x128xf32>
      %94 = vector.shape_cast %93 : vector<128x128xf32> to vector<8x16x128xf32>
      %c8_i32_65 = arith.constant 8 : i32
      %95 = arith.addi %c8_i32_65, %13 : i32
      %96 = arith.index_cast %95 : i32 to index
      %c8_66 = arith.constant 8 : index
      %c0_67 = arith.constant 0 : index
      %97 = vector.load %arg9[%96, %c8_66, %c0_67] : memref<32x32x128xf32, #tpu.memory_space<vmem>>, vector<8x16x128xf32>
      tpu.vector_store %arg9[%96, %c8_66, %c0_67], %94 {strides = array<i32>} : memref<32x32x128xf32, #tpu.memory_space<vmem>>, vector<8x16x128xf32>,
    }
    %c2_i32_17 = arith.constant 2 : i32
    %c0_i32_18 = arith.constant 0 : i32
    %c2_i32_19 = arith.constant 2 : i32
    %11 = arith.addi %c0_i32_18, %c2_i32_19 : i32
    %c1_i32_20 = arith.constant 1 : i32
    scf.for %arg10 = %c0_i32_18 to %11 step %c1_i32_20  : i32 {
      %c8_i32 = arith.constant 8 : i32
      %12 = arith.muli %arg10, %c8_i32 : i32
      %13 = tpu.assume_multiple %12, 8 : i32
      %c7_i32 = arith.constant 7 : i32
      %14 = arith.addi %c7_i32, %13 : i32
      %c0_i32_22 = arith.constant 0 : i32
      %15 = arith.addi %14, %c0_i32_22 : i32
      %16 = arith.index_cast %15 : i32 to index
      %c7_23 = arith.constant 7 : index
      %c0_24 = arith.constant 0 : index
      %17 = vector.load %arg9[%16, %c7_23, %c0_24] : memref<32x32x128xf32, #tpu.memory_space<vmem>>, vector<8x18x128xf32>
      %18 = vector.extract_strided_slice %17 {offsets = [0, 0, 0], sizes = [8, 16, 128], strides = [1, 1, 1]} : vector<8x18x128xf32> to vector<8x16x128xf32>
      %19 = vector.shape_cast %18 : vector<8x16x128xf32> to vector<128x128xf32>
      %20 = arith.truncf %19 : vector<128x128xf32> to vector<128x128xbf16>
      %c0_25 = arith.constant 0 : index
      %c0_26 = arith.constant 0 : index
      %c0_27 = arith.constant 0 : index
      %21 = vector.load %arg5[%c0_25, %c0_26, %c0_27] : memref<9x128x128xbf16, #tpu.memory_space<vmem>>, vector<1x128x128xbf16>
      %22 = vector.shape_cast %21 : vector<1x128x128xbf16> to vector<128x128xbf16>
      %cst_28 = arith.constant dense<0.000000e+00> : vector<128x128xf32>
      %23 = tpu.matmul %20, %22, %cst_28 {dimension_numbers = #tpu.dot_dimension_numbers<[1], [0], [0], [1], [0, 0, 1, 1], [], []>} : vector<128x128xbf16>, vector<128x128xbf16>, vector<128x128xf32> -> vector<128x128xf32>
      %24 = vector.extract_strided_slice %17 {offsets = [0, 1, 0], sizes = [8, 16, 128], strides = [1, 1, 1]} : vector<8x18x128xf32> to vector<8x16x128xf32>
      %25 = vector.shape_cast %24 : vector<8x16x128xf32> to vector<128x128xf32>
      %26 = arith.truncf %25 : vector<128x128xf32> to vector<128x128xbf16>
      %c1 = arith.constant 1 : index
      %c0_29 = arith.constant 0 : index
      %c0_30 = arith.constant 0 : index
      %27 = vector.load %arg5[%c1, %c0_29, %c0_30] : memref<9x128x128xbf16, #tpu.memory_space<vmem>>, vector<1x128x128xbf16>
      %28 = vector.shape_cast %27 : vector<1x128x128xbf16> to vector<128x128xbf16>
      %cst_31 = arith.constant dense<0.000000e+00> : vector<128x128xf32>
      %29 = tpu.matmul %26, %28, %cst_31 {dimension_numbers = #tpu.dot_dimension_numbers<[1], [0], [0], [1], [0, 0, 1, 1], [], []>} : vector<128x128xbf16>, vector<128x128xbf16>, vector<128x128xf32> -> vector<128x128xf32>
      %30 = arith.addf %23, %29 : vector<128x128xf32>
      %31 = vector.extract_strided_slice %17 {offsets = [0, 2, 0], sizes = [8, 16, 128], strides = [1, 1, 1]} : vector<8x18x128xf32> to vector<8x16x128xf32>
      %32 = vector.shape_cast %31 : vector<8x16x128xf32> to vector<128x128xf32>
      %33 = arith.truncf %32 : vector<128x128xf32> to vector<128x128xbf16>
      %c2 = arith.constant 2 : index
      %c0_32 = arith.constant 0 : index
      %c0_33 = arith.constant 0 : index
      %34 = vector.load %arg5[%c2, %c0_32, %c0_33] : memref<9x128x128xbf16, #tpu.memory_space<vmem>>, vector<1x128x128xbf16>
      %35 = vector.shape_cast %34 : vector<1x128x128xbf16> to vector<128x128xbf16>
      %cst_34 = arith.constant dense<0.000000e+00> : vector<128x128xf32>
      %36 = tpu.matmul %33, %35, %cst_34 {dimension_numbers = #tpu.dot_dimension_numbers<[1], [0], [0], [1], [0, 0, 1, 1], [], []>} : vector<128x128xbf16>, vector<128x128xbf16>, vector<128x128xf32> -> vector<128x128xf32>
      %37 = arith.addf %30, %36 : vector<128x128xf32>
      %c7_i32_35 = arith.constant 7 : i32
      %38 = arith.addi %c7_i32_35, %13 : i32
      %c1_i32_36 = arith.constant 1 : i32
      %39 = arith.addi %38, %c1_i32_36 : i32
      %40 = arith.index_cast %39 : i32 to index
      %c7_37 = arith.constant 7 : index
      %c0_38 = arith.constant 0 : index
      %41 = vector.load %arg9[%40, %c7_37, %c0_38] : memref<32x32x128xf32, #tpu.memory_space<vmem>>, vector<8x18x128xf32>
      %42 = vector.extract_strided_slice %41 {offsets = [0, 0, 0], sizes = [8, 16, 128], strides = [1, 1, 1]} : vector<8x18x128xf32> to vector<8x16x128xf32>
      %43 = vector.shape_cast %42 : vector<8x16x128xf32> to vector<128x128xf32>
      %44 = arith.truncf %43 : vector<128x128xf32> to vector<128x128xbf16>
      %c3 = arith.constant 3 : index
      %c0_39 = arith.constant 0 : index
      %c0_40 = arith.constant 0 : index
      %45 = vector.load %arg5[%c3, %c0_39, %c0_40] : memref<9x128x128xbf16, #tpu.memory_space<vmem>>, vector<1x128x128xbf16>
      %46 = vector.shape_cast %45 : vector<1x128x128xbf16> to vector<128x128xbf16>
      %cst_41 = arith.constant dense<0.000000e+00> : vector<128x128xf32>
      %47 = tpu.matmul %44, %46, %cst_41 {dimension_numbers = #tpu.dot_dimension_numbers<[1], [0], [0], [1], [0, 0, 1, 1], [], []>} : vector<128x128xbf16>, vector<128x128xbf16>, vector<128x128xf32> -> vector<128x128xf32>
      %48 = arith.addf %37, %47 : vector<128x128xf32>
      %49 = vector.extract_strided_slice %41 {offsets = [0, 1, 0], sizes = [8, 16, 128], strides = [1, 1, 1]} : vector<8x18x128xf32> to vector<8x16x128xf32>
      %50 = vector.shape_cast %49 : vector<8x16x128xf32> to vector<128x128xf32>
      %51 = arith.truncf %50 : vector<128x128xf32> to vector<128x128xbf16>
      %c4 = arith.constant 4 : index
      %c0_42 = arith.constant 0 : index
      %c0_43 = arith.constant 0 : index
      %52 = vector.load %arg5[%c4, %c0_42, %c0_43] : memref<9x128x128xbf16, #tpu.memory_space<vmem>>, vector<1x128x128xbf16>
      %53 = vector.shape_cast %52 : vector<1x128x128xbf16> to vector<128x128xbf16>
      %cst_44 = arith.constant dense<0.000000e+00> : vector<128x128xf32>
      %54 = tpu.matmul %51, %53, %cst_44 {dimension_numbers = #tpu.dot_dimension_numbers<[1], [0], [0], [1], [0, 0, 1, 1], [], []>} : vector<128x128xbf16>, vector<128x128xbf16>, vector<128x128xf32> -> vector<128x128xf32>
      %55 = arith.addf %48, %54 : vector<128x128xf32>
      %56 = vector.extract_strided_slice %41 {offsets = [0, 2, 0], sizes = [8, 16, 128], strides = [1, 1, 1]} : vector<8x18x128xf32> to vector<8x16x128xf32>
      %57 = vector.shape_cast %56 : vector<8x16x128xf32> to vector<128x128xf32>
      %58 = arith.truncf %57 : vector<128x128xf32> to vector<128x128xbf16>
      %c5 = arith.constant 5 : index
      %c0_45 = arith.constant 0 : index
      %c0_46 = arith.constant 0 : index
      %59 = vector.load %arg5[%c5, %c0_45, %c0_46] : memref<9x128x128xbf16, #tpu.memory_space<vmem>>, vector<1x128x128xbf16>
      %60 = vector.shape_cast %59 : vector<1x128x128xbf16> to vector<128x128xbf16>
      %cst_47 = arith.constant dense<0.000000e+00> : vector<128x128xf32>
      %61 = tpu.matmul %58, %60, %cst_47 {dimension_numbers = #tpu.dot_dimension_numbers<[1], [0], [0], [1], [0, 0, 1, 1], [], []>} : vector<128x128xbf16>, vector<128x128xbf16>, vector<128x128xf32> -> vector<128x128xf32>
      %62 = arith.addf %55, %61 : vector<128x128xf32>
      %c7_i32_48 = arith.constant 7 : i32
      %63 = arith.addi %c7_i32_48, %13 : i32
      %c2_i32_49 = arith.constant 2 : i32
      %64 = arith.addi %63, %c2_i32_49 : i32
      %65 = arith.index_cast %64 : i32 to index
      %c7_50 = arith.constant 7 : index
      %c0_51 = arith.constant 0 : index
      %66 = vector.load %arg9[%65, %c7_50, %c0_51] : memref<32x32x128xf32, #tpu.memory_space<vmem>>, vector<8x18x128xf32>
      %67 = vector.extract_strided_slice %66 {offsets = [0, 0, 0], sizes = [8, 16, 128], strides = [1, 1, 1]} : vector<8x18x128xf32> to vector<8x16x128xf32>
      %68 = vector.shape_cast %67 : vector<8x16x128xf32> to vector<128x128xf32>
      %69 = arith.truncf %68 : vector<128x128xf32> to vector<128x128xbf16>
      %c6 = arith.constant 6 : index
      %c0_52 = arith.constant 0 : index
      %c0_53 = arith.constant 0 : index
      %70 = vector.load %arg5[%c6, %c0_52, %c0_53] : memref<9x128x128xbf16, #tpu.memory_space<vmem>>, vector<1x128x128xbf16>
      %71 = vector.shape_cast %70 : vector<1x128x128xbf16> to vector<128x128xbf16>
      %cst_54 = arith.constant dense<0.000000e+00> : vector<128x128xf32>
      %72 = tpu.matmul %69, %71, %cst_54 {dimension_numbers = #tpu.dot_dimension_numbers<[1], [0], [0], [1], [0, 0, 1, 1], [], []>} : vector<128x128xbf16>, vector<128x128xbf16>, vector<128x128xf32> -> vector<128x128xf32>
      %73 = arith.addf %62, %72 : vector<128x128xf32>
      %74 = vector.extract_strided_slice %66 {offsets = [0, 1, 0], sizes = [8, 16, 128], strides = [1, 1, 1]} : vector<8x18x128xf32> to vector<8x16x128xf32>
      %75 = vector.shape_cast %74 : vector<8x16x128xf32> to vector<128x128xf32>
      %76 = arith.truncf %75 : vector<128x128xf32> to vector<128x128xbf16>
      %c7_55 = arith.constant 7 : index
      %c0_56 = arith.constant 0 : index
      %c0_57 = arith.constant 0 : index
      %77 = vector.load %arg5[%c7_55, %c0_56, %c0_57] : memref<9x128x128xbf16, #tpu.memory_space<vmem>>, vector<1x128x128xbf16>
      %78 = vector.shape_cast %77 : vector<1x128x128xbf16> to vector<128x128xbf16>
      %cst_58 = arith.constant dense<0.000000e+00> : vector<128x128xf32>
      %79 = tpu.matmul %76, %78, %cst_58 {dimension_numbers = #tpu.dot_dimension_numbers<[1], [0], [0], [1], [0, 0, 1, 1], [], []>} : vector<128x128xbf16>, vector<128x128xbf16>, vector<128x128xf32> -> vector<128x128xf32>
      %80 = arith.addf %73, %79 : vector<128x128xf32>
      %81 = vector.extract_strided_slice %66 {offsets = [0, 2, 0], sizes = [8, 16, 128], strides = [1, 1, 1]} : vector<8x18x128xf32> to vector<8x16x128xf32>
      %82 = vector.shape_cast %81 : vector<8x16x128xf32> to vector<128x128xf32>
      %83 = arith.truncf %82 : vector<128x128xf32> to vector<128x128xbf16>
      %c8_59 = arith.constant 8 : index
      %c0_60 = arith.constant 0 : index
      %c0_61 = arith.constant 0 : index
      %84 = vector.load %arg5[%c8_59, %c0_60, %c0_61] : memref<9x128x128xbf16, #tpu.memory_space<vmem>>, vector<1x128x128xbf16>
      %85 = vector.shape_cast %84 : vector<1x128x128xbf16> to vector<128x128xbf16>
      %cst_62 = arith.constant dense<0.000000e+00> : vector<128x128xf32>
      %86 = tpu.matmul %83, %85, %cst_62 {dimension_numbers = #tpu.dot_dimension_numbers<[1], [0], [0], [1], [0, 0, 1, 1], [], []>} : vector<128x128xbf16>, vector<128x128xbf16>, vector<128x128xf32> -> vector<128x128xf32>
      %87 = arith.addf %80, %86 : vector<128x128xf32>
      %c1_i32_63 = arith.constant 1 : i32
      %88 = arith.addi %c1_i32_63, %13 : i32
      %c0_64 = arith.constant 0 : index
      %89 = arith.index_cast %88 : i32 to index
      %c1_65 = arith.constant 1 : index
      %c0_66 = arith.constant 0 : index
      %90 = vector.load %arg1[%c0_64, %89, %c1_65, %c0_66] : memref<1x18x18x128xf32, #tpu.memory_space<vmem>>, vector<1x8x16x128xf32>
      %91 = vector.shape_cast %90 : vector<1x8x16x128xf32> to vector<8x16x128xf32>
      %92 = vector.shape_cast %91 : vector<8x16x128xf32> to vector<128x128xf32>
      %93 = vector.broadcast %2 : vector<1x128xf32> to vector<128x128xf32>
      %94 = arith.mulf %87, %93 : vector<128x128xf32>
      %95 = vector.broadcast %3 : vector<1x128xf32> to vector<128x128xf32>
      %96 = arith.addf %94, %95 : vector<128x128xf32>
      %97 = arith.addf %96, %92 : vector<128x128xf32>
      %cst_67 = arith.constant 0.000000e+00 : f32
      %98 = vector.broadcast %cst_67 : f32 to vector<128x128xf32>
      %99 = arith.maximumf %97, %98 : vector<128x128xf32>
      %100 = vector.shape_cast %99 : vector<128x128xf32> to vector<8x16x128xf32>
      %c0_68 = arith.constant 0 : index
      %101 = arith.index_cast %13 : i32 to index
      %c0_69 = arith.constant 0 : index
      %c0_70 = arith.constant 0 : index
      %102 = vector.load %arg8[%c0_68, %101, %c0_69, %c0_70] : memref<1x16x16x128xf32, #tpu.memory_space<vmem>>, vector<1x8x16x128xf32>
      %103 = vector.shape_cast %102 : vector<1x8x16x128xf32> to vector<8x16x128xf32>
      %104 = vector.shape_cast %100 : vector<8x16x128xf32> to vector<1x8x16x128xf32>
      tpu.vector_store %arg8[%c0_68, %101, %c0_69, %c0_70], %104 {strides = array<i32>} : memref<1x16x16x128xf32, #tpu.memory_space<vmem>>, vector<1x8x16x128xf32>,
    }
    %c2_i32_21 = arith.constant 2 : i32
    return
  }
  func.func @transform_0(%arg0: i32) -> (i32, i32, i32, i32) {
    %c0_i32 = arith.constant 0 : i32
    %c0_i32_0 = arith.constant 0 : i32
    %c0_i32_1 = arith.constant 0 : i32
    %c0_i32_2 = arith.constant 0 : i32
    return %arg0, %c0_i32, %c0_i32_0, %c0_i32_1 : i32, i32, i32, i32
  }
  func.func @transform_1(%arg0: i32) -> (i32, i32, i32) {
    %c0_i32 = arith.constant 0 : i32
    %c0_i32_0 = arith.constant 0 : i32
    %c0_i32_1 = arith.constant 0 : i32
    %c0_i32_2 = arith.constant 0 : i32
    return %c0_i32, %c0_i32_0, %c0_i32_1 : i32, i32, i32
  }
  func.func @transform_2(%arg0: i32) -> (i32, i32) {
    %c0_i32 = arith.constant 0 : i32
    %c0_i32_0 = arith.constant 0 : i32
    %c0_i32_1 = arith.constant 0 : i32
    return %c0_i32, %c0_i32_0 : i32, i32
  }
  func.func @transform_3(%arg0: i32) -> (i32, i32) {
    %c0_i32 = arith.constant 0 : i32
    %c0_i32_0 = arith.constant 0 : i32
    %c0_i32_1 = arith.constant 0 : i32
    return %c0_i32, %c0_i32_0 : i32, i32
  }
  func.func @transform_4(%arg0: i32) -> (i32, i32, i32) {
    %c0_i32 = arith.constant 0 : i32
    %c0_i32_0 = arith.constant 0 : i32
    %c0_i32_1 = arith.constant 0 : i32
    %c0_i32_2 = arith.constant 0 : i32
    return %c0_i32, %c0_i32_0, %c0_i32_1 : i32, i32, i32
  }
  func.func @transform_5(%arg0: i32) -> (i32, i32) {
    %c0_i32 = arith.constant 0 : i32
    %c0_i32_0 = arith.constant 0 : i32
    %c0_i32_1 = arith.constant 0 : i32
    return %c0_i32, %c0_i32_0 : i32, i32
  }
  func.func @transform_6(%arg0: i32) -> (i32, i32) {
    %c0_i32 = arith.constant 0 : i32
    %c0_i32_0 = arith.constant 0 : i32
    %c0_i32_1 = arith.constant 0 : i32
    return %c0_i32, %c0_i32_0 : i32, i32
  }
  func.func @transform_7(%arg0: i32) -> (i32, i32, i32, i32) {
    %c0_i32 = arith.constant 0 : i32
    %c0_i32_0 = arith.constant 0 : i32
    %c0_i32_1 = arith.constant 0 : i32
    %c0_i32_2 = arith.constant 0 : i32
    return %arg0, %c0_i32, %c0_i32_0, %c0_i32_1 : i32, i32, i32, i32
  }
}

</mosaic_0001>

<bundles_post_ra>
// kernel: basic_block_forward.1
= control target key start
LH: loop header
LB: loop body
LE: loop exit
PB: predicated region body
PF: predicated region fallthrough
CT: control target
= control target key end

     0   :  { %s5315_s24 = smov 0   ;;  %s7022_s0 = inlined_call_operand.vmem [shape: f32[2,18,18,128], index: 0, kind: input, shape index: {}]   ;;  %s7023_s1 = inlined_call_operand.vmem [shape: bf16[9,128,128], index: 1, kind: input, shape index: {}]   ;;  %s7024_s2 = inlined_call_operand.vmem [shape: f32[1,128], index: 2, kind: input, shape index: {}]   ;;  %s7025_s3 = inlined_call_operand.vmem [shape: f32[1,128], index: 3, kind: input, shape index: {}]   ;;  %s7026_s4 = inlined_call_operand.vmem [shape: bf16[9,128,128], index: 4, kind: input, shape index: {}]   ;;  %s7027_s5 = inlined_call_operand.vmem [shape: f32[1,128], index: 5, kind: input, shape index: {}]   ;;  %s7028_s6 = inlined_call_operand.vmem [shape: f32[1,128], index: 6, kind: input, shape index: {}]   ;;  %s7029_s7 = inlined_call_operand.vmem [shape: f32[2,16,16,128], index: 7, kind: output, shape index: {}]  }
   0x1 LB: > { %s4014_s25 = sadd.s32 4294967295, %s5264_s24   ;;  %p4018_p0 = scmp.ge.s32.totalorder %s5264_s24, 1  ;;  %s5264_s24 = sphi %s5315_s24, %s17_s24  }
   0x2   : > { %p237_p1 = scmp.lt.s32.totalorder %s5264_s24, 3 }
   0x4   : > { %p238_p2 = pnand %p4018_p0, %p237_p1 }
   0x6   : > { %241 = sbr.rel (%p238_p2) target bundleno = 970 (0x3ca), region = 48 }
   0xb   : > { %p269_p3 = scmp.lt.s32.totalorder %s4014_s25, 1  ;;  %v5326_v0 = vld [vmem:[%s7024_s2] sm:$0x1]  ;;  %v5274_v4 = vmov 0.0   ;;  %s5353_s19 = smov 0  }
   0xc   : > { %7030 = vst [vmem:[#allocation3_spill] sm:$0xff] %v5326_v0  ;;  %v5331_v1 = vld [vmem:[%s7025_s3] sm:$0x1] }
   0xd   : > { %7031 = vst [vmem:[#allocation4_spill] sm:$0xff] %v5331_v1  ;;  %v5336_v2 = vld [vmem:[%s7027_s5] sm:$0x1]  ;;  %s7047_s25 = smov (!%p269_p3, %s4014_s25), 1 }
   0xe   : > { %7032 = vst [vmem:[#allocation5_spill] sm:$0xff] %v5336_v2  ;;  %v5341_v3 = vld [vmem:[%s7028_s6] sm:$0x1]  ;;  %s5224_s11 = smul.u32 432, %s7047_s25  ;;  %s5026_s12 = sshll.u32 %s7047_s25, 8 }
   0xf   : > { %7033 = vst [vmem:[#allocation6_spill] sm:$0xff] %v5341_v3  ;;  %s5346_s15 = scalar_lea.vmem %s7029_s7, %s5026_s12 }
  0x10   : > { %284 = vst [vmem:[#allocation2 + $0xe7] sm:$0xff] %v5274_v4  ;;  %s5351_s18 = scalar_lea.vmem %s7022_s0, %s5224_s11 }
  0x11   : > { %285 = vst [vmem:[#allocation2 + $0xef] sm:$0xff] %v5274_v4 }
  0x12   : > { %286 = vst [vmem:[#allocation2 + $0xf7] sm:$0x3] %v5274_v4 }
  0x13   : > { %288 = vst [vmem:[#allocation2 + $0x307] sm:$0xff] %v5274_v4 }
  0x14   : > { %289 = vst [vmem:[#allocation2 + $0x30f] sm:$0xff] %v5274_v4 }
  0x15   : > { %290 = vst [vmem:[#allocation2 + $0x317] sm:$0x3] %v5274_v4 }
  0x16   : > { %292 = vst [vmem:[#allocation2 + $0x107] sm:$0x1] %v5274_v4 }
  0x17   : > { %293 = vst [vmem:[#allocation2 + $0x127] sm:$0x1] %v5274_v4 }
  0x18   : > { %294 = vst [vmem:[#allocation2 + $0x147] sm:$0x1] %v5274_v4 }
  0x19   : > { %295 = vst [vmem:[#allocation2 + $0x167] sm:$0x1] %v5274_v4 }
  0x1a   : > { %296 = vst [vmem:[#allocation2 + $0x187] sm:$0x1] %v5274_v4 }
  0x1b   : > { %297 = vst [vmem:[#allocation2 + $0x1a7] sm:$0x1] %v5274_v4 }
  0x1c   : > { %298 = vst [vmem:[#allocation2 + $0x1c7] sm:$0x1] %v5274_v4 }
  0x1d   : > { %299 = vst [vmem:[#allocation2 + $0x1e7] sm:$0x1] %v5274_v4 }
  0x1e   : > { %300 = vst [vmem:[#allocation2 + $0x207] sm:$0x1] %v5274_v4 }
  0x1f   : > { %301 = vst [vmem:[#allocation2 + $0x227] sm:$0x1] %v5274_v4 }
  0x20   : > { %302 = vst [vmem:[#allocation2 + $0x247] sm:$0x1] %v5274_v4 }
  0x21   : > { %303 = vst [vmem:[#allocation2 + $0x267] sm:$0x1] %v5274_v4 }
  0x22   : > { %304 = vst [vmem:[#allocation2 + $0x287] sm:$0x1] %v5274_v4 }
  0x23   : > { %305 = vst [vmem:[#allocation2 + $0x2a7] sm:$0x1] %v5274_v4 }
  0x24   : > { %306 = vst [vmem:[#allocation2 + $0x2c7] sm:$0x1] %v5274_v4 }
  0x25   : > { %307 = vst [vmem:[#allocation2 + $0x2e7] sm:$0x1] %v5274_v4 }
  0x26   : > { %308 = vst [vmem:[#allocation2 + $0x118] sm:$0x1] %v5274_v4 }
  0x27   : > { %309 = vst [vmem:[#allocation2 + $0x138] sm:$0x1] %v5274_v4 }
  0x28   : > { %310 = vst [vmem:[#allocation2 + $0x158] sm:$0x1] %v5274_v4 }
  0x29   : > { %311 = vst [vmem:[#allocation2 + $0x178] sm:$0x1] %v5274_v4 }
  0x2a   : > { %312 = vst [vmem:[#allocation2 + $0x198] sm:$0x1] %v5274_v4 }
  0x2b   : > { %313 = vst [vmem:[#allocation2 + $0x1b8] sm:$0x1] %v5274_v4 }
  0x2c   : > { %314 = vst [vmem:[#allocation2 + $0x1d8] sm:$0x1] %v5274_v4 }
  0x2d   : > { %315 = vst [vmem:[#allocation2 + $0x1f8] sm:$0x1] %v5274_v4 }
  0x2e   : > { %316 = vst [vmem:[#allocation2 + $0x218] sm:$0x1] %v5274_v4 }
  0x2f   : > { %317 = vst [vmem:[#allocation2 + $0x238] sm:$0x1] %v5274_v4 }
  0x30   : > { %318 = vst [vmem:[#allocation2 + $0x258] sm:$0x1] %v5274_v4 }
  0x31   : > { %319 = vst [vmem:[#allocation2 + $0x278] sm:$0x1] %v5274_v4 }
  0x32   : > { %320 = vst [vmem:[#allocation2 + $0x298] sm:$0x1] %v5274_v4 }
  0x33   : > { %321 = vst [vmem:[#allocation2 + $0x2b8] sm:$0x1] %v5274_v4 }
  0x34   : > { %322 = vst [vmem:[#allocation2 + $0x2d8] sm:$0x1] %v5274_v4 }
  0x35   : > { %323 = vst [vmem:[#allocation2 + $0x2f8] sm:$0x1] %v5274_v4 }
  0x36 LB: >> { %v5042_v5 = vld [vmem:[%s7023_s1 + $0x78] sm:$0xff]  ;;  %v5041_v6 = vld [vmem:[%s7023_s1 + $0x70] sm:$0xff]  ;;  %v5040_v7 = vld [vmem:[%s7023_s1 + $0x68] sm:$0xff]  ;;  %s4023_s29 = smul.u32 192, %s5268_s19  ;;  %vm405_vm0 = vcmask 1046528   ;;  %vm681_vm1 = vcmask 1045504   ;;  %s5268_s19 = sphi %s5353_s19, %s329_s19  }
  0x37   : >> { %5176 = vmatpush.bf16.msra.mxu1 %v5042_v5  ;;  %5177 = vmatpush.bf16.msra.mxu2 %v5042_v5  ;;  %v5039_v8 = vld [vmem:[%s7023_s1 + $0x60] sm:$0xff]  ;;  %v5038_v9 = vld [vmem:[%s7023_s1 + $0x58] sm:$0xff]  ;;  %v5037_v10 = vld [vmem:[%s7023_s1 + $0x50] sm:$0xff] }
  0x38   : >> { %5178 = vmatpush.bf16.msra.mxu3 %v5042_v5  ;;  %535 = vmatpush.bf16.msra.mxu0 %v5042_v5  ;;  %s5375_s9 = scalar_lea.vmem %s5351_s18, %s4023_s29  ;;  %v5036_v27 = vld [vmem:[%s7023_s1 + $0x48] sm:$0xff]  ;;  %v5035_v38 = vld [vmem:[%s7023_s1 + $0x40] sm:$0xff]  ;;  %v5050_v45 = vld [vmem:[%s7023_s1 + $0xb8] sm:$0xff] }
  0x39   : >> { %v5381_v11 = vld [vmem:[%s5375_s9 + $0x30] sm:$0xff]  ;;  %v5384_v12 = vld [vmem:[%s5375_s9 + $0x38] sm:$0xff]  ;;  %v5387_v13 = vld [vmem:[%s5375_s9 + $0x40] sm:$0x3] }
  0x3a   : >> { %v5390_v14 = vld [vmem:[%s5375_s9 + $0x60] sm:$0xff]  ;;  %v5393_v15 = vld [vmem:[%s5375_s9 + $0x68] sm:$0xff]  ;;  %v5396_v16 = vld [vmem:[%s5375_s9 + $0x90] sm:$0xff]  ;;  %v416_v23 = vrot.slane %v5381_v11, 1  ;;  %v5418_v24 = vrot.slane %v5384_v12, 1  ;;  %v419_v25 = vrot.slane %v5387_v13, 1 }
  0x3b   : >> { %5179 = vmatpush.bf16.msra.mxu1 %v5041_v6  ;;  %5180 = vmatpush.bf16.msra.mxu2 %v5041_v6  ;;  %v5399_v17 = vld [vmem:[%s5375_s9 + $0x70] sm:$0x3]  ;;  %v5402_v18 = vld [vmem:[%s5375_s9 + $0x98] sm:$0xff]  ;;  %v5405_v19 = vld [vmem:[%s5375_s9 + $0xa0] sm:$0x3]  ;;  %v426_v26 = vrot.slane %v5390_v14, 1 }
  0x3c   : >> { %5181 = vmatpush.bf16.msra.mxu3 %v5041_v6  ;;  %536 = vmatpush.bf16.msra.mxu0 %v5041_v6  ;;  %v5408_v20 = vld [vmem:[%s5375_s9] sm:$0xff]  ;;  %v5411_v21 = vld [vmem:[%s5375_s9 + $0x8] sm:$0xff]  ;;  %v5414_v22 = vld [vmem:[%s5375_s9 + $0x10] sm:$0x3]  ;;  %v5426_v28 = vrot.slane %v5393_v15, 1  ;;  %v429_v29 = vrot.slane %v5399_v17, 1  ;;  %v5439_v36 = vsel %vm405_vm0, %v416_v23, %v5418_v24  ;;  %v420_v37 = vsel %vm405_vm0, %v5418_v24, %v419_v25 }
  0x3d   : >> { %v436_v30 = vrot.slane %v5396_v16, 1  ;;  %v5431_v31 = vrot.slane %v5402_v18, 1  ;;  %v439_v32 = vrot.slane %v5405_v19, 1  ;;  %v406_v33 = vrot.slane %v5408_v20, 1  ;;  %v5034_v46 = vld [vmem:[%s7023_s1 + $0x38] sm:$0xff]  ;;  %v5049_v53 = vld [vmem:[%s7023_s1 + $0xb0] sm:$0xff] }
  0x3e   : >> { %v407_v34 = vrot.slane %v5411_v21, 1  ;;  %v409_v35 = vrot.slane %v5414_v22, 1  ;;  %v5448_v39 = vsel %vm405_vm0, %v426_v26, %v5426_v28  ;;  %v430_v40 = vsel %vm405_vm0, %v5426_v28, %v429_v29  ;;  %v5058_v51 = vld [vmem:[%s7023_s1 + $0xf8] sm:$0xff]  ;;  %v5033_v54 = vld [vmem:[%s7023_s1 + $0x30] sm:$0xff]  ;;  %v5488_v57 = vld [vmem:[%s5375_s9 + $0x48] sm:$0xff] }
  0x3f   : >> { %5182 = vmatpush.bf16.msra.mxu1 %v5040_v7  ;;  %5183 = vmatpush.bf16.msra.mxu2 %v5040_v7  ;;  %v5454_v41 = vsel %vm405_vm0, %v436_v30, %v5431_v31  ;;  %v440_v42 = vsel %vm405_vm0, %v5431_v31, %v439_v32  ;;  %v464_v47 = vpack.c.bf16 %v420_v37, %v5439_v36  ;;  %v5066_v52 = vld [vmem:[%s7023_s1 + $0x138] sm:$0xff]  ;;  %v5057_v55 = vld [vmem:[%s7023_s1 + $0xf0] sm:$0xff]  ;;  %v5048_v60 = vld [vmem:[%s7023_s1 + $0xa8] sm:$0xff]  ;;  %v421_v23 = vrot.slane %v5488_v57, 1 }
  0x40   : >> { %5184 = vmatpush.bf16.msra.mxu3 %v5040_v7  ;;  %537 = vmatpush.bf16.msra.mxu0 %v5040_v7  ;;  %v408_v43 = vsel %vm405_vm0, %v406_v33, %v407_v34  ;;  %v410_v44 = vsel %vm405_vm0, %v407_v34, %v409_v35  ;;  %v466_v48 = vpack.c.bf16 %v430_v40, %v5448_v39  ;;  %v5065_v56 = vld [vmem:[%s7023_s1 + $0x130] sm:$0xff]  ;;  %v5494_v59 = vld [vmem:[%s5375_s9 + $0x58] sm:$0x3]  ;;  %v5032_v61 = vld [vmem:[%s7023_s1 + $0x28] sm:$0xff] }
  0x41   : >> { %v468_v49 = vpack.c.bf16 %v440_v42, %v5454_v41  ;;  %v462_v50 = vpack.c.bf16 %v410_v44, %v408_v43  ;;  %v5491_v58 = vld [vmem:[%s5375_s9 + $0x50] sm:$0xff]  ;;  %v5503_v62 = vld [vmem:[%s5375_s9 + $0x78] sm:$0xff]  ;;  %v5506_v63 = vld [vmem:[%s5375_s9 + $0x80] sm:$0xff]  ;;  %v424_v26 = vrot.slane %v5494_v59, 1 }
  0x42   : >> { %v5509_v4 = vld [vmem:[%s5375_s9 + $0x88] sm:$0x3]  ;;  %v5515_v6 = vld [vmem:[%s5375_s9 + $0xb0] sm:$0xff]  ;;  %v5518_v7 = vld [vmem:[%s5375_s9 + $0xb8] sm:$0x3]  ;;  %v5531_v25 = vrot.slane %v5491_v58, 1 }
  0x43   : >> { %5185 = vmatpush.bf16.msra.mxu1 %v5039_v8  ;;  %5186 = vmatpush.bf16.msra.mxu2 %v5039_v8  ;;  %v5512_v5 = vld [vmem:[%s5375_s9 + $0xa8] sm:$0xff]  ;;  %v5536_v29 = vrot.slane %v5506_v63, 1  ;;  %v434_v30 = vrot.slane %v5509_v4, 1  ;;  %v5541_v33 = vrot.slane %v5515_v6, 1  ;;  %v444_v37 = vrot.slane %v5518_v7, 1  ;;  %v5047_v43 = vld [vmem:[%s7023_s1 + $0xa0] sm:$0xff] }
  0x44   : >> { %5187 = vmatpush.bf16.msra.mxu3 %v5039_v8  ;;  %538 = vmatpush.bf16.msra.mxu0 %v5039_v8  ;;  %v5521_v8 = vld [vmem:[%s5375_s9 + $0x18] sm:$0xff]  ;;  %v441_v32 = vrot.slane %v5512_v5, 1  ;;  %v5056_v34 = vld [vmem:[%s7023_s1 + $0xe8] sm:$0xff]  ;;  %v5031_v44 = vld [vmem:[%s7023_s1 + $0x20] sm:$0xff] }
  0x45   : >> { %v5064_v35 = vld [vmem:[%s7023_s1 + $0x128] sm:$0xff] }
  0x47   : >> { %5188 = vmatpush.bf16.msra.mxu1 %v5038_v9  ;;  %5189 = vmatpush.bf16.msra.mxu2 %v5038_v9 }
  0x48   : >> { %5190 = vmatpush.bf16.msra.mxu3 %v5038_v9  ;;  %539 = vmatpush.bf16.msra.mxu0 %v5038_v9  ;;  %v5524_v9 = vld [vmem:[%s5375_s9 + $0x20] sm:$0xff] }
  0x49   : >> { %v5552_v40 = vrot.slane %v5524_v9, 1 }
  0x4b   : >> { %5191 = vmatpush.bf16.msra.mxu1 %v5037_v10  ;;  %5192 = vmatpush.bf16.msra.mxu2 %v5037_v10 }
  0x4c   : >> { %5193 = vmatpush.bf16.msra.mxu3 %v5037_v10  ;;  %540 = vmatpush.bf16.msra.mxu0 %v5037_v10  ;;  %v5527_v10 = vld [vmem:[%s5375_s9 + $0x28] sm:$0x3] }
  0x4d   : >> { %v414_v42 = vrot.slane %v5527_v10, 1 }
  0x4f   : >> { %5194 = vmatpush.bf16.msra.mxu1 %v5036_v27  ;;  %5195 = vmatpush.bf16.msra.mxu2 %v5036_v27 }
  0x50   : >> { %5196 = vmatpush.bf16.msra.mxu3 %v5036_v27  ;;  %541 = vmatpush.bf16.msra.mxu0 %v5036_v27  ;;  %v431_v27 = vrot.slane %v5503_v62, 1 }
  0x53   : >> { %5197 = vmatpush.bf16.msra.mxu1 %v5035_v38  ;;  %5198 = vmatpush.bf16.msra.mxu2 %v5035_v38 }
  0x54   : >> { %5199 = vmatpush.bf16.msra.mxu3 %v5035_v38  ;;  %542 = vmatpush.bf16.msra.mxu0 %v5035_v38  ;;  %v411_v38 = vrot.slane %v5521_v8, 1 }
  0x56   : >> { %553 = vmatmul.bf16.vlgmr.msra.gmra.mxu1 %v464_v47  ;;  %563 = vmatmul.bf16.vlgmr.msra.gmra.mxu2 %v466_v48  ;;  %v5569_v47 = vsel %vm405_vm0, %v431_v27, %v5536_v29  ;;  %v435_v48 = vsel %vm405_vm0, %v5536_v29, %v434_v30  ;;  %v5054_v27 = vld [vmem:[%s7023_s1 + $0xd8] sm:$0xff] }
  0x57   : >> { %811 = vmatpush.bf16.msrb.mxu2 %v5050_v45  ;;  %632 = vmatpush.bf16.msrb.mxu1 %v5034_v46  ;;  %v5563_v45 = vsel %vm405_vm0, %v421_v23, %v5531_v25  ;;  %v425_v46 = vsel %vm405_vm0, %v5531_v25, %v424_v26  ;;  %v5062_v30 = vld [vmem:[%s7023_s1 + $0x118] sm:$0xff] }
  0x58   : >> { %573 = vmatmul.bf16.vlgmr.msra.gmra.mxu3 %v468_v49  ;;  %543 = vmatmul.bf16.vlgmr.msra.gmra.mxu0 %v462_v50  ;;  %v5575_v49 = vsel %vm405_vm0, %v441_v32, %v5541_v33  ;;  %v5055_v50 = vld [vmem:[%s7023_s1 + $0xe0] sm:$0xff]  ;;  %v5045_v32 = vld [vmem:[%s7023_s1 + $0x90] sm:$0xff] }
  0x59   : >> { %976 = vmatpush.bf16.msrb.mxu3 %v5058_v51  ;;  %1194 = vmatpush.bf16.msrb.mxu0 %v5066_v52  ;;  %v5063_v51 = vld [vmem:[%s7023_s1 + $0x120] sm:$0xff]  ;;  %v445_v52 = vsel %vm405_vm0, %v5541_v33, %v444_v37  ;;  %v5061_v37 = vld [vmem:[%s7023_s1 + $0x110] sm:$0xff] }
  0x5a   : >> { %v469_v23 = vpack.c.bf16 %v445_v52, %v5575_v49 }
  0x5b   : >> { %812 = vmatpush.bf16.msrb.mxu2 %v5049_v53  ;;  %633 = vmatpush.bf16.msrb.mxu1 %v5033_v54  ;;  %v5587_v53 = vsel %vm405_vm0, %v411_v38, %v5552_v40  ;;  %v415_v54 = vsel %vm405_vm0, %v5552_v40, %v414_v42  ;;  %v5044_v38 = vld [vmem:[%s7023_s1 + $0x88] sm:$0xff] }
  0x5c   : >> { %v463_v26 = vpack.c.bf16 %v415_v54, %v5587_v53  ;;  %v5028_v42 = vld [vmem:[%s7023_s1 + $0x8] sm:$0xff]  ;;  %v5027_v54 = vld [vmem:[%s7023_s1] sm:$0xff] }
  0x5d   : >> { %977 = vmatpush.bf16.msrb.mxu3 %v5057_v55  ;;  %1195 = vmatpush.bf16.msrb.mxu0 %v5065_v56  ;;  %v5046_v55 = vld [vmem:[%s7023_s1 + $0x98] sm:$0xff] }
  0x5e   : >> { %v5030_v56 = vld [vmem:[%s7023_s1 + $0x18] sm:$0xff] }
  0x5f   : >> { %813 = vmatpush.bf16.msrb.mxu2 %v5048_v60  ;;  %634 = vmatpush.bf16.msrb.mxu1 %v5032_v61  ;;  %v465_v60 = vpack.c.bf16 %v425_v46, %v5563_v45  ;;  %v467_v61 = vpack.c.bf16 %v435_v48, %v5569_v47  ;;  %v682_v46 = vrot.slane %v5408_v20, 2  ;;  %v683_v48 = vrot.slane %v5411_v21, 2 }
  0x61   : >> { %978 = vmatpush.bf16.msrb.mxu3 %v5056_v34  ;;  %1196 = vmatpush.bf16.msrb.mxu0 %v5064_v35  ;;  %v5029_v34 = vld [vmem:[%s7023_s1 + $0x10] sm:$0xff] }
  0x62   : >> { %v5053_v35 = vld [vmem:[%s7023_s1 + $0xd0] sm:$0xff] }
  0x63   : >> { %814 = vmatpush.bf16.msrb.mxu2 %v5047_v43  ;;  %635 = vmatpush.bf16.msrb.mxu1 %v5031_v44  ;;  %v5626_v43 = vld [vmem:[%s5375_s9 + $0x28] sm:$0x3]  ;;  %v685_v44 = vrot.slane %v5414_v22, 2  ;;  %v5043_v22 = vld [vmem:[%s7023_s1 + $0x80] sm:$0xff] }
  0x64   : >> { %v1068_v52 = vrot.slane %v5626_v43, 1 }
  0x65   : >> { %979 = vmatpush.bf16.msrb.mxu3 %v5055_v50  ;;  %1197 = vmatpush.bf16.msrb.mxu0 %v5063_v51  ;;  %v5052_v50 = vld [vmem:[%s7023_s1 + $0xc8] sm:$0xff] }
  0x66   : >> { %558 = vmatmul.bf16.gmra.mxu1 %v465_v60  ;;  %568 = vmatmul.bf16.gmra.mxu2 %v467_v61  ;;  %v5060_v51 = vld [vmem:[%s7023_s1 + $0x108] sm:$0xff]  ;;  %v684_v60 = vsel %vm681_vm1, %v682_v46, %v683_v48  ;;  %v686_v61 = vsel %vm681_vm1, %v683_v48, %v685_v44  ;;  %v5690_v46 = vld [vmem:[%s5375_s9 + $0x40] sm:$0x3] }
  0x67   : >> { %815 = vmatpush.bf16.msrb.mxu2 %v5046_v55  ;;  %636 = vmatpush.bf16.msrb.mxu1 %v5030_v56  ;;  %v5082_v55 = vld [vmem:[%s7023_s1 + $0x1b8] sm:$0xff]  ;;  %v5072_v44 = vld [vmem:[%s7023_s1 + $0x168] sm:$0xff] }
  0x68   : >> { %578 = vmatmul.bf16.gmra.mxu3 %v469_v23  ;;  %548 = vmatmul.bf16.gmra.mxu0 %v463_v26  ;;  %v5074_v56 = vld [vmem:[%s7023_s1 + $0x178] sm:$0xff]  ;;  %v5051_v23 = vld [vmem:[%s7023_s1 + $0xc0] sm:$0xff]  ;;  %v5088_v48 = vld [vmem:[%s7023_s1 + $0x1e8] sm:$0xff] }
  0x69   : >> { %980 = vmatpush.bf16.msrb.mxu3 %v5054_v27  ;;  %1198 = vmatpush.bf16.msrb.mxu0 %v5062_v30  ;;  %v5059_v26 = vld [vmem:[%s7023_s1 + $0x100] sm:$0xff]  ;;  %v1069_v27 = vsel %vm405_vm0, %v5552_v40, %v1068_v52  ;;  %v5090_v30 = vld [vmem:[%s7023_s1 + $0x1f8] sm:$0xff]  ;;  %v5700_v52 = vrot.slane %v5524_v9, 2 }
  0x6a   : >> { %v1121_v40 = vpack.c.bf16 %v1069_v27, %v5587_v53  ;;  %v5080_v53 = vld [vmem:[%s7023_s1 + $0x1a8] sm:$0xff]  ;;  %v1264_v27 = vrot.slane %v5381_v11, 2 }
  0x6b   : >> { %816 = vmatpush.bf16.msrb.mxu2 %v5045_v32  ;;  %637 = vmatpush.bf16.msrb.mxu1 %v5029_v34  ;;  %v5098_v32 = vld [vmem:[%s7023_s1 + $0x238] sm:$0xff]  ;;  %v357_v34 = vpack.c.bf16 %v5411_v21, %v5408_v20  ;;  %v5089_v20 = vld [vmem:[%s7023_s1 + $0x1f0] sm:$0xff] }
  0x6c   : >> { %v5097_v21 = vld [vmem:[%s7023_s1 + $0x230] sm:$0xff] }
  0x6d   : >> { %981 = vmatpush.bf16.msrb.mxu3 %v5053_v35  ;;  %1199 = vmatpush.bf16.msrb.mxu0 %v5061_v37  ;;  %v738_v35 = vpack.c.bf16 %v686_v61, %v684_v60  ;;  %v903_v37 = vpack.c.bf16 %v5524_v9, %v5521_v8  ;;  %v5079_v61 = vld [vmem:[%s7023_s1 + $0x1a0] sm:$0xff] }
  0x6f   : >> { %817 = vmatpush.bf16.msrb.mxu2 %v5044_v38  ;;  %638 = vmatpush.bf16.msrb.mxu1 %v5028_v42  ;;  %v5081_v38 = vld [vmem:[%s7023_s1 + $0x1b0] sm:$0xff] }
  0x70   : >> { %v5073_v42 = vld [vmem:[%s7023_s1 + $0x170] sm:$0xff] }
  0x71   : >> { %982 = vmatpush.bf16.msrb.mxu3 %v5052_v50  ;;  %1200 = vmatpush.bf16.msrb.mxu0 %v5060_v51  ;;  %v5096_v50 = vld [vmem:[%s7023_s1 + $0x228] sm:$0xff]  ;;  %v1259_v51 = vrot.slane %v5521_v8, 2 }
  0x73   : >> { %818 = vmatpush.bf16.msrb.mxu2 %v5043_v22  ;;  %639 = vmatpush.bf16.msrb.mxu1 %v5027_v54  ;;  %v690_v22 = vrot.slane %v5527_v10, 2  ;;  %v1073_v54 = vrot.slane %v5690_v46, 1  ;;  %v904_v10 = vpack.c.bf16 %v5384_v12, %v5381_v11 }
  0x75   : >> { %983 = vmatpush.bf16.msrb.mxu3 %v5051_v23  ;;  %1201 = vmatpush.bf16.msrb.mxu0 %v5059_v26  ;;  %v1074_v8 = vsel %vm405_vm0, %v5418_v24, %v1073_v54  ;;  %v5087_v23 = vld [vmem:[%s7023_s1 + $0x1e0] sm:$0xff]  ;;  %v5729_v26 = vld [vmem:[%s5375_s9 + $0x58] sm:$0x3] }
  0x76   : >> { %640 = vmatmul.bf16.vlgmr.msrb.gmra.mxu1 %v357_v34  ;;  %819 = vmatmul.bf16.vlgmr.msrb.gmra.mxu2 %v738_v35  ;;  %v1122_v60 = vpack.c.bf16 %v1074_v8, %v5439_v36  ;;  %v5071_v24 = vld [vmem:[%s7023_s1 + $0x160] sm:$0xff]  ;;  %v1078_v34 = vrot.slane %v5729_v26, 1  ;;  %v5077_v8 = vld [vmem:[%s7023_s1 + $0x190] sm:$0xff] }
  0x77   : >> { %1553 = vmatpush.bf16.msra.mxu2 %v5082_v55  ;;  %1388 = vmatpush.bf16.msra.mxu1 %v5074_v56  ;;  %v5706_v55 = vsel %vm681_vm1, %v1259_v51, %v5700_v52  ;;  %v691_v56 = vsel %vm681_vm1, %v5700_v52, %v690_v22  ;;  %v5095_v36 = vld [vmem:[%s7023_s1 + $0x220] sm:$0xff] }
  0x78   : >> { %984 = vmatmul.bf16.vlgmr.msrb.gmra.mxu3 %v903_v37  ;;  %1202 = vmatmul.bf16.vlgmr.msrb.gmra.mxu0 %v1121_v40  ;;  %v739_v9 = vpack.c.bf16 %v691_v56, %v5706_v55  ;;  %v1079_v40 = vsel %vm405_vm0, %v5531_v25, %v1078_v34 }
  0x79   : >> { %1771 = vmatpush.bf16.msra.mxu3 %v5090_v30  ;;  %1965 = vmatpush.bf16.msra.mxu0 %v5098_v32  ;;  %v5733_v30 = vrot.slane %v5384_v12, 2  ;;  %v695_v32 = vrot.slane %v5387_v13, 2  ;;  %v5748_v12 = vpack.c.bf16 %v5491_v58, %v5488_v57  ;;  %v1123_v13 = vpack.c.bf16 %v1079_v40, %v5563_v45 }
  0x7a   : >> { %v1279_v40 = vrot.slane %v5503_v62, 2 }
  0x7b   : >> { %1554 = vmatpush.bf16.msra.mxu2 %v5081_v38  ;;  %1389 = vmatpush.bf16.msra.mxu1 %v5073_v42  ;;  %v5739_v35 = vsel %vm681_vm1, %v1264_v27, %v5733_v30  ;;  %v5078_v38 = vld [vmem:[%s7023_s1 + $0x198] sm:$0xff] }
  0x7c   : >> { %v5086_v42 = vld [vmem:[%s7023_s1 + $0x1d8] sm:$0xff] }
  0x7d   : >> { %1772 = vmatpush.bf16.msra.mxu3 %v5089_v20  ;;  %1966 = vmatpush.bf16.msra.mxu0 %v5097_v21  ;;  %v5070_v20 = vld [vmem:[%s7023_s1 + $0x158] sm:$0xff] }
  0x7e   : >> { %v5094_v21 = vld [vmem:[%s7023_s1 + $0x218] sm:$0xff] }
  0x7f   : >> { %1555 = vmatpush.bf16.msra.mxu2 %v5080_v53  ;;  %1390 = vmatpush.bf16.msra.mxu1 %v5072_v44  ;;  %v5765_v53 = vld [vmem:[%s5375_s9 + $0x70] sm:$0x3]  ;;  %v1269_v44 = vrot.slane %v5488_v57, 2 }
  0x80   : >> { %v1083_v51 = vrot.slane %v5765_v53, 1 }
  0x81   : >> { %1773 = vmatpush.bf16.msra.mxu3 %v5088_v48  ;;  %1967 = vmatpush.bf16.msra.mxu0 %v5096_v50  ;;  %v5769_v48 = vrot.slane %v5491_v58, 2  ;;  %v700_v50 = vrot.slane %v5494_v59, 2  ;;  %v906_v58 = vpack.c.bf16 %v5393_v15, %v5390_v14 }
  0x82   : >> { %v1084_v56 = vsel %vm405_vm0, %v5426_v28, %v1083_v51  ;;  %v5085_v28 = vld [vmem:[%s7023_s1 + $0x1d0] sm:$0xff]  ;;  %v5083_v51 = vld [vmem:[%s7023_s1 + $0x1c0] sm:$0xff] }
  0x83   : >> { %1556 = vmatpush.bf16.msra.mxu2 %v5079_v61  ;;  %1391 = vmatpush.bf16.msra.mxu1 %v5071_v24  ;;  %v5775_v22 = vsel %vm681_vm1, %v1269_v44, %v5769_v48  ;;  %v701_v54 = vsel %vm681_vm1, %v5769_v48, %v700_v50  ;;  %v1124_v59 = vpack.c.bf16 %v1084_v56, %v5448_v39  ;;  %v5093_v39 = vld [vmem:[%s7023_s1 + $0x210] sm:$0xff]  ;;  %v5803_v61 = vrot.slane %v5393_v15, 2  ;;  %v5075_v50 = vld [vmem:[%s7023_s1 + $0x180] sm:$0xff] }
  0x84   : >> { %v741_v57 = vpack.c.bf16 %v701_v54, %v5775_v22  ;;  %v907_v15 = vpack.c.bf16 %v5506_v63, %v5503_v62  ;;  %v1284_v54 = vrot.slane %v5396_v16, 2  ;;  %v5866_v56 = vrot.slane %v5402_v18, 2 }
  0x85   : >> { %1774 = vmatpush.bf16.msra.mxu3 %v5087_v23  ;;  %1968 = vmatpush.bf16.msra.mxu0 %v5095_v36  ;;  %v705_v23 = vrot.slane %v5399_v17, 2  ;;  %v5076_v17 = vld [vmem:[%s7023_s1 + $0x188] sm:$0xff] }
  0x86   : >> { %645 = vmatmul.bf16.gmra.mxu1 %v903_v37  ;;  %824 = vmatmul.bf16.gmra.mxu2 %v739_v9  ;;  %v696_v37 = vsel %vm681_vm1, %v5733_v30, %v695_v32  ;;  %v5069_v9 = vld [vmem:[%s7023_s1 + $0x150] sm:$0xff] }
  0x87   : >> { %v740_v11 = vpack.c.bf16 %v696_v37, %v5739_v35  ;;  %1557 = vmatpush.bf16.msra.mxu2 %v5078_v38  ;;  %1392 = vmatpush.bf16.msra.mxu1 %v5070_v20  ;;  %v706_v27 = vsel %vm681_vm1, %v5803_v61, %v705_v23  ;;  %v5084_v37 = vld [vmem:[%s7023_s1 + $0x1c8] sm:$0xff] }
  0x88   : >> { %989 = vmatmul.bf16.gmra.mxu3 %v904_v10  ;;  %1207 = vmatmul.bf16.gmra.mxu0 %v1122_v60  ;;  %v1274_v60 = vrot.slane %v5390_v14, 2 }
  0x89   : >> { %1775 = vmatpush.bf16.msra.mxu3 %v5086_v42  ;;  %1969 = vmatpush.bf16.msra.mxu0 %v5094_v21  ;;  %v5092_v42 = vld [vmem:[%s7023_s1 + $0x208] sm:$0xff]  ;;  %v908_v21 = vpack.c.bf16 %v5402_v18, %v5396_v16 }
  0x8a   : >> { %v5809_v36 = vsel %vm681_vm1, %v1274_v60, %v5803_v61 }
  0x8b   : >> { %1558 = vmatpush.bf16.msra.mxu2 %v5077_v8  ;;  %1393 = vmatpush.bf16.msra.mxu1 %v5069_v9  ;;  %v742_v14 = vpack.c.bf16 %v706_v27, %v5809_v36  ;;  %v5875_v8 = vsel %vm681_vm1, %v1284_v54, %v5866_v56  ;;  %v909_v9 = vpack.c.bf16 %v5515_v6, %v5512_v5  ;;  %v5893_v27 = vld [vmem:[%s5375_s9 + $0xc8] sm:$0xff]  ;;  %v4326_v54 = vld [vmem:[%s5375_s9 + $0x40] sm:$0x3] }
  0x8d   : >> { %1776 = vmatpush.bf16.msra.mxu3 %v5085_v28  ;;  %1970 = vmatpush.bf16.msra.mxu0 %v5093_v39 }
  0x8f   : >> { %1559 = vmatpush.bf16.msra.mxu2 %v5076_v17 }
  0x91   : >> { %1777 = vmatpush.bf16.msra.mxu3 %v5084_v37  ;;  %1971 = vmatpush.bf16.msra.mxu0 %v5092_v42 }
  0x93   : >> { %1560 = vmatpush.bf16.msra.mxu2 %v5075_v50  ;;  %v4324_v50 = vld [vmem:[%s5375_s9 + $0x30] sm:$0xff] }
  0x95   : >> { %1778 = vmatpush.bf16.msra.mxu3 %v5083_v51  ;;  %v4325_v51 = vld [vmem:[%s5375_s9 + $0x38] sm:$0xff] }
  0x96   : >> { %650 = vmatmul.bf16.gmra.mxu1 %v904_v10  ;;  %829 = vmatmul.bf16.gmra.mxu2 %v740_v11  ;;  %v5799_v10 = vld [vmem:[%s5375_s9 + $0x88] sm:$0x3]  ;;  %v5833_v11 = vrot.slane %v5506_v63, 2  ;;  %v1480_v2 = vpack.c.bf16 %v4325_v51, %v4324_v50 }
  0x97   : >> { %v1088_v24 = vrot.slane %v5799_v10, 1 }
  0x98   : >> { %994 = vmatmul.bf16.gmra.mxu3 %v5748_v12  ;;  %1212 = vmatmul.bf16.gmra.mxu0 %v1123_v13  ;;  %v710_v13 = vrot.slane %v5509_v4, 2  ;;  %v5842_v20 = vsel %vm681_vm1, %v1279_v40, %v5833_v11 }
  0x99   : >> { %v1089_v32 = vsel %vm405_vm0, %v5536_v29, %v1088_v24  ;;  %v5826_v29 = vld [vmem:[%s5375_s9 + $0xa0] sm:$0x3] }
  0x9a   : >> { %v1125_v34 = vpack.c.bf16 %v1089_v32, %v5569_v47  ;;  %v5068_v47 = vld [vmem:[%s7023_s1 + $0x148] sm:$0xff]  ;;  %v1093_v38 = vrot.slane %v5826_v29, 1  ;;  %v711_v62 = vsel %vm681_vm1, %v5833_v11, %v710_v13  ;;  %v5890_v24 = vld [vmem:[%s5375_s9 + $0xc0] sm:$0xff] }
  0x9b   : >> { %1394 = vmatpush.bf16.msra.mxu1 %v5068_v47  ;;  %v743_v4 = vpack.c.bf16 %v711_v62, %v5842_v20  ;;  %v1100_v37 = vrot.slane %v5890_v24, 1  ;;  %v5909_v47 = vrot.slane %v5893_v27, 1 }
  0x9c   : >> { %v1094_v63 = vsel %vm405_vm0, %v5431_v31, %v1093_v38  ;;  %v5859_v31 = vld [vmem:[%s5375_s9 + $0xb8] sm:$0x3] }
  0x9d   : >> { %v1126_v44 = vpack.c.bf16 %v1094_v63, %v5454_v41  ;;  %v5067_v41 = vld [vmem:[%s7023_s1 + $0x140] sm:$0xff] }
  0x9f   : >> { %1395 = vmatpush.bf16.msra.mxu1 %v5067_v41 }
  0xa6   : >> { %655 = vmatmul.bf16.gmra.mxu1 %v5748_v12  ;;  %834 = vmatmul.bf16.gmra.mxu2 %v741_v57  ;;  %v715_v57 = vrot.slane %v5405_v19, 2 }
  0xa8   : >> { %999 = vmatmul.bf16.gmra.mxu3 %v906_v58  ;;  %1217 = vmatmul.bf16.gmra.mxu0 %v1124_v59  ;;  %v5091_v59 = vld [vmem:[%s7023_s1 + $0x200] sm:$0xff]  ;;  %v716_v16 = vsel %vm681_vm1, %v5866_v56, %v715_v57 }
  0xa9   : >> { %1972 = vmatpush.bf16.msra.mxu0 %v5091_v59  ;;  %v744_v19 = vpack.c.bf16 %v716_v16, %v5875_v8  ;;  %v1642_v16 = vrot.slane %v4324_v50, 1 }
  0xb6   : >> { %660 = vmatmul.bf16.gmra.mxu1 %v906_v58  ;;  %839 = vmatmul.bf16.gmra.mxu2 %v742_v14  ;;  %v1098_v58 = vrot.slane %v5859_v31, 1  ;;  %v1289_v14 = vrot.slane %v5512_v5, 2 }
  0xb8   : >> { %1004 = vmatmul.bf16.gmra.mxu3 %v907_v15  ;;  %1222 = vmatmul.bf16.gmra.mxu0 %v1125_v34  ;;  %v1099_v18 = vsel %vm405_vm0, %v5541_v33, %v1098_v58  ;;  %v5896_v33 = vld [vmem:[%s5375_s9 + $0xd0] sm:$0x3]  ;;  %v720_v34 = vrot.slane %v5518_v7, 2  ;;  %v1262_v58 = vrot.slane %v5626_v43, 2 }
  0xb9   : >> { %v1127_v39 = vpack.c.bf16 %v1099_v18, %v5575_v49  ;;  %v1103_v40 = vrot.slane %v5896_v33, 1  ;;  %v1643_v18 = vrot.slane %v4325_v51, 1 }
  0xbb   : >> { %v1104_v7 = vsel %vm405_vm0, %v5909_v47, %v1103_v40  ;;  %v1644_v40 = vsel %vm405_vm0, %v1642_v16, %v1643_v18 }
  0xc6   : >> { %665 = vmatmul.bf16.gmra.mxu1 %v907_v15  ;;  %844 = vmatmul.bf16.gmra.mxu2 %v743_v4  ;;  %v5902_v15 = vrot.slane %v5515_v6, 2  ;;  %v5920_v6 = vsel %vm405_vm0, %v1100_v37, %v5909_v47  ;;  %v5933_v4 = vpack.c.bf16 %v5893_v27, %v5890_v24  ;;  %v1263_v37 = vsel %vm681_vm1, %v5700_v52, %v1262_v58 }
  0xc7   : >> { %v1315_v3 = vpack.c.bf16 %v1263_v37, %v5706_v55 }
  0xc8   : >> { %1009 = vmatmul.bf16.gmra.mxu3 %v908_v21  ;;  %1227 = vmatmul.bf16.gmra.mxu0 %v1126_v44  ;;  %v5914_v13 = vsel %vm681_vm1, %v1289_v14, %v5902_v15  ;;  %v721_v5 = vsel %vm681_vm1, %v5902_v15, %v720_v34  ;;  %v1645_v14 = vrot.slane %v4326_v54, 1  ;;  %v1839_v34 = vrot.slane %v4326_v54, 2 }
  0xc9   : >> { %v745_v62 = vpack.c.bf16 %v721_v5, %v5914_v13 }
  0xca   : >> { %v1646_v5 = vsel %vm405_vm0, %v1643_v18, %v1645_v14  ;;  %v4329_v18 = vld [vmem:[%s5375_s9 + $0x58] sm:$0x3] }
  0xcb   : >> { %v1698_v1 = vpack.c.bf16 %v1646_v5, %v1644_v40 }
  0xd3   : >> { %v5882_v28 = vpop.f32.mrf.mxu1 }
  0xd5   : >> { %v544_v60 = vpop.f32.mrf.mxu0 }
  0xd6   : >> { %670 = vmatmul.bf16.gmra.mxu1 %v908_v21  ;;  %849 = vmatmul.bf16.gmra.mxu2 %v744_v19  ;;  %v1128_v21 = vpack.c.bf16 %v1104_v7, %v5920_v6 }
  0xd8   : >> { %1014 = vmatmul.bf16.gmra.mxu3 %v909_v9  ;;  %1232 = vmatmul.bf16.gmra.mxu0 %v1127_v39  ;;  %v1837_v39 = vrot.slane %v4325_v51, 2  ;;  %v1844_v51 = vrot.slane %v4329_v18, 2 }
  0xd9   : >> { %v5887_v23 = vpop.f32.mrf.mxu2 }
  0xda   : >> { %v1840_v43 = vsel %vm681_vm1, %v1837_v39, %v1839_v34  ;;  %v1267_v34 = vrot.slane %v5690_v46, 2 }
  0xdb   : >> { %v5898_v32 = vpop.f32.mrf.mxu3  ;;  %v5904_v49 = vpop.f32.mrf.mxu1 }
  0xdd   : >> { %v546_v17 = vpop.f32.mrf.mxu0 }
  0xe1   : >> { %v5924_v38 = vpop.f32.mrf.mxu2 }
  0xe3   : >> { %v5926_v42 = vpop.f32.mrf.mxu3  ;;  %v5929_v63 = vpop.f32.mrf.mxu1 }
  0xe5   : >> { %v549_v44 = vpop.f32.mrf.mxu0 }
  0xe6   : >> { %675 = vmatmul.bf16.gmra.mxu1 %v909_v9  ;;  %854 = vmatmul.bf16.gmra.mxu2 %v745_v62  ;;  %v1836_v9 = vrot.slane %v4324_v50, 2  ;;  %v1650_v50 = vrot.slane %v4329_v18, 1 }
  0xe8   : >> { %1019 = vmatmul.bf16.gmra.mxu3 %v5933_v4  ;;  %1237 = vmatmul.bf16.gmra.mxu0 %v1128_v21  ;;  %v1838_v7 = vsel %vm681_vm1, %v1836_v9, %v1837_v39 }
  0xe9   : >> { %v5939_v41 = vpop.f32.mrf.mxu2  ;;  %v1892_v0 = vpack.c.bf16 %v1840_v43, %v1838_v7 }
  0xeb   : >> { %v5942_v57 = vpop.f32.mrf.mxu3  ;;  %v5945_v59 = vpop.f32.mrf.mxu1 }
  0xec   : >> { %7034 = vst [vmem:[#allocation7_spill] sm:$0xff] %v5942_v57 }
  0xed   : >> { %v5947_v19 = vpop.f32.mrf.mxu0 }
  0xf1   : >> { %v5955_v62 = vpop.f32.mrf.mxu2 }
  0xf3   : >> { %v5957_v21 = vpop.f32.mrf.mxu3  ;;  %v641_v54 = vpop.f32.mrf.mxu1 }
  0xf4   : >> { %7035 = vst [vmem:[#allocation8_spill] sm:$0xff] %v5957_v21  ;;  %v642_v52 = vadd.f32 %v641_v54, %v544_v60  ;;  %v4331_v54 = vld [vmem:[%s5375_s9 + $0x68] sm:$0xff] }
  0xf5   : >> { %v1203_v58 = vpop.f32.mrf.mxu0 }
  0xf6   : >> { %1396 = vmatmul.bf16.vlgmr.msra.gmra.mxu1 %v1315_v3  ;;  %1561 = vmatmul.bf16.vlgmr.msra.gmra.mxu2 %v1480_v2  ;;  %v1268_v3 = vsel %vm681_vm1, %v5733_v30, %v1267_v34 }
  0xf8   : >> { %1779 = vmatmul.bf16.vlgmr.msra.gmra.mxu3 %v1698_v1  ;;  %1973 = vmatmul.bf16.vlgmr.msra.gmra.mxu0 %v1892_v0  ;;  %v1651_v0 = vsel %vm405_vm0, %v5531_v25, %v1650_v50  ;;  %v1845_v1 = vsel %vm681_vm1, %v5769_v48, %v1844_v51  ;;  %v1847_v50 = vrot.slane %v4331_v54, 2 }
  0xf9   : >> { %v820_v16 = vpop.f32.mrf.mxu2  ;;  %v1699_v5 = vpack.c.bf16 %v1651_v0, %v5563_v45  ;;  %v1893_v7 = vpack.c.bf16 %v1845_v1, %v5775_v22 }
  0xfa   : >> { %v860_v9 = vadd.f32 %v820_v16, %v642_v52  ;;  %v4332_v52 = vld [vmem:[%s5375_s9 + $0x70] sm:$0x3] }
  0xfb   : >> { %v985_v39 = vpop.f32.mrf.mxu3  ;;  %v643_v14 = vpop.f32.mrf.mxu1  ;;  %v1849_v51 = vrot.slane %v4332_v52, 2 }
  0xfc   : >> { %v1025_v21 = vadd.f32 %v985_v39, %v860_v9  ;;  %v644_v57 = vadd.f32 %v643_v14, %v546_v17  ;;  %v1316_v17 = vpack.c.bf16 %v1268_v3, %v5739_v35  ;;  %v1272_v35 = vrot.slane %v5729_v26, 2 }
  0xfd   : >> { %v1205_v55 = vpop.f32.mrf.mxu0  ;;  %v1653_v39 = vrot.slane %v4331_v54, 1  ;;  %v1655_v14 = vrot.slane %v4332_v52, 1 }
  0xfe   : >> { %v5962_v37 = vadd.f32 %v1203_v58, %v1025_v21  ;;  %v1273_v0 = vsel %vm681_vm1, %v5769_v48, %v1272_v35  ;;  %v4333_v35 = vld [vmem:[%s5375_s9 + $0x78] sm:$0xff] }
  0xff   : >> { %v1656_v1 = vsel %vm405_vm0, %v1653_v39, %v1655_v14  ;;  %v1851_v14 = vrot.slane %v4333_v35, 2 }
 0x101   : >> { %v822_v2 = vpop.f32.mrf.mxu2 }
 0x102   : >> { %v861_v46 = vadd.f32 %v822_v2, %v644_v57  ;;  %v4330_v57 = vld [vmem:[%s5375_s9 + $0x60] sm:$0xff] }
 0x103   : >> { %v987_v60 = vpop.f32.mrf.mxu3  ;;  %v646_v40 = vpop.f32.mrf.mxu1  ;;  %v1652_v9 = vrot.slane %v4330_v57, 1 }
 0x104   : >> { %v1026_v30 = vadd.f32 %v987_v60, %v861_v46  ;;  %v647_v43 = vadd.f32 %v646_v40, %v549_v44  ;;  %v1846_v44 = vrot.slane %v4330_v57, 2  ;;  %v1850_v46 = vsel %vm681_vm1, %v1847_v50, %v1849_v51 }
 0x105   : >> { %v1208_v21 = vpop.f32.mrf.mxu0  ;;  %v1654_v26 = vsel %vm405_vm0, %v1652_v9, %v1653_v39  ;;  %v1317_v40 = vpack.c.bf16 %v1273_v0, %v5775_v22  ;;  %v1277_v22 = vrot.slane %v5765_v53, 2  ;;  %v1657_v39 = vrot.slane %v4333_v35, 1 }
 0x106   : >> { %1401 = vmatmul.bf16.gmra.mxu1 %v1316_v17  ;;  %1566 = vmatmul.bf16.gmra.mxu2 %v5748_v12  ;;  %v5974_v25 = vadd.f32 %v1205_v55, %v1026_v30  ;;  %v1848_v2 = vsel %vm681_vm1, %v1846_v44, %v1847_v50  ;;  %v1700_v30 = vpack.c.bf16 %v1656_v1, %v1654_v26 }
 0x107   : >> { %v1894_v48 = vpack.c.bf16 %v1850_v46, %v1848_v2  ;;  %v1278_v26 = vsel %vm681_vm1, %v5803_v61, %v1277_v22 }
 0x108   : >> { %1784 = vmatmul.bf16.gmra.mxu3 %v1699_v5  ;;  %1978 = vmatmul.bf16.gmra.mxu0 %v1893_v7  ;;  %v1482_v5 = vpack.c.bf16 %v4331_v54, %v4330_v57 }
 0x109   : >> { %v825_v58 = vpop.f32.mrf.mxu2 }
 0x10a   : >> { %v862_v16 = vadd.f32 %v825_v58, %v647_v43 }
 0x10b   : >> { %v990_v45 = vpop.f32.mrf.mxu3  ;;  %v648_v18 = vpop.f32.mrf.mxu1 }
 0x10c   : >> { %v1027_v34 = vadd.f32 %v990_v45, %v862_v16  ;;  %v649_v12 = vadd.f32 %v648_v18, %v5947_v19  ;;  %v4334_v16 = vld [vmem:[%s5375_s9 + $0x80] sm:$0xff]  ;;  %v4335_v45 = vld [vmem:[%s5375_s9 + $0x88] sm:$0x3] }
 0x10d   : >> { %v1210_v55 = vpop.f32.mrf.mxu0  ;;  %v1658_v44 = vrot.slane %v4334_v16, 1  ;;  %v1852_v50 = vrot.slane %v4334_v16, 2  ;;  %v1854_v51 = vrot.slane %v4335_v45, 2 }
 0x10e   : >> { %v5981_v3 = vadd.f32 %v1208_v21, %v1027_v34 }
 0x10f   : >> { %v1659_v53 = vsel %vm405_vm0, %v1657_v39, %v1658_v44  ;;  %v1853_v2 = vsel %vm681_vm1, %v1851_v14, %v1852_v50  ;;  %v1855_v46 = vsel %vm681_vm1, %v1852_v50, %v1854_v51 }
 0x110   : >> { %v1895_v61 = vpack.c.bf16 %v1855_v46, %v1853_v2  ;;  %v1295_v2 = vrot.slane %v5893_v27, 2 }
 0x111   : >> { %v827_v60 = vpop.f32.mrf.mxu2 }
 0x112   : >> { %v863_v17 = vadd.f32 %v827_v60, %v649_v12 }
 0x113   : >> { %v992_v19 = vpop.f32.mrf.mxu3  ;;  %v651_v7 = vpop.f32.mrf.mxu1 }
 0x114   : >> { %v1028_v43 = vadd.f32 %v992_v19, %v863_v17  ;;  %v652_v21 = vadd.f32 %v651_v7, %v5882_v28  ;;  %v1660_v28 = vrot.slane %v4335_v45, 1  ;;  %v1318_v19 = vpack.c.bf16 %v1278_v26, %v5809_v36  ;;  %v4337_v45 = vld [vmem:[%s5375_s9 + $0x98] sm:$0xff] }
 0x115   : >> { %v1213_v52 = vpop.f32.mrf.mxu0  ;;  %v1282_v36 = vrot.slane %v5799_v10, 2 }
 0x116   : >> { %1406 = vmatmul.bf16.gmra.mxu1 %v1317_v40  ;;  %1571 = vmatmul.bf16.gmra.mxu2 %v1482_v5  ;;  %v5991_v58 = vadd.f32 %v1210_v55, %v1028_v43  ;;  %v1661_v1 = vsel %vm405_vm0, %v1658_v44, %v1660_v28  ;;  %v1483_v40 = vpack.c.bf16 %v4334_v16, %v4333_v35 }
 0x117   : >> { %v1701_v7 = vpack.c.bf16 %v1661_v1, %v1659_v53  ;;  %v1283_v50 = vsel %vm681_vm1, %v5833_v11, %v1282_v36  ;;  %v1294_v1 = vrot.slane %v5890_v24, 2 }
 0x118   : >> { %1789 = vmatmul.bf16.gmra.mxu3 %v1700_v30  ;;  %1983 = vmatmul.bf16.gmra.mxu0 %v1894_v48 }
 0x119   : >> { %v830_v18 = vpop.f32.mrf.mxu2  ;;  %v6031_v27 = vsel %vm681_vm1, %v1294_v1, %v1295_v2 }
 0x11a   : >> { %v864_v57 = vadd.f32 %v830_v18, %v652_v21  ;;  %v4338_v18 = vld [vmem:[%s5375_s9 + $0xa0] sm:$0x3] }
 0x11b   : >> { %v995_v54 = vpop.f32.mrf.mxu3  ;;  %v653_v9 = vpop.f32.mrf.mxu1 }
 0x11c   : >> { %v1029_v34 = vadd.f32 %v995_v54, %v864_v57  ;;  %v654_v12 = vadd.f32 %v653_v9, %v5904_v49  ;;  %v1663_v9 = vrot.slane %v4337_v45, 1 }
 0x11d   : >> { %v1215_v55 = vpop.f32.mrf.mxu0 }
 0x11e   : >> { %v5998_v0 = vadd.f32 %v1213_v52, %v1029_v34  ;;  %v4336_v52 = vld [vmem:[%s5375_s9 + $0x90] sm:$0xff]  ;;  %v1857_v34 = vrot.slane %v4337_v45, 2 }
 0x11f   : >> { %v1662_v54 = vrot.slane %v4336_v52, 1  ;;  %v1856_v39 = vrot.slane %v4336_v52, 2 }
 0x121   : >> { %v832_v60 = vpop.f32.mrf.mxu2  ;;  %v1664_v10 = vsel %vm405_vm0, %v1662_v54, %v1663_v9  ;;  %v1858_v26 = vsel %vm681_vm1, %v1856_v39, %v1857_v34 }
 0x122   : >> { %v865_v17 = vadd.f32 %v832_v60, %v654_v12  ;;  %v1859_v12 = vrot.slane %v4338_v18, 2 }
 0x123   : >> { %v997_v49 = vpop.f32.mrf.mxu3  ;;  %v656_v5 = vpop.f32.mrf.mxu1 }
 0x124   : >> { %v1030_v30 = vadd.f32 %v997_v49, %v865_v17  ;;  %v657_v48 = vadd.f32 %v656_v5, %v5929_v63  ;;  %v1665_v63 = vrot.slane %v4338_v18, 1  ;;  %v1860_v53 = vsel %vm681_vm1, %v1857_v34, %v1859_v12 }
 0x125   : >> { %v1218_v43 = vpop.f32.mrf.mxu0  ;;  %v1319_v17 = vpack.c.bf16 %v1283_v50, %v5842_v20  ;;  %v1484_v49 = vpack.c.bf16 %v4337_v45, %v4336_v52  ;;  %v4340_v52 = vld [vmem:[%s5375_s9 + $0xb0] sm:$0xff]  ;;  %v4341_v45 = vld [vmem:[%s5375_s9 + $0xb8] sm:$0x3]  ;;  %v1297_v12 = vrot.slane %v5896_v33, 2 }
 0x126   : >> { %1411 = vmatmul.bf16.gmra.mxu1 %v1318_v19  ;;  %1576 = vmatmul.bf16.gmra.mxu2 %v1483_v40  ;;  %v6008_v21 = vadd.f32 %v1215_v55, %v1030_v30  ;;  %v1666_v51 = vsel %vm405_vm0, %v1663_v9, %v1665_v63  ;;  %v1896_v40 = vpack.c.bf16 %v1860_v53, %v1858_v26  ;;  %v1668_v9 = vrot.slane %v4340_v52, 1 }
 0x127   : >> { %v1702_v19 = vpack.c.bf16 %v1666_v51, %v1664_v10  ;;  %v1670_v39 = vrot.slane %v4341_v45, 1 }
 0x128   : >> { %1794 = vmatmul.bf16.gmra.mxu3 %v1701_v7  ;;  %1988 = vmatmul.bf16.gmra.mxu0 %v1895_v61  ;;  %v6027_v61 = vld [vmem:[%s5375_s9 + $0xd0] sm:$0x3] }
 0x129   : >> { %v835_v22 = vpop.f32.mrf.mxu2  ;;  %v1869_v24 = vrot.slane %v6027_v61, 2  ;;  %v1671_v51 = vsel %vm405_vm0, %v1668_v9, %v1670_v39 }
 0x12a   : >> { %v866_v35 = vadd.f32 %v835_v22, %v657_v48 }
 0x12b   : >> { %v1000_v16 = vpop.f32.mrf.mxu3  ;;  %v658_v57 = vpop.f32.mrf.mxu1  ;;  %v6036_v20 = vsel %vm681_vm1, %v1295_v2, %v1869_v24 }
 0x12c   : >> { %v1031_v44 = vadd.f32 %v1000_v16, %v866_v35  ;;  %v659_v14 = vadd.f32 %v658_v57, %v5945_v59  ;;  %v1898_v18 = vpack.c.bf16 %v6036_v20, %v6031_v27  ;;  %v1287_v16 = vrot.slane %v5826_v29, 2 }
 0x12d   : >> { %v1220_v28 = vpop.f32.mrf.mxu0 }
 0x12e   : >> { %v6015_v55 = vadd.f32 %v1218_v43, %v1031_v44  ;;  %v4339_v43 = vld [vmem:[%s5375_s9 + $0xa8] sm:$0xff]  ;;  %v1288_v50 = vsel %vm681_vm1, %v5866_v56, %v1287_v16 }
 0x12f   : >> { %v1667_v54 = vrot.slane %v4339_v43, 1 }
 0x131   : >> { %v837_v59 = vpop.f32.mrf.mxu2  ;;  %v1669_v10 = vsel %vm405_vm0, %v1667_v54, %v1668_v9 }
 0x132   : >> { %v867_v46 = vadd.f32 %v837_v59, %v659_v14  ;;  %v1861_v14 = vrot.slane %v4339_v43, 2 }
 0x133   : >> { %v1002_v60 = vpop.f32.mrf.mxu3  ;;  %v661_v11 = vpop.f32.mrf.mxu1 }
 0x134   : >> { %v1032_v5 = vadd.f32 %v1002_v60, %v867_v46  ;;  %v662_v48 = vadd.f32 %v661_v11, %v5887_v23  ;;  %v1864_v23 = vrot.slane %v4341_v45, 2  ;;  %v1320_v60 = vpack.c.bf16 %v1288_v50, %v5875_v8 }
 0x135   : >> { %v1223_v7 = vpop.f32.mrf.mxu0 }
 0x136   : >> { %1416 = vmatmul.bf16.gmra.mxu1 %v1319_v17  ;;  %1581 = vmatmul.bf16.gmra.mxu2 %v1484_v49  ;;  %v6033_v30 = vadd.f32 %v1220_v28, %v1032_v5  ;;  %v1862_v28 = vrot.slane %v4340_v52, 2  ;;  %v1485_v17 = vpack.c.bf16 %v4340_v52, %v4339_v43  ;;  %v1703_v49 = vpack.c.bf16 %v1671_v51, %v1669_v10 }
 0x137   : >> { %v1292_v43 = vrot.slane %v5859_v31, 2 }
 0x138   : >> { %1799 = vmatmul.bf16.gmra.mxu3 %v1702_v19  ;;  %1993 = vmatmul.bf16.gmra.mxu0 %v1896_v40  ;;  %v1863_v26 = vsel %vm681_vm1, %v1861_v14, %v1862_v28  ;;  %v1865_v53 = vsel %vm681_vm1, %v1862_v28, %v1864_v23  ;;  %v6057_v40 = vsel %vm681_vm1, %v1295_v2, %v1297_v12  ;;  %v4346_v14 = vld [vmem:[%s5375_s9 + $0xe0] sm:$0xff] }
 0x139   : >> { %v840_v22 = vpop.f32.mrf.mxu2  ;;  %v1897_v11 = vpack.c.bf16 %v1865_v53, %v1863_v26  ;;  %v1678_v10 = vrot.slane %v4346_v14, 1  ;;  %v1872_v53 = vrot.slane %v4346_v14, 2 }
 0x13a   : >> { %v868_v36 = vadd.f32 %v840_v22, %v662_v48  ;;  %v1675_v22 = vrot.slane %v6027_v61, 1 }
 0x13b   : >> { %v1005_v35 = vpop.f32.mrf.mxu3  ;;  %v663_v57 = vpop.f32.mrf.mxu1 }
 0x13c   : >> { %v1033_v63 = vadd.f32 %v1005_v35, %v868_v36  ;;  %v664_v29 = vadd.f32 %v663_v57, %v5924_v38  ;;  %v1322_v38 = vpack.c.bf16 %v6057_v40, %v6031_v27  ;;  %v1293_v35 = vsel %vm681_vm1, %v5902_v15, %v1292_v43 }
 0x13d   : >> { %v1225_v44 = vpop.f32.mrf.mxu0  ;;  %v1321_v9 = vpack.c.bf16 %v1293_v35, %v5914_v13  ;;  %v4347_v13 = vld [vmem:[%s5375_s9 + $0xe8] sm:$0x3] }
 0x13e   : >> { %v6045_v34 = vadd.f32 %v1223_v7, %v1033_v63 }
 0x141   : >> { %v842_v1 = vpop.f32.mrf.mxu2 }
 0x142   : >> { %v869_v59 = vadd.f32 %v842_v1, %v664_v29  ;;  %v1680_v29 = vrot.slane %v4347_v13, 1  ;;  %v1874_v1 = vrot.slane %v4347_v13, 2 }
 0x143   : >> { %v1007_v46 = vpop.f32.mrf.mxu3  ;;  %v666_v33 = vpop.f32.mrf.mxu1 }
 0x144   : >> { %v1034_v56 = vadd.f32 %v1007_v46, %v869_v59  ;;  %v667_v8 = vadd.f32 %v666_v33, %v5939_v41  ;;  %v1676_v41 = vsel %vm405_vm0, %v5909_v47, %v1675_v22  ;;  %v1681_v20 = vsel %vm405_vm0, %v1678_v10, %v1680_v29 }
 0x145   : >> { %v1228_v19 = vpop.f32.mrf.mxu0  ;;  %v1704_v61 = vpack.c.bf16 %v1676_v41, %v5920_v6  ;;  %v1875_v46 = vsel %vm681_vm1, %v1872_v53, %v1874_v1 }
 0x146   : >> { %1421 = vmatmul.bf16.gmra.mxu1 %v1320_v60  ;;  %1586 = vmatmul.bf16.gmra.mxu2 %v1485_v17  ;;  %v6061_v5 = vadd.f32 %v1225_v44, %v1034_v56 }
 0x148   : >> { %1804 = vmatmul.bf16.gmra.mxu3 %v1703_v49  ;;  %1998 = vmatmul.bf16.gmra.mxu0 %v1897_v11 }
 0x149   : >> { %v845_v7 = vpop.f32.mrf.mxu2 }
 0x14a   : >> { %v870_v24 = vadd.f32 %v845_v7, %v667_v8 }
 0x14b   : >> { %v1010_v48 = vpop.f32.mrf.mxu3  ;;  %v668_v52 = vpop.f32.mrf.mxu1 }
 0x14c   : >> { %v1035_v45 = vadd.f32 %v1010_v48, %v870_v24  ;;  %v669_v16 = vadd.f32 %v668_v52, %v5955_v62  ;;  %v4345_v62 = vld [vmem:[%s5375_s9 + $0xd8] sm:$0xff]  ;;  %s5099_s9 = sshll.u32 %s5268_s19, 8  ;;  %s329_s19 = sadd.s32 1, %s5268_s19  }
 0x14d   : >> { %v1230_v2 = vpop.f32.mrf.mxu0  ;;  %v1677_v50 = vrot.slane %v4345_v62, 1  ;;  %v1871_v26 = vrot.slane %v4345_v62, 2  ;;  %v1487_v49 = vpack.c.bf16 %v4346_v14, %v4345_v62  ;;  %s6111_s21 = scalar_lea.vmem [#allocation2], %s5099_s9  ;;  %p326_p4 = scmp.ge.s32.totalorder %s329_s19, 2  }
 0x14e   : >> { %v6066_v36 = vadd.f32 %v1228_v19, %v1035_v45  ;;  %s6176_s22 = smov (%p326_p4), 0  }
 0x14f   : >> { %v1679_v27 = vsel %vm405_vm0, %v1677_v50, %v1678_v10  ;;  %v7039_v50 = vld [vmem:[#allocation4_spill] sm:$0xff] }
 0x150   : >> { %v1705_v56 = vpack.c.bf16 %v1681_v20, %v1679_v27  ;;  %v6105_v10 = vperm.slane %v7039_v50, 0 }
 0x151   : >> { %v847_v57 = vpop.f32.mrf.mxu2 }
 0x152   : >> { %v871_v31 = vadd.f32 %v847_v57, %v669_v16  ;;  %v7037_v16 = vld [vmem:[#allocation8_spill] sm:$0xff] }
 0x153   : >> { %v1012_v54 = vpop.f32.mrf.mxu3  ;;  %v671_v39 = vpop.f32.mrf.mxu1 }
 0x154   : >> { %v1036_v63 = vadd.f32 %v1012_v54, %v871_v31  ;;  %v672_v47 = vadd.f32 %v671_v39, %v5898_v32 }
 0x155   : >> { %v1233_v44 = vpop.f32.mrf.mxu0 }
 0x156   : >> { %1426 = vmatmul.bf16.gmra.mxu1 %v1321_v9  ;;  %1591 = vmatmul.bf16.gmra.mxu2 %v5933_v4  ;;  %v6076_v15 = vadd.f32 %v1230_v2, %v1036_v63 }
 0x158   : >> { %1809 = vmatmul.bf16.gmra.mxu3 %v1704_v61  ;;  %2003 = vmatmul.bf16.gmra.mxu0 %v1898_v18  ;;  %v1873_v18 = vsel %vm681_vm1, %v1871_v26, %v1872_v53 }
 0x159   : >> { %v850_v28 = vpop.f32.mrf.mxu2  ;;  %v1899_v19 = vpack.c.bf16 %v1875_v46, %v1873_v18 }
 0x15a   : >> { %v872_v23 = vadd.f32 %v850_v28, %v672_v47  ;;  %v7038_v28 = vld [vmem:[#allocation3_spill] sm:$0xff] }
 0x15b   : >> { %v1015_v6 = vpop.f32.mrf.mxu3  ;;  %v673_v12 = vpop.f32.mrf.mxu1 }
 0x15c   : >> { %v1037_v4 = vadd.f32 %v1015_v6, %v872_v23  ;;  %v674_v32 = vadd.f32 %v673_v12, %v5926_v42  ;;  %v7036_v42 = vld [vmem:[#allocation7_spill] sm:$0xff]  ;;  %v6102_v23 = vperm.slane %v7038_v28, 0 }
 0x15d   : >> { %v1235_v51 = vpop.f32.mrf.mxu0 }
 0x15e   : >> { %v6085_v59 = vadd.f32 %v1233_v44, %v1037_v4 }
 0x161   : >> { %v852_v60 = vpop.f32.mrf.mxu2 }
 0x162   : >> { %v873_v17 = vadd.f32 %v852_v60, %v674_v32 }
 0x163   : >> { %v1017_v33 = vpop.f32.mrf.mxu3  ;;  %v676_v11 = vpop.f32.mrf.mxu1 }
 0x164   : >> { %v1038_v40 = vadd.f32 %v1017_v33, %v873_v17  ;;  %v677_v24 = vadd.f32 %v676_v11, %v7036_v42 }
 0x165   : >> { %v1238_v8 = vpop.f32.mrf.mxu0 }
 0x166   : >> { %1431 = vmatmul.bf16.gmra.mxu1 %v1322_v38  ;;  %1596 = vmatmul.bf16.gmra.mxu2 %v1487_v49  ;;  %v6092_v7 = vadd.f32 %v1235_v51, %v1038_v40 }
 0x168   : >> { %1814 = vmatmul.bf16.gmra.mxu3 %v1705_v56  ;;  %2008 = vmatmul.bf16.gmra.mxu0 %v1899_v19 }
 0x169   : >> { %v855_v48 = vpop.f32.mrf.mxu2 }
 0x16a   : >> { %v874_v43 = vadd.f32 %v855_v48, %v677_v24 }
 0x16b   : >> { %v1020_v52 = vpop.f32.mrf.mxu3  ;;  %v678_v45 = vpop.f32.mrf.mxu1 }
 0x16c   : >> { %v1039_v2 = vadd.f32 %v1020_v52, %v874_v43  ;;  %v679_v41 = vadd.f32 %v678_v45, %v7037_v16 }
 0x16d   : >> { %v1240_v22 = vpop.f32.mrf.mxu0 }
 0x16e   : >> { %v6095_v35 = vadd.f32 %v1238_v8, %v1039_v2 }
 0x171   : >> { %v857_v57 = vpop.f32.mrf.mxu2 }
 0x172   : >> { %v875_v31 = vadd.f32 %v857_v57, %v679_v41 }
 0x173   : >> { %v1022_v38 = vpop.f32.mrf.mxu3  ;;  %v1397_v54 = vpop.f32.mrf.mxu1 }
 0x174   : >> { %v1040_v9 = vadd.f32 %v1022_v38, %v875_v31  ;;  %v1437_v63 = vadd.f32 %v1397_v54, %v5962_v37 }
 0x175   : >> { %v1974_v39 = vpop.f32.mrf.mxu0 }
 0x176   : >> { %v6098_v61 = vadd.f32 %v1240_v22, %v1040_v9 }
 0x179   : >> { %v1562_v44 = vpop.f32.mrf.mxu2 }
 0x17a   : >> { %v1602_v47 = vadd.f32 %v1562_v44, %v1437_v63 }
 0x17b   : >> { %v1780_v62 = vpop.f32.mrf.mxu3  ;;  %v1399_v14 = vpop.f32.mrf.mxu1 }
 0x17c   : >> { %v1820_v13 = vadd.f32 %v1780_v62, %v1602_v47  ;;  %v1438_v4 = vadd.f32 %v1399_v14, %v5974_v25 }
 0x17d   : >> { %v1976_v6 = vpop.f32.mrf.mxu0 }
 0x17e   : >> { %v2014_v12 = vadd.f32 %v1974_v39, %v1820_v13 }
 0x180   : >> { %v2033_v29 = vmul.f32 %v6102_v23, %v2014_v12 }
 0x181   : >> { %v1564_v51 = vpop.f32.mrf.mxu2 }
 0x182   : >> { %v2052_v37 = vadd.f32 %v6105_v10, %v2033_v29  ;;  %v1603_v26 = vadd.f32 %v1564_v51, %v1438_v4 }
 0x183   : >> { %v1782_v53 = vpop.f32.mrf.mxu3  ;;  %v1402_v1 = vpop.f32.mrf.mxu1 }
 0x184   : >> { %v2068_v27 = vmax.f32 %v2052_v37, 0.0  ;;  %v1821_v32 = vadd.f32 %v1782_v53, %v1603_v26  ;;  %v1439_v60 = vadd.f32 %v1402_v1, %v5981_v3 }
 0x185   : >> { %v1979_v20 = vpop.f32.mrf.mxu0 }
 0x186   : >> { %4494 = vst [vmem:[%s6111_s21 + $0x108] sm:$0xff] %v2068_v27  ;;  %v2015_v18 = vadd.f32 %v1976_v6, %v1821_v32 }
 0x188   : >> { %v2034_v46 = vmul.f32 %v6102_v23, %v2015_v18 }
 0x189   : >> { %v1567_v25 = vpop.f32.mrf.mxu2 }
 0x18a   : >> { %v2053_v17 = vadd.f32 %v6105_v10, %v2034_v46  ;;  %v1604_v33 = vadd.f32 %v1567_v25, %v1439_v60 }
 0x18b   : >> { %v1785_v49 = vpop.f32.mrf.mxu3  ;;  %v1404_v11 = vpop.f32.mrf.mxu1 }
 0x18c   : >> { %v2069_v56 = vmax.f32 %v2053_v17, 0.0  ;;  %v1822_v19 = vadd.f32 %v1785_v49, %v1604_v33  ;;  %v1440_v24 = vadd.f32 %v1404_v11, %v5991_v58 }
 0x18d   : >> { %v1981_v40 = vpop.f32.mrf.mxu0 }
 0x18e   : >> { %4495 = vst [vmem:[%s6111_s21 + $0x110] sm:$0xff] %v2069_v56  ;;  %v2016_v8 = vadd.f32 %v1979_v20, %v1822_v19 }
 0x190   : >> { %v2035_v42 = vmul.f32 %v6102_v23, %v2016_v8 }
 0x191   : >> { %v1569_v48 = vpop.f32.mrf.mxu2 }
 0x192   : >> { %v2054_v43 = vadd.f32 %v6105_v10, %v2035_v42  ;;  %v1605_v3 = vadd.f32 %v1569_v48, %v1440_v24 }
 0x193   : >> { %v1787_v52 = vpop.f32.mrf.mxu3  ;;  %v1407_v45 = vpop.f32.mrf.mxu1 }
 0x194   : >> { %v2070_v2 = vmax.f32 %v2054_v43, 0.0  ;;  %v1823_v22 = vadd.f32 %v1787_v52, %v1605_v3  ;;  %v1441_v31 = vadd.f32 %v1407_v45, %v5998_v0 }
 0x195   : >> { %v1984_v16 = vpop.f32.mrf.mxu0 }
 0x196   : >> { %4496 = vst [vmem:[%s6111_s21 + $0x128] sm:$0xff] %v2070_v2  ;;  %v2017_v41 = vadd.f32 %v1981_v40, %v1823_v22 }
 0x198   : >> { %v2036_v57 = vmul.f32 %v6102_v23, %v2017_v41 }
 0x199   : >> { %v1572_v38 = vpop.f32.mrf.mxu2 }
 0x19a   : >> { %v2055_v54 = vadd.f32 %v6105_v10, %v2036_v57  ;;  %v1606_v58 = vadd.f32 %v1572_v38, %v1441_v31 }
 0x19b   : >> { %v1790_v9 = vpop.f32.mrf.mxu3  ;;  %v1409_v39 = vpop.f32.mrf.mxu1 }
 0x19c   : >> { %v2071_v63 = vmax.f32 %v2055_v54, 0.0  ;;  %v1824_v44 = vadd.f32 %v1790_v9, %v1606_v58  ;;  %v1442_v13 = vadd.f32 %v1409_v39, %v6008_v21 }
 0x19d   : >> { %v1986_v47 = vpop.f32.mrf.mxu0 }
 0x19e   : >> { %4497 = vst [vmem:[%s6111_s21 + $0x130] sm:$0xff] %v2071_v63  ;;  %v2018_v62 = vadd.f32 %v1984_v16, %v1824_v44 }
 0x1a0   : >> { %v2037_v14 = vmul.f32 %v6102_v23, %v2018_v62 }
 0x1a1   : >> { %v1574_v28 = vpop.f32.mrf.mxu2 }
 0x1a2   : >> { %v2056_v6 = vadd.f32 %v6105_v10, %v2037_v14  ;;  %v1607_v0 = vadd.f32 %v1574_v28, %v1442_v13 }
 0x1a3   : >> { %v1792_v12 = vpop.f32.mrf.mxu3  ;;  %v1412_v50 = vpop.f32.mrf.mxu1 }
 0x1a4   : >> { %v2072_v29 = vmax.f32 %v2056_v6, 0.0  ;;  %v1825_v4 = vadd.f32 %v1792_v12, %v1607_v0  ;;  %v1443_v53 = vadd.f32 %v1412_v50, %v6015_v55 }
 0x1a5   : >> { %v1989_v51 = vpop.f32.mrf.mxu0 }
 0x1a6   : >> { %4498 = vst [vmem:[%s6111_s21 + $0x148] sm:$0xff] %v2072_v29  ;;  %v2019_v37 = vadd.f32 %v1986_v47, %v1825_v4 }
 0x1a8   : >> { %v2038_v26 = vmul.f32 %v6102_v23, %v2019_v37 }
 0x1a9   : >> { %v1577_v1 = vpop.f32.mrf.mxu2 }
 0x1aa   : >> { %v2057_v27 = vadd.f32 %v6105_v10, %v2038_v26  ;;  %v1608_v21 = vadd.f32 %v1577_v1, %v1443_v53 }
 0x1ab   : >> { %v1795_v32 = vpop.f32.mrf.mxu3  ;;  %v1414_v20 = vpop.f32.mrf.mxu1 }
 0x1ac   : >> { %v2073_v18 = vmax.f32 %v2057_v27, 0.0  ;;  %v1826_v46 = vadd.f32 %v1795_v32, %v1608_v21  ;;  %v1444_v33 = vadd.f32 %v1414_v20, %v6033_v30 }
 0x1ad   : >> { %v1991_v60 = vpop.f32.mrf.mxu0 }
 0x1ae   : >> { %4499 = vst [vmem:[%s6111_s21 + $0x150] sm:$0xff] %v2073_v18  ;;  %v2020_v25 = vadd.f32 %v1989_v51, %v1826_v46 }
 0x1b0   : >> { %v2039_v17 = vmul.f32 %v6102_v23, %v2020_v25 }
 0x1b1   : >> { %v1579_v49 = vpop.f32.mrf.mxu2 }
 0x1b2   : >> { %v2058_v11 = vadd.f32 %v6105_v10, %v2039_v17  ;;  %v1609_v55 = vadd.f32 %v1579_v49, %v1444_v33 }
 0x1b3   : >> { %v1797_v56 = vpop.f32.mrf.mxu3  ;;  %v1417_v19 = vpop.f32.mrf.mxu1 }
 0x1b4   : >> { %v2074_v40 = vmax.f32 %v2058_v11, 0.0  ;;  %v1827_v8 = vadd.f32 %v1797_v56, %v1609_v55  ;;  %v1445_v43 = vadd.f32 %v1417_v19, %v6045_v34 }
 0x1b5   : >> { %v1994_v42 = vpop.f32.mrf.mxu0 }
 0x1b6   : >> { %4500 = vst [vmem:[%s6111_s21 + $0x168] sm:$0xff] %v2074_v40  ;;  %v2021_v24 = vadd.f32 %v1991_v60, %v1827_v8 }
 0x1b8   : >> { %v2040_v48 = vmul.f32 %v6102_v23, %v2021_v24 }
 0x1b9   : >> { %v1582_v3 = vpop.f32.mrf.mxu2 }
 0x1ba   : >> { %v2059_v52 = vadd.f32 %v6105_v10, %v2040_v48  ;;  %v1610_v30 = vadd.f32 %v1582_v3, %v1445_v43 }
 0x1bb   : >> { %v1800_v45 = vpop.f32.mrf.mxu3  ;;  %v1419_v2 = vpop.f32.mrf.mxu1 }
 0x1bc   : >> { %v2075_v22 = vmax.f32 %v2059_v52, 0.0  ;;  %v1828_v16 = vadd.f32 %v1800_v45, %v1610_v30  ;;  %v1446_v38 = vadd.f32 %v1419_v2, %v6061_v5 }
 0x1bd   : >> { %v1996_v41 = vpop.f32.mrf.mxu0 }
 0x1be   : >> { %4501 = vst [vmem:[%s6111_s21 + $0x170] sm:$0xff] %v2075_v22  ;;  %v2022_v57 = vadd.f32 %v1994_v42, %v1828_v16 }
 0x1c0   : >> { %v2041_v31 = vmul.f32 %v6102_v23, %v2022_v57 }
 0x1c1   : >> { %v1584_v54 = vpop.f32.mrf.mxu2 }
 0x1c2   : >> { %v2060_v58 = vadd.f32 %v6105_v10, %v2041_v31  ;;  %v1611_v34 = vadd.f32 %v1584_v54, %v1446_v38 }
 0x1c3   : >> { %v1802_v9 = vpop.f32.mrf.mxu3  ;;  %v1422_v39 = vpop.f32.mrf.mxu1 }
 0x1c4   : >> { %v2076_v63 = vmax.f32 %v2060_v58, 0.0  ;;  %v1829_v44 = vadd.f32 %v1802_v9, %v1611_v34  ;;  %v1447_v13 = vadd.f32 %v1422_v39, %v6066_v36 }
 0x1c5   : >> { %v1999_v47 = vpop.f32.mrf.mxu0 }
 0x1c6   : >> { %4502 = vst [vmem:[%s6111_s21 + $0x188] sm:$0xff] %v2076_v63  ;;  %v2023_v62 = vadd.f32 %v1996_v41, %v1829_v44 }
 0x1c8   : >> { %v2042_v14 = vmul.f32 %v6102_v23, %v2023_v62 }
 0x1c9   : >> { %v1587_v28 = vpop.f32.mrf.mxu2 }
 0x1ca   : >> { %v2061_v6 = vadd.f32 %v6105_v10, %v2042_v14  ;;  %v1612_v5 = vadd.f32 %v1587_v28, %v1447_v13 }
 0x1cb   : >> { %v1805_v0 = vpop.f32.mrf.mxu3  ;;  %v1424_v12 = vpop.f32.mrf.mxu1 }
 0x1cc   : >> { %v2077_v50 = vmax.f32 %v2061_v6, 0.0  ;;  %v1830_v29 = vadd.f32 %v1805_v0, %v1612_v5  ;;  %v1448_v26 = vadd.f32 %v1424_v12, %v6076_v15 }
 0x1cd   : >> { %v2001_v4 = vpop.f32.mrf.mxu0 }
 0x1ce   : >> { %4503 = vst [vmem:[%s6111_s21 + $0x190] sm:$0xff] %v2077_v50  ;;  %v2024_v51 = vadd.f32 %v1999_v47, %v1830_v29 }
 0x1d0   : >> { %v2043_v37 = vmul.f32 %v6102_v23, %v2024_v51 }
 0x1d1   : >> { %v1589_v53 = vpop.f32.mrf.mxu2 }
 0x1d2   : >> { %v2062_v1 = vadd.f32 %v6105_v10, %v2043_v37  ;;  %v1613_v36 = vadd.f32 %v1589_v53, %v1448_v26 }
 0x1d3   : >> { %v1807_v27 = vpop.f32.mrf.mxu3  ;;  %v1427_v21 = vpop.f32.mrf.mxu1 }
 0x1d4   : >> { %v2078_v32 = vmax.f32 %v2062_v1, 0.0  ;;  %v1831_v20 = vadd.f32 %v1807_v27, %v1613_v36  ;;  %v1449_v25 = vadd.f32 %v1427_v21, %v6085_v59 }
 0x1d5   : >> { %v2004_v46 = vpop.f32.mrf.mxu0 }
 0x1d6   : >> { %4504 = vst [vmem:[%s6111_s21 + $0x1a8] sm:$0xff] %v2078_v32  ;;  %v2025_v18 = vadd.f32 %v2001_v4, %v1831_v20 }
 0x1d8   : >> { %v2044_v60 = vmul.f32 %v6102_v23, %v2025_v18 }
 0x1d9   : >> { %v1592_v17 = vpop.f32.mrf.mxu2 }
 0x1da   : >> { %v2063_v33 = vadd.f32 %v6105_v10, %v2044_v60  ;;  %v1614_v15 = vadd.f32 %v1592_v17, %v1449_v25 }
 0x1db   : >> { %v1810_v49 = vpop.f32.mrf.mxu3  ;;  %v1429_v11 = vpop.f32.mrf.mxu1 }
 0x1dc   : >> { %v2079_v55 = vmax.f32 %v2063_v33, 0.0  ;;  %v1832_v56 = vadd.f32 %v1810_v49, %v1614_v15  ;;  %v1450_v8 = vadd.f32 %v1429_v11, %v6092_v7 }
 0x1dd   : >> { %v2006_v42 = vpop.f32.mrf.mxu0 }
 0x1de   : >> { %4505 = vst [vmem:[%s6111_s21 + $0x1b0] sm:$0xff] %v2079_v55  ;;  %v2026_v19 = vadd.f32 %v2004_v46, %v1832_v56 }
 0x1e0   : >> { %v2045_v40 = vmul.f32 %v6102_v23, %v2026_v19 }
 0x1e1   : >> { %v1594_v24 = vpop.f32.mrf.mxu2 }
 0x1e2   : >> { %v2064_v48 = vadd.f32 %v6105_v10, %v2045_v40  ;;  %v1615_v59 = vadd.f32 %v1594_v24, %v1450_v8 }
 0x1e3   : >> { %v1812_v43 = vpop.f32.mrf.mxu3  ;;  %v1432_v3 = vpop.f32.mrf.mxu1 }
 0x1e4   : >> { %v2080_v52 = vmax.f32 %v2064_v48, 0.0  ;;  %v1833_v30 = vadd.f32 %v1812_v43, %v1615_v59  ;;  %v1451_v22 = vadd.f32 %v1432_v3, %v6095_v35 }
 0x1e5   : >> { %v2009_v31 = vpop.f32.mrf.mxu0 }
 0x1e6   : >> { %4506 = vst [vmem:[%s6111_s21 + $0x1c8] sm:$0xff] %v2080_v52  ;;  %v2027_v45 = vadd.f32 %v2006_v42, %v1833_v30 }
 0x1e8   : >> { %v2046_v2 = vmul.f32 %v6102_v23, %v2027_v45 }
 0x1e9   : >> { %v1597_v16 = vpop.f32.mrf.mxu2 }
 0x1ea   : >> { %v2065_v41 = vadd.f32 %v6105_v10, %v2046_v2  ;;  %v1616_v7 = vadd.f32 %v1597_v16, %v1451_v22 }
 0x1eb   : >> { %v1815_v57 = vpop.f32.mrf.mxu3  ;;  %v1434_v58 = vpop.f32.mrf.mxu1 }
 0x1ec   : >> { %v2081_v38 = vmax.f32 %v2065_v41, 0.0  ;;  %v1834_v54 = vadd.f32 %v1815_v57, %v1616_v7  ;;  %v1452_v39 = vadd.f32 %v1434_v58, %v6098_v61 }
 0x1ed   : >> { %v2011_v13 = vpop.f32.mrf.mxu0 }
 0x1ee   : >> { %4507 = vst [vmem:[%s6111_s21 + $0x1d0] sm:$0xff] %v2081_v38  ;;  %v2028_v34 = vadd.f32 %v2009_v31, %v1834_v54 }
 0x1f0   : >> { %v2047_v9 = vmul.f32 %v6102_v23, %v2028_v34 }
 0x1f1   : >> { %v1599_v63 = vpop.f32.mrf.mxu2 }
 0x1f2   : >> { %v2066_v35 = vadd.f32 %v6105_v10, %v2047_v9  ;;  %v1617_v44 = vadd.f32 %v1599_v63, %v1452_v39 }
 0x1f3   : >> { %v1817_v47 = vpop.f32.mrf.mxu3 }
 0x1f4   : >> { %v2082_v62 = vmax.f32 %v2066_v35, 0.0  ;;  %v1835_v14 = vadd.f32 %v1817_v47, %v1617_v44 }
 0x1f6   : >> { %4508 = vst [vmem:[%s6111_s21 + $0x1e8] sm:$0xff] %v2082_v62  ;;  %v2029_v28 = vadd.f32 %v2011_v13, %v1835_v14 }
 0x1f8   : >> { %v2048_v6 = vmul.f32 %v6102_v23, %v2029_v28 }
 0x1fa   : >> { %v2067_v5 = vadd.f32 %v6105_v10, %v2048_v6  ;;  %328 = sbr.rel (!%p326_p4) target bundleno = 54 (0x36), region = 120 }
 0x1fc   : >> { %v2083_v0 = vmax.f32 %v2067_v5, 0.0 }
 0x1fe   : >> { %4509 = vst [vmem:[%s6111_s21 + $0x1f0] sm:$0xff] %v2083_v0 }
 0x1ff LB: >> { %v5116_v61 = vld [vmem:[%s7026_s4 + $0x78] sm:$0xff]  ;;  %v5115_v23 = vld [vmem:[%s7026_s4 + $0x70] sm:$0xff]  ;;  %v5114_v10 = vld [vmem:[%s7026_s4 + $0x68] sm:$0xff]  ;;  %s5100_s8 = sshll.u32 %s5272_s22, 8  ;;  %s5175_s26 = sshll.u32 %s5272_s22, 7  ;;  %s5272_s22 = sphi %s6176_s22, %s2108_s22  }
 0x200   : >> { %5200 = vmatpush.bf16.msra.mxu1 %v5116_v61  ;;  %5201 = vmatpush.bf16.msra.mxu2 %v5116_v61  ;;  %v5113_v12 = vld [vmem:[%s7026_s4 + $0x60] sm:$0xff]  ;;  %v5112_v50 = vld [vmem:[%s7026_s4 + $0x58] sm:$0xff]  ;;  %v5111_v29 = vld [vmem:[%s7026_s4 + $0x50] sm:$0xff]  ;;  %s6200_s14 = scalar_lea.vmem [#allocation2], %s5100_s8  ;;  %s6939_s27 = scalar_lea.vmem %s5346_s15, %s5175_s26 }
 0x201   : >> { %5202 = vmatpush.bf16.msra.mxu3 %v5116_v61  ;;  %2315 = vmatpush.bf16.msra.mxu0 %v5116_v61  ;;  %v5110_v33 = vld [vmem:[%s7026_s4 + $0x48] sm:$0xff]  ;;  %v5109_v48 = vld [vmem:[%s7026_s4 + $0x40] sm:$0xff]  ;;  %v5124_v2 = vld [vmem:[%s7026_s4 + $0xb8] sm:$0xff] }
 0x202   : >> { %v5108_v22 = vld [vmem:[%s7026_s4 + $0x38] sm:$0xff]  ;;  %v5123_v54 = vld [vmem:[%s7026_s4 + $0xb0] sm:$0xff]  ;;  %v5122_v44 = vld [vmem:[%s7026_s4 + $0xa8] sm:$0xff] }
 0x203   : >> { %v5133_v31 = vld [vmem:[%s7026_s4 + $0xf8] sm:$0xff]  ;;  %v5107_v58 = vld [vmem:[%s7026_s4 + $0x30] sm:$0xff]  ;;  %v5106_v47 = vld [vmem:[%s7026_s4 + $0x28] sm:$0xff] }
 0x204   : >> { %5203 = vmatpush.bf16.msra.mxu1 %v5115_v23  ;;  %5204 = vmatpush.bf16.msra.mxu2 %v5115_v23  ;;  %v5141_v38 = vld [vmem:[%s7026_s4 + $0x138] sm:$0xff]  ;;  %v5132_v34 = vld [vmem:[%s7026_s4 + $0xf0] sm:$0xff] }
 0x205   : >> { %5205 = vmatpush.bf16.msra.mxu3 %v5115_v23  ;;  %2316 = vmatpush.bf16.msra.mxu0 %v5115_v23  ;;  %v6203_v4 = vld [vmem:[%s6200_s14 + $0x127] sm:$0xff]  ;;  %v6206_v51 = vld [vmem:[%s6200_s14 + $0x12f] sm:$0xff]  ;;  %v6209_v37 = vld [vmem:[%s6200_s14 + $0x137] sm:$0x3] }
 0x206   : >> { %v6212_v26 = vld [vmem:[%s6200_s14 + $0x167] sm:$0xff]  ;;  %v6215_v53 = vld [vmem:[%s6200_s14 + $0x16f] sm:$0xff]  ;;  %v6221_v36 = vld [vmem:[%s6200_s14 + $0x177] sm:$0x3]  ;;  %v2196_v46 = vrot.slane %v6203_v4, 1  ;;  %v6240_v60 = vrot.slane %v6206_v51, 1 }
 0x207   : >> { %v6218_v1 = vld [vmem:[%s6200_s14 + $0x1a7] sm:$0xff]  ;;  %v6224_v27 = vld [vmem:[%s6200_s14 + $0x1af] sm:$0xff]  ;;  %v6227_v21 = vld [vmem:[%s6200_s14 + $0x1b7] sm:$0x3]  ;;  %v2199_v25 = vrot.slane %v6209_v37, 1  ;;  %v2206_v17 = vrot.slane %v6212_v26, 1 }
 0x208   : >> { %5206 = vmatpush.bf16.msra.mxu1 %v5114_v10  ;;  %5207 = vmatpush.bf16.msra.mxu2 %v5114_v10  ;;  %v6230_v32 = vld [vmem:[%s6200_s14 + $0xe7] sm:$0xff]  ;;  %v6233_v20 = vld [vmem:[%s6200_s14 + $0xef] sm:$0xff]  ;;  %v6236_v18 = vld [vmem:[%s6200_s14 + $0xf7] sm:$0x3]  ;;  %v6248_v15 = vrot.slane %v6215_v53, 1  ;;  %v2209_v49 = vrot.slane %v6221_v36, 1  ;;  %v6261_v42 = vsel %vm405_vm0, %v2196_v46, %v6240_v60 }
 0x209   : >> { %5208 = vmatpush.bf16.msra.mxu3 %v5114_v10  ;;  %2317 = vmatpush.bf16.msra.mxu0 %v5114_v10  ;;  %v2216_v11 = vrot.slane %v6218_v1, 1  ;;  %v6253_v55 = vrot.slane %v6224_v27, 1  ;;  %v2219_v56 = vrot.slane %v6227_v21, 1  ;;  %v2186_v19 = vrot.slane %v6230_v32, 1  ;;  %v5140_v9 = vld [vmem:[%s7026_s4 + $0x130] sm:$0xff]  ;;  %v6310_v39 = vld [vmem:[%s6200_s14 + $0x147] sm:$0xff] }
 0x20a   : >> { %v2187_v40 = vrot.slane %v6233_v20, 1  ;;  %v2189_v8 = vrot.slane %v6236_v18, 1  ;;  %v2200_v24 = vsel %vm405_vm0, %v6240_v60, %v2199_v25  ;;  %v6270_v59 = vsel %vm405_vm0, %v2206_v17, %v6248_v15  ;;  %v6313_v63 = vld [vmem:[%s6200_s14 + $0x14f] sm:$0xff]  ;;  %v6316_v35 = vld [vmem:[%s6200_s14 + $0x157] sm:$0x3]  ;;  %v6325_v62 = vld [vmem:[%s6200_s14 + $0x187] sm:$0xff] }
 0x20b   : >> { %v2210_v43 = vsel %vm405_vm0, %v6248_v15, %v2209_v49  ;;  %v6276_v3 = vsel %vm405_vm0, %v2216_v11, %v6253_v55  ;;  %v2220_v52 = vsel %vm405_vm0, %v6253_v55, %v2219_v56  ;;  %v2244_v16 = vpack.c.bf16 %v2200_v24, %v6261_v42  ;;  %v6328_v14 = vld [vmem:[%s6200_s14 + $0x18f] sm:$0xff]  ;;  %v6331_v13 = vld [vmem:[%s6200_s14 + $0x197] sm:$0x3]  ;;  %v6334_v28 = vld [vmem:[%s6200_s14 + $0x1c7] sm:$0xff] }
 0x20c   : >> { %5209 = vmatpush.bf16.msra.mxu1 %v5113_v12  ;;  %5210 = vmatpush.bf16.msra.mxu2 %v5113_v12  ;;  %v2188_v30 = vsel %vm405_vm0, %v2186_v19, %v2187_v40  ;;  %v2190_v45 = vsel %vm405_vm0, %v2187_v40, %v2189_v8  ;;  %v2246_v41 = vpack.c.bf16 %v2210_v43, %v6270_v59  ;;  %v6337_v6 = vld [vmem:[%s6200_s14 + $0x1cf] sm:$0xff]  ;;  %v6340_v5 = vld [vmem:[%s6200_s14 + $0x1d7] sm:$0x3]  ;;  %v6343_v0 = vld [vmem:[%s6200_s14 + $0x107] sm:$0xff]  ;;  %v2201_v10 = vrot.slane %v6310_v39, 1 }
 0x20d   : >> { %5211 = vmatpush.bf16.msra.mxu3 %v5113_v12  ;;  %2318 = vmatpush.bf16.msra.mxu0 %v5113_v12  ;;  %v2248_v7 = vpack.c.bf16 %v2220_v52, %v6276_v3  ;;  %v2242_v57 = vpack.c.bf16 %v2190_v45, %v2188_v30  ;;  %v6346_v61 = vld [vmem:[%s6200_s14 + $0x10f] sm:$0xff]  ;;  %v6349_v23 = vld [vmem:[%s6200_s14 + $0x117] sm:$0x3]  ;;  %v6353_v12 = vrot.slane %v6313_v63, 1  ;;  %v6358_v46 = vrot.slane %v6328_v14, 1  ;;  %v5121_v24 = vld [vmem:[%s7026_s4 + $0xa0] sm:$0xff] }
 0x20e   : >> { %v2214_v25 = vrot.slane %v6331_v13, 1  ;;  %v2221_v17 = vrot.slane %v6334_v28, 1  ;;  %v5131_v49 = vld [vmem:[%s7026_s4 + $0xe8] sm:$0xff]  ;;  %v2224_v56 = vrot.slane %v6340_v5, 1  ;;  %v2191_v19 = vrot.slane %v6343_v0, 1 }
 0x20f   : >> { %v5139_v11 = vld [vmem:[%s7026_s4 + $0x128] sm:$0xff]  ;;  %v6374_v40 = vrot.slane %v6346_v61, 1  ;;  %v2194_v8 = vrot.slane %v6349_v23, 1  ;;  %v6385_v43 = vsel %vm405_vm0, %v2201_v10, %v6353_v12  ;;  %v5119_v10 = vld [vmem:[%s7026_s4 + $0x90] sm:$0xff] }
 0x210   : >> { %5212 = vmatpush.bf16.msra.mxu1 %v5112_v50  ;;  %5213 = vmatpush.bf16.msra.mxu2 %v5112_v50  ;;  %v2215_v45 = vsel %vm405_vm0, %v6358_v46, %v2214_v25  ;;  %v5136_v25 = vld [vmem:[%s7026_s4 + $0x110] sm:$0xff] }
 0x211   : >> { %5214 = vmatpush.bf16.msra.mxu3 %v5112_v50  ;;  %2319 = vmatpush.bf16.msra.mxu0 %v5112_v50  ;;  %v2204_v50 = vrot.slane %v6316_v35, 1 }
 0x213   : >> { %v2205_v52 = vsel %vm405_vm0, %v6353_v12, %v2204_v50  ;;  %v5103_v50 = vld [vmem:[%s7026_s4 + $0x10] sm:$0xff] }
 0x214   : >> { %5215 = vmatpush.bf16.msra.mxu1 %v5111_v29  ;;  %5216 = vmatpush.bf16.msra.mxu2 %v5111_v29 }
 0x215   : >> { %5217 = vmatpush.bf16.msra.mxu3 %v5111_v29  ;;  %2320 = vmatpush.bf16.msra.mxu0 %v5111_v29  ;;  %v2211_v29 = vrot.slane %v6325_v62, 1 }
 0x217   : >> { %v6391_v30 = vsel %vm405_vm0, %v2211_v29, %v6358_v46  ;;  %v5128_v29 = vld [vmem:[%s7026_s4 + $0xd0] sm:$0xff] }
 0x218   : >> { %5218 = vmatpush.bf16.msra.mxu1 %v5110_v33  ;;  %5219 = vmatpush.bf16.msra.mxu2 %v5110_v33 }
 0x219   : >> { %5220 = vmatpush.bf16.msra.mxu3 %v5110_v33  ;;  %2321 = vmatpush.bf16.msra.mxu0 %v5110_v33  ;;  %v6363_v33 = vrot.slane %v6337_v6, 1 }
 0x21c   : >> { %5221 = vmatpush.bf16.msra.mxu1 %v5109_v48  ;;  %5222 = vmatpush.bf16.msra.mxu2 %v5109_v48 }
 0x21d   : >> { %5223 = vmatpush.bf16.msra.mxu3 %v5109_v48  ;;  %2322 = vmatpush.bf16.msra.mxu0 %v5109_v48  ;;  %v5105_v48 = vld [vmem:[%s7026_s4 + $0x20] sm:$0xff] }
 0x21f   : >> { %2333 = vmatmul.bf16.vlgmr.msra.gmra.mxu1 %v2244_v16  ;;  %2343 = vmatmul.bf16.vlgmr.msra.gmra.mxu2 %v2246_v41  ;;  %v5138_v16 = vld [vmem:[%s7026_s4 + $0x120] sm:$0xff]  ;;  %v2225_v41 = vsel %vm405_vm0, %v6363_v33, %v2224_v56  ;;  %v2465_v56 = vrot.slane %v6236_v18, 2 }
 0x220   : >> { %2591 = vmatpush.bf16.msrb.mxu2 %v5124_v2  ;;  %2412 = vmatpush.bf16.msrb.mxu1 %v5108_v22  ;;  %v6397_v2 = vsel %vm405_vm0, %v2221_v17, %v6363_v33  ;;  %v5130_v22 = vld [vmem:[%s7026_s4 + $0xe0] sm:$0xff]  ;;  %v5118_v17 = vld [vmem:[%s7026_s4 + $0x88] sm:$0xff] }
 0x221   : >> { %2353 = vmatmul.bf16.vlgmr.msra.gmra.mxu3 %v2248_v7  ;;  %2323 = vmatmul.bf16.vlgmr.msra.gmra.mxu0 %v2242_v57  ;;  %v6409_v7 = vsel %vm405_vm0, %v2191_v19, %v6374_v40  ;;  %v2195_v57 = vsel %vm405_vm0, %v6374_v40, %v2194_v8  ;;  %v2462_v19 = vrot.slane %v6230_v32, 2  ;;  %v2463_v8 = vrot.slane %v6233_v20, 2  ;;  %v5117_v18 = vld [vmem:[%s7026_s4 + $0x80] sm:$0xff] }
 0x222   : >> { %2756 = vmatpush.bf16.msrb.mxu3 %v5133_v31  ;;  %2974 = vmatpush.bf16.msrb.mxu0 %v5141_v38  ;;  %v5120_v31 = vld [vmem:[%s7026_s4 + $0x98] sm:$0xff] }
 0x223   : >> { %v5104_v38 = vld [vmem:[%s7026_s4 + $0x18] sm:$0xff] }
 0x224   : >> { %2592 = vmatpush.bf16.msrb.mxu2 %v5123_v54  ;;  %2413 = vmatpush.bf16.msrb.mxu1 %v5107_v58  ;;  %v2245_v54 = vpack.c.bf16 %v2205_v52, %v6385_v43  ;;  %v2247_v58 = vpack.c.bf16 %v2215_v45, %v6391_v30  ;;  %v5101_v45 = vld [vmem:[%s7026_s4] sm:$0xff] }
 0x226   : >> { %2757 = vmatpush.bf16.msrb.mxu3 %v5132_v34  ;;  %2975 = vmatpush.bf16.msrb.mxu0 %v5140_v9  ;;  %v2249_v34 = vpack.c.bf16 %v2225_v41, %v6397_v2  ;;  %v2243_v9 = vpack.c.bf16 %v2195_v57, %v6409_v7  ;;  %v2464_v41 = vsel %vm681_vm1, %v2462_v19, %v2463_v8  ;;  %v6522_v19 = vrot.slane %v6346_v61, 2 }
 0x227   : >> { %v2466_v57 = vsel %vm681_vm1, %v2463_v8, %v2465_v56  ;;  %v3039_v56 = vrot.slane %v6343_v0, 2  ;;  %v2470_v8 = vrot.slane %v6349_v23, 2  ;;  %v2684_v23 = vpack.c.bf16 %v6206_v51, %v6203_v4 }
 0x228   : >> { %2593 = vmatpush.bf16.msrb.mxu2 %v5122_v44  ;;  %2414 = vmatpush.bf16.msrb.mxu1 %v5106_v47  ;;  %v5129_v44 = vld [vmem:[%s7026_s4 + $0xd8] sm:$0xff] }
 0x229   : >> { %v5137_v47 = vld [vmem:[%s7026_s4 + $0x118] sm:$0xff] }
 0x22a   : >> { %2758 = vmatpush.bf16.msrb.mxu3 %v5131_v49  ;;  %2976 = vmatpush.bf16.msrb.mxu0 %v5139_v11  ;;  %v5102_v49 = vld [vmem:[%s7026_s4 + $0x8] sm:$0xff]  ;;  %v6448_v11 = vld [vmem:[%s6200_s14 + $0x117] sm:$0x3] }
 0x22b   : >> { %v2848_v52 = vrot.slane %v6448_v11, 1 }
 0x22c   : >> { %2594 = vmatpush.bf16.msrb.mxu2 %v5121_v24  ;;  %2415 = vmatpush.bf16.msrb.mxu1 %v5105_v48  ;;  %v5127_v24 = vld [vmem:[%s7026_s4 + $0xc8] sm:$0xff] }
 0x22d   : >> { %v5135_v48 = vld [vmem:[%s7026_s4 + $0x108] sm:$0xff] }
 0x22e   : >> { %2759 = vmatpush.bf16.msrb.mxu3 %v5130_v22  ;;  %2977 = vmatpush.bf16.msrb.mxu0 %v5138_v16  ;;  %v5158_v22 = vld [vmem:[%s7026_s4 + $0x1b8] sm:$0xff] }
 0x22f   : >> { %2338 = vmatmul.bf16.gmra.mxu1 %v2245_v54  ;;  %2348 = vmatmul.bf16.gmra.mxu2 %v2247_v58  ;;  %v5149_v16 = vld [vmem:[%s7026_s4 + $0x178] sm:$0xff]  ;;  %v2849_v54 = vsel %vm405_vm0, %v6374_v40, %v2848_v52  ;;  %v2471_v52 = vsel %vm681_vm1, %v6522_v19, %v2470_v8  ;;  %v5144_v8 = vld [vmem:[%s7026_s4 + $0x150] sm:$0xff] }
 0x230   : >> { %2595 = vmatpush.bf16.msrb.mxu2 %v5120_v31  ;;  %2416 = vmatpush.bf16.msrb.mxu1 %v5104_v38  ;;  %v5126_v31 = vld [vmem:[%s7026_s4 + $0xc0] sm:$0xff]  ;;  %v5166_v58 = vld [vmem:[%s7026_s4 + $0x1f8] sm:$0xff]  ;;  %v2901_v40 = vpack.c.bf16 %v2849_v54, %v6409_v7  ;;  %v5156_v7 = vld [vmem:[%s7026_s4 + $0x1a8] sm:$0xff] }
 0x231   : >> { %2358 = vmatmul.bf16.gmra.mxu3 %v2249_v34  ;;  %2328 = vmatmul.bf16.gmra.mxu0 %v2243_v9  ;;  %v5134_v38 = vld [vmem:[%s7026_s4 + $0x100] sm:$0xff]  ;;  %v5174_v34 = vld [vmem:[%s7026_s4 + $0x238] sm:$0xff]  ;;  %v2137_v9 = vpack.c.bf16 %v6233_v20, %v6230_v32  ;;  %v5165_v32 = vld [vmem:[%s7026_s4 + $0x1f0] sm:$0xff] }
 0x232   : >> { %2760 = vmatpush.bf16.msrb.mxu3 %v5129_v44  ;;  %2978 = vmatpush.bf16.msrb.mxu0 %v5137_v47  ;;  %v2518_v44 = vpack.c.bf16 %v2466_v57, %v2464_v41  ;;  %v2683_v47 = vpack.c.bf16 %v6346_v61, %v6343_v0  ;;  %v5173_v20 = vld [vmem:[%s7026_s4 + $0x230] sm:$0xff]  ;;  %v2472_v41 = vrot.slane %v6203_v4, 2  ;;  %v6555_v57 = vrot.slane %v6206_v51, 2 }
 0x233   : >> { %v6570_v51 = vpack.c.bf16 %v6313_v63, %v6310_v39 }
 0x234   : >> { %2596 = vmatpush.bf16.msrb.mxu2 %v5119_v10  ;;  %2417 = vmatpush.bf16.msrb.mxu1 %v5103_v50  ;;  %v5157_v10 = vld [vmem:[%s7026_s4 + $0x1b0] sm:$0xff]  ;;  %v6561_v54 = vsel %vm681_vm1, %v2472_v41, %v6555_v57  ;;  %v3059_v41 = vrot.slane %v6325_v62, 2 }
 0x235   : >> { %v5148_v50 = vld [vmem:[%s7026_s4 + $0x170] sm:$0xff] }
 0x236   : >> { %2761 = vmatpush.bf16.msrb.mxu3 %v5128_v29  ;;  %2979 = vmatpush.bf16.msrb.mxu0 %v5136_v25  ;;  %v5147_v29 = vld [vmem:[%s7026_s4 + $0x168] sm:$0xff]  ;;  %v6512_v25 = vld [vmem:[%s6200_s14 + $0x137] sm:$0x3] }
 0x238   : >> { %2597 = vmatpush.bf16.msrb.mxu2 %v5118_v17  ;;  %2418 = vmatpush.bf16.msrb.mxu1 %v5102_v49  ;;  %v5164_v17 = vld [vmem:[%s7026_s4 + $0x1e8] sm:$0xff] }
 0x239   : >> { %v5172_v49 = vld [vmem:[%s7026_s4 + $0x228] sm:$0xff] }
 0x23a   : >> { %2762 = vmatpush.bf16.msrb.mxu3 %v5127_v24  ;;  %2980 = vmatpush.bf16.msrb.mxu0 %v5135_v48  ;;  %v2853_v24 = vrot.slane %v6512_v25, 1  ;;  %v6528_v48 = vsel %vm681_vm1, %v3039_v56, %v6522_v19  ;;  %v5153_v56 = vld [vmem:[%s7026_s4 + $0x190] sm:$0xff] }
 0x23b   : >> { %v2519_v61 = vpack.c.bf16 %v2471_v52, %v6528_v48  ;;  %v3054_v52 = vrot.slane %v6212_v26, 2 }
 0x23c   : >> { %2598 = vmatpush.bf16.msrb.mxu2 %v5117_v18  ;;  %2419 = vmatpush.bf16.msrb.mxu1 %v5101_v45  ;;  %v2854_v0 = vsel %vm405_vm0, %v6240_v60, %v2853_v24  ;;  %v5155_v45 = vld [vmem:[%s7026_s4 + $0x1a0] sm:$0xff]  ;;  %v6621_v24 = vld [vmem:[%s6200_s14 + $0x197] sm:$0x3] }
 0x23d   : >> { %v2902_v18 = vpack.c.bf16 %v2854_v0, %v6261_v42  ;;  %v5146_v60 = vld [vmem:[%s7026_s4 + $0x160] sm:$0xff]  ;;  %v6625_v0 = vrot.slane %v6215_v53, 2 }
 0x23e   : >> { %2763 = vmatpush.bf16.msrb.mxu3 %v5126_v31  ;;  %2981 = vmatpush.bf16.msrb.mxu0 %v5134_v38  ;;  %v5171_v42 = vld [vmem:[%s7026_s4 + $0x220] sm:$0xff]  ;;  %v2475_v31 = vrot.slane %v6209_v37, 2 }
 0x23f   : >> { %2420 = vmatmul.bf16.vlgmr.msrb.gmra.mxu1 %v2137_v9  ;;  %2599 = vmatmul.bf16.vlgmr.msrb.gmra.mxu2 %v2518_v44  ;;  %v5154_v9 = vld [vmem:[%s7026_s4 + $0x198] sm:$0xff] }
 0x240   : >> { %3333 = vmatpush.bf16.msra.mxu2 %v5158_v22  ;;  %3168 = vmatpush.bf16.msra.mxu1 %v5149_v16  ;;  %v5163_v22 = vld [vmem:[%s7026_s4 + $0x1e0] sm:$0xff]  ;;  %v6551_v16 = vld [vmem:[%s6200_s14 + $0x157] sm:$0x3] }
 0x241   : >> { %2764 = vmatmul.bf16.vlgmr.msrb.gmra.mxu3 %v2683_v47  ;;  %2982 = vmatmul.bf16.vlgmr.msrb.gmra.mxu0 %v2901_v40  ;;  %v2858_v38 = vrot.slane %v6551_v16, 1  ;;  %v5162_v44 = vld [vmem:[%s7026_s4 + $0x1d8] sm:$0xff] }
 0x242   : >> { %3551 = vmatpush.bf16.msra.mxu3 %v5166_v58  ;;  %3745 = vmatpush.bf16.msra.mxu0 %v5174_v34  ;;  %v2476_v58 = vsel %vm681_vm1, %v6555_v57, %v2475_v31  ;;  %v5170_v40 = vld [vmem:[%s7026_s4 + $0x218] sm:$0xff]  ;;  %v6655_v31 = vrot.slane %v6328_v14, 2 }
 0x243   : >> { %v2859_v34 = vsel %vm405_vm0, %v6353_v12, %v2858_v38  ;;  %v2520_v4 = vpack.c.bf16 %v2476_v58, %v6561_v54  ;;  %v2490_v38 = vrot.slane %v6331_v13, 2 }
 0x244   : >> { %3334 = vmatpush.bf16.msra.mxu2 %v5157_v10  ;;  %3169 = vmatpush.bf16.msra.mxu1 %v5148_v50  ;;  %v2903_v37 = vpack.c.bf16 %v2859_v34, %v6385_v43  ;;  %v6587_v10 = vld [vmem:[%s6200_s14 + $0x177] sm:$0x3]  ;;  %v3049_v50 = vrot.slane %v6310_v39, 2  ;;  %v5168_v34 = vld [vmem:[%s7026_s4 + $0x208] sm:$0xff] }
 0x246   : >> { %3552 = vmatpush.bf16.msra.mxu3 %v5165_v32  ;;  %3746 = vmatpush.bf16.msra.mxu0 %v5173_v20  ;;  %v6591_v32 = vrot.slane %v6313_v63, 2  ;;  %v2480_v20 = vrot.slane %v6316_v35, 2  ;;  %v2686_v63 = vpack.c.bf16 %v6215_v53, %v6212_v26  ;;  %v2687_v53 = vpack.c.bf16 %v6328_v14, %v6325_v62 }
 0x247   : >> { %v2491_v62 = vsel %vm681_vm1, %v6655_v31, %v2490_v38 }
 0x248   : >> { %3335 = vmatpush.bf16.msra.mxu2 %v5156_v7  ;;  %3170 = vmatpush.bf16.msra.mxu1 %v5147_v29  ;;  %v2863_v7 = vrot.slane %v6587_v10, 1  ;;  %v6597_v29 = vsel %vm681_vm1, %v3049_v50, %v6591_v32  ;;  %v6688_v50 = vrot.slane %v6224_v27, 2 }
 0x24a   : >> { %3553 = vmatpush.bf16.msra.mxu3 %v5164_v17  ;;  %3747 = vmatpush.bf16.msra.mxu0 %v5172_v49  ;;  %v2481_v17 = vsel %vm681_vm1, %v6591_v32, %v2480_v20  ;;  %v2864_v49 = vsel %vm405_vm0, %v6248_v15, %v2863_v7  ;;  %v5161_v15 = vld [vmem:[%s7026_s4 + $0x1d0] sm:$0xff]  ;;  %v2495_v20 = vrot.slane %v6227_v21, 2 }
 0x24b   : >> { %v2521_v39 = vpack.c.bf16 %v2481_v17, %v6597_v29  ;;  %v2904_v35 = vpack.c.bf16 %v2864_v49, %v6270_v59  ;;  %v5169_v59 = vld [vmem:[%s7026_s4 + $0x210] sm:$0xff]  ;;  %v5167_v17 = vld [vmem:[%s7026_s4 + $0x200] sm:$0xff] }
 0x24c   : >> { %3336 = vmatpush.bf16.msra.mxu2 %v5155_v45  ;;  %3171 = vmatpush.bf16.msra.mxu1 %v5146_v60 }
 0x24e   : >> { %3554 = vmatpush.bf16.msra.mxu3 %v5163_v22  ;;  %3748 = vmatpush.bf16.msra.mxu0 %v5171_v42  ;;  %v5160_v42 = vld [vmem:[%s7026_s4 + $0x1c8] sm:$0xff] }
 0x24f   : >> { %2425 = vmatmul.bf16.gmra.mxu1 %v2683_v47  ;;  %2604 = vmatmul.bf16.gmra.mxu2 %v2519_v61  ;;  %v5145_v47 = vld [vmem:[%s7026_s4 + $0x158] sm:$0xff]  ;;  %v2485_v61 = vrot.slane %v6221_v36, 2  ;;  %v5152_v36 = vld [vmem:[%s7026_s4 + $0x188] sm:$0xff] }
 0x250   : >> { %3337 = vmatpush.bf16.msra.mxu2 %v5154_v9  ;;  %3172 = vmatpush.bf16.msra.mxu1 %v5145_v47  ;;  %v5159_v47 = vld [vmem:[%s7026_s4 + $0x1c0] sm:$0xff] }
 0x251   : >> { %2769 = vmatmul.bf16.gmra.mxu3 %v2684_v23  ;;  %2987 = vmatmul.bf16.gmra.mxu0 %v2902_v18  ;;  %v6631_v18 = vsel %vm681_vm1, %v3054_v52, %v6625_v0  ;;  %v2486_v45 = vsel %vm681_vm1, %v6625_v0, %v2485_v61  ;;  %v3069_v61 = vrot.slane %v6334_v28, 2 }
 0x252   : >> { %3555 = vmatpush.bf16.msra.mxu3 %v5162_v44  ;;  %3749 = vmatpush.bf16.msra.mxu0 %v5170_v40  ;;  %v2522_v26 = vpack.c.bf16 %v2486_v45, %v6631_v18  ;;  %v5151_v44 = vld [vmem:[%s7026_s4 + $0x180] sm:$0xff]  ;;  %v3064_v40 = vrot.slane %v6218_v1, 2  ;;  %v2500_v45 = vrot.slane %v6340_v5, 2 }
 0x254   : >> { %3338 = vmatpush.bf16.msra.mxu2 %v5153_v56  ;;  %3173 = vmatpush.bf16.msra.mxu1 %v5144_v8  ;;  %v6697_v49 = vsel %vm681_vm1, %v3064_v40, %v6688_v50  ;;  %v6712_v8 = vld [vmem:[%s6200_s14 + $0x1e7] sm:$0xff] }
 0x256   : >> { %3556 = vmatpush.bf16.msra.mxu3 %v5161_v15  ;;  %3750 = vmatpush.bf16.msra.mxu0 %v5169_v59  ;;  %v6715_v59 = vld [vmem:[%s6200_s14 + $0x1ef] sm:$0xff] }
 0x258   : >> { %3339 = vmatpush.bf16.msra.mxu2 %v5152_v36 }
 0x25a   : >> { %3557 = vmatpush.bf16.msra.mxu3 %v5160_v42  ;;  %3751 = vmatpush.bf16.msra.mxu0 %v5168_v34 }
 0x25c   : >> { %3340 = vmatpush.bf16.msra.mxu2 %v5151_v44 }
 0x25e   : >> { %3558 = vmatpush.bf16.msra.mxu3 %v5159_v47  ;;  %3752 = vmatpush.bf16.msra.mxu0 %v5167_v17  ;;  %v3042_v47 = vrot.slane %v6448_v11, 2 }
 0x25f   : >> { %2430 = vmatmul.bf16.gmra.mxu1 %v2684_v23  ;;  %2609 = vmatmul.bf16.gmra.mxu2 %v2520_v4  ;;  %v2868_v23 = vrot.slane %v6621_v24, 1  ;;  %v6664_v4 = vsel %vm681_vm1, %v3059_v41, %v6655_v31 }
 0x260   : >> { %v2523_v13 = vpack.c.bf16 %v2491_v62, %v6664_v4 }
 0x261   : >> { %2774 = vmatmul.bf16.gmra.mxu3 %v6570_v51  ;;  %2992 = vmatmul.bf16.gmra.mxu0 %v2903_v37  ;;  %v2869_v22 = vsel %vm405_vm0, %v6358_v46, %v2868_v23  ;;  %v6648_v46 = vld [vmem:[%s6200_s14 + $0x1b7] sm:$0x3]  ;;  %v2688_v37 = vpack.c.bf16 %v6224_v27, %v6218_v1  ;;  %v2496_v1 = vsel %vm681_vm1, %v6688_v50, %v2495_v20  ;;  %v6724_v23 = vrot.slane %v6337_v6, 2 }
 0x262   : >> { %v2905_v60 = vpack.c.bf16 %v2869_v22, %v6391_v30  ;;  %v5143_v30 = vld [vmem:[%s7026_s4 + $0x148] sm:$0xff]  ;;  %v2873_v58 = vrot.slane %v6648_v46, 1  ;;  %v2524_v21 = vpack.c.bf16 %v2496_v1, %v6697_v49 }
 0x263   : >> { %3174 = vmatpush.bf16.msra.mxu1 %v5143_v30  ;;  %v6736_v36 = vsel %vm681_vm1, %v3069_v61, %v6724_v23 }
 0x264   : >> { %v2874_v14 = vsel %vm405_vm0, %v6253_v55, %v2873_v58  ;;  %v6681_v55 = vld [vmem:[%s6200_s14 + $0x1d7] sm:$0x3]  ;;  %v6755_v58 = vpack.c.bf16 %v6715_v59, %v6712_v8 }
 0x265   : >> { %v2906_v9 = vpack.c.bf16 %v2874_v14, %v6276_v3  ;;  %v5142_v3 = vld [vmem:[%s7026_s4 + $0x140] sm:$0xff]  ;;  %v2878_v7 = vrot.slane %v6681_v55, 1 }
 0x266   : >> { %v4837_v14 = vld [vmem:[%s6200_s14 + $0x127] sm:$0xff] }
 0x267   : >> { %3175 = vmatpush.bf16.msra.mxu1 %v5142_v3  ;;  %v2879_v27 = vsel %vm405_vm0, %v6363_v33, %v2878_v7  ;;  %v6718_v33 = vld [vmem:[%s6200_s14 + $0x1f7] sm:$0x3]  ;;  %v3422_v40 = vrot.slane %v4837_v14, 1  ;;  %v3616_v1 = vrot.slane %v4837_v14, 2 }
 0x26f   : >> { %2435 = vmatmul.bf16.gmra.mxu1 %v6570_v51  ;;  %2614 = vmatmul.bf16.gmra.mxu2 %v2521_v39 }
 0x271   : >> { %2779 = vmatmul.bf16.gmra.mxu3 %v2686_v63  ;;  %2997 = vmatmul.bf16.gmra.mxu0 %v2904_v35  ;;  %v2907_v35 = vpack.c.bf16 %v2879_v27, %v6397_v2 }
 0x27f   : >> { %2440 = vmatmul.bf16.gmra.mxu1 %v2686_v63  ;;  %2619 = vmatmul.bf16.gmra.mxu2 %v2522_v26  ;;  %v2689_v63 = vpack.c.bf16 %v6337_v6, %v6334_v28  ;;  %v2880_v26 = vrot.slane %v6712_v8, 1  ;;  %v2501_v28 = vsel %vm681_vm1, %v6724_v23, %v2500_v45 }
 0x280   : >> { %v2525_v41 = vpack.c.bf16 %v2501_v28, %v6736_v36 }
 0x281   : >> { %2784 = vmatmul.bf16.gmra.mxu3 %v2687_v53  ;;  %3002 = vmatmul.bf16.gmra.mxu0 %v2905_v60  ;;  %v2883_v60 = vrot.slane %v6718_v33, 1 }
 0x28f   : >> { %2445 = vmatmul.bf16.gmra.mxu1 %v2687_v53  ;;  %2624 = vmatmul.bf16.gmra.mxu2 %v2523_v13  ;;  %v6731_v53 = vrot.slane %v6715_v59, 1  ;;  %v4838_v13 = vld [vmem:[%s6200_s14 + $0x12f] sm:$0xff] }
 0x290   : >> { %v3423_v20 = vrot.slane %v4838_v13, 1  ;;  %v3617_v27 = vrot.slane %v4838_v13, 2 }
 0x291   : >> { %2789 = vmatmul.bf16.gmra.mxu3 %v2688_v37  ;;  %3007 = vmatmul.bf16.gmra.mxu0 %v2906_v9  ;;  %v6742_v6 = vsel %vm405_vm0, %v2880_v26, %v6731_v53  ;;  %v2884_v5 = vsel %vm405_vm0, %v6731_v53, %v2883_v60  ;;  %v4839_v9 = vld [vmem:[%s6200_s14 + $0x137] sm:$0x3] }
 0x292   : >> { %v2908_v34 = vpack.c.bf16 %v2884_v5, %v6742_v6  ;;  %v3425_v17 = vrot.slane %v4839_v9, 1  ;;  %v3618_v45 = vsel %vm681_vm1, %v3616_v1, %v3617_v27  ;;  %v3260_v5 = vpack.c.bf16 %v4838_v13, %v4837_v14 }
 0x294   : >> { %v3426_v61 = vsel %vm405_vm0, %v3423_v20, %v3425_v17 }
 0x29c   : >> { %v6704_v39 = vpop.f32.mrf.mxu1 }
 0x29e   : >> { %v2324_v56 = vpop.f32.mrf.mxu0 }
 0x29f   : >> { %2450 = vmatmul.bf16.gmra.mxu1 %v2688_v37  ;;  %2629 = vmatmul.bf16.gmra.mxu2 %v2524_v21  ;;  %v3619_v21 = vrot.slane %v4839_v9, 2 }
 0x2a1   : >> { %2794 = vmatmul.bf16.gmra.mxu3 %v2689_v63  ;;  %3012 = vmatmul.bf16.gmra.mxu0 %v2907_v35  ;;  %v3424_v35 = vsel %vm405_vm0, %v3422_v40, %v3423_v20  ;;  %v3620_v11 = vsel %vm681_vm1, %v3617_v27, %v3619_v21  ;;  %v4842_v20 = vld [vmem:[%s6200_s14 + $0x157] sm:$0x3]  ;;  %v3047_v21 = vrot.slane %v6512_v25, 2 }
 0x2a2   : >> { %v6709_v15 = vpop.f32.mrf.mxu2  ;;  %v3672_v9 = vpack.c.bf16 %v3620_v11, %v3618_v45  ;;  %v3430_v14 = vrot.slane %v4842_v20, 1  ;;  %v3624_v13 = vrot.slane %v4842_v20, 2 }
 0x2a4   : >> { %v6720_v52 = vpop.f32.mrf.mxu3  ;;  %v6726_v2 = vpop.f32.mrf.mxu1 }
 0x2a6   : >> { %v2326_v22 = vpop.f32.mrf.mxu0 }
 0x2aa   : >> { %v6746_v42 = vpop.f32.mrf.mxu2 }
 0x2ac   : >> { %v6748_v30 = vpop.f32.mrf.mxu3  ;;  %v6751_v38 = vpop.f32.mrf.mxu1 }
 0x2ae   : >> { %v2329_v62 = vpop.f32.mrf.mxu0 }
 0x2af   : >> { %2455 = vmatmul.bf16.gmra.mxu1 %v2689_v63  ;;  %2634 = vmatmul.bf16.gmra.mxu2 %v2525_v41  ;;  %v3043_v63 = vsel %vm681_vm1, %v6522_v19, %v3042_v47 }
 0x2b0   : >> { %v3095_v28 = vpack.c.bf16 %v3043_v63, %v6528_v48 }
 0x2b1   : >> { %2799 = vmatmul.bf16.gmra.mxu3 %v6755_v58  ;;  %3017 = vmatmul.bf16.gmra.mxu0 %v2908_v34  ;;  %v3478_v34 = vpack.c.bf16 %v3426_v61, %v3424_v35  ;;  %v3431_v35 = vsel %vm405_vm0, %v6353_v12, %v3430_v14  ;;  %v3625_v61 = vsel %vm681_vm1, %v6591_v32, %v3624_v13 }
 0x2b2   : >> { %v6761_v37 = vpop.f32.mrf.mxu2 }
 0x2b4   : >> { %v6764_v44 = vpop.f32.mrf.mxu3  ;;  %v6767_v3 = vpop.f32.mrf.mxu1 }
 0x2b5   : >> { %7040 = vst [vmem:[#allocation9_spill] sm:$0xff] %v6764_v44 }
 0x2b6   : >> { %v6769_v7 = vpop.f32.mrf.mxu0 }
 0x2ba   : >> { %v6777_v26 = vpop.f32.mrf.mxu2 }
 0x2bc   : >> { %v6779_v60 = vpop.f32.mrf.mxu3  ;;  %v2421_v41 = vpop.f32.mrf.mxu1 }
 0x2bd   : >> { %7041 = vst [vmem:[#allocation10_spill] sm:$0xff] %v6779_v60  ;;  %v2422_v19 = vadd.f32 %v2421_v41, %v2324_v56  ;;  %v3048_v56 = vsel %vm681_vm1, %v6555_v57, %v3047_v21 }
 0x2be   : >> { %v2983_v47 = vpop.f32.mrf.mxu0  ;;  %v3096_v11 = vpack.c.bf16 %v3048_v56, %v6561_v54  ;;  %v3052_v54 = vrot.slane %v6551_v16, 2 }
 0x2bf   : >> { %3176 = vmatmul.bf16.vlgmr.msra.gmra.mxu1 %v3095_v28  ;;  %3341 = vmatmul.bf16.vlgmr.msra.gmra.mxu2 %v3260_v5  ;;  %v3673_v5 = vpack.c.bf16 %v3625_v61, %v6597_v29 }
 0x2c1   : >> { %3559 = vmatmul.bf16.vlgmr.msra.gmra.mxu3 %v3478_v34  ;;  %3753 = vmatmul.bf16.vlgmr.msra.gmra.mxu0 %v3672_v9  ;;  %v4844_v9 = vld [vmem:[%s6200_s14 + $0x16f] sm:$0xff] }
 0x2c2   : >> { %v2600_v40 = vpop.f32.mrf.mxu2  ;;  %v3627_v13 = vrot.slane %v4844_v9, 2 }
 0x2c3   : >> { %v2640_v17 = vadd.f32 %v2600_v40, %v2422_v19  ;;  %v4845_v19 = vld [vmem:[%s6200_s14 + $0x177] sm:$0x3] }
 0x2c4   : >> { %v2765_v1 = vpop.f32.mrf.mxu3  ;;  %v2423_v27 = vpop.f32.mrf.mxu1 }
 0x2c5   : >> { %v2805_v60 = vadd.f32 %v2765_v1, %v2640_v17  ;;  %v2424_v44 = vadd.f32 %v2423_v27, %v2326_v22  ;;  %v3433_v1 = vrot.slane %v4844_v9, 1 }
 0x2c6   : >> { %v2985_v48 = vpop.f32.mrf.mxu0 }
 0x2c7   : >> { %v6784_v63 = vadd.f32 %v2983_v47, %v2805_v60  ;;  %v3479_v60 = vpack.c.bf16 %v3431_v35, %v6385_v43  ;;  %v3053_v35 = vsel %vm681_vm1, %v6591_v32, %v3052_v54  ;;  %v4846_v54 = vld [vmem:[%s6200_s14 + $0x187] sm:$0xff] }
 0x2ca   : >> { %v2602_v45 = vpop.f32.mrf.mxu2 }
 0x2cb   : >> { %v2641_v25 = vadd.f32 %v2602_v45, %v2424_v44  ;;  %v4843_v44 = vld [vmem:[%s6200_s14 + $0x167] sm:$0xff] }
 0x2cc   : >> { %v2767_v22 = vpop.f32.mrf.mxu3  ;;  %v2426_v28 = vpop.f32.mrf.mxu1  ;;  %v3432_v17 = vrot.slane %v4843_v44, 1  ;;  %v3626_v27 = vrot.slane %v4843_v44, 2 }
 0x2cd   : >> { %v2806_v57 = vadd.f32 %v2767_v22, %v2641_v25  ;;  %v2427_v41 = vadd.f32 %v2426_v28, %v2329_v62  ;;  %v3435_v62 = vrot.slane %v4845_v19, 1  ;;  %v3097_v28 = vpack.c.bf16 %v3053_v35, %v6597_v29 }
 0x2ce   : >> { %v2988_v34 = vpop.f32.mrf.mxu0  ;;  %v3434_v16 = vsel %vm405_vm0, %v3432_v17, %v3433_v1  ;;  %v3628_v45 = vsel %vm681_vm1, %v3626_v27, %v3627_v13  ;;  %v3057_v29 = vrot.slane %v6587_v10, 2 }
 0x2cf   : >> { %3181 = vmatmul.bf16.gmra.mxu1 %v3096_v11  ;;  %3346 = vmatmul.bf16.gmra.mxu2 %v6570_v51  ;;  %v6796_v12 = vadd.f32 %v2985_v48, %v2806_v57  ;;  %v3629_v48 = vrot.slane %v4845_v19, 2  ;;  %v3436_v61 = vsel %vm405_vm0, %v3433_v1, %v3435_v62  ;;  %v3437_v1 = vrot.slane %v4846_v54, 1 }
 0x2d0   : >> { %v3480_v57 = vpack.c.bf16 %v3436_v61, %v3434_v16  ;;  %v3058_v16 = vsel %vm681_vm1, %v6625_v0, %v3057_v29 }
 0x2d1   : >> { %3564 = vmatmul.bf16.gmra.mxu3 %v3479_v60  ;;  %3758 = vmatmul.bf16.gmra.mxu0 %v3673_v5  ;;  %v3630_v25 = vsel %vm681_vm1, %v3627_v13, %v3629_v48  ;;  %v3262_v60 = vpack.c.bf16 %v4844_v9, %v4843_v44 }
 0x2d2   : >> { %v2605_v47 = vpop.f32.mrf.mxu2  ;;  %v3674_v32 = vpack.c.bf16 %v3630_v25, %v3628_v45 }
 0x2d3   : >> { %v2642_v40 = vadd.f32 %v2605_v47, %v2427_v41 }
 0x2d4   : >> { %v2770_v43 = vpop.f32.mrf.mxu3  ;;  %v2428_v20 = vpop.f32.mrf.mxu1 }
 0x2d5   : >> { %v2807_v21 = vadd.f32 %v2770_v43, %v2642_v40  ;;  %v2429_v51 = vadd.f32 %v2428_v20, %v6769_v7  ;;  %v4847_v40 = vld [vmem:[%s6200_s14 + $0x18f] sm:$0xff]  ;;  %v4848_v43 = vld [vmem:[%s6200_s14 + $0x197] sm:$0x3] }
 0x2d6   : >> { %v2990_v14 = vpop.f32.mrf.mxu0  ;;  %v3438_v62 = vrot.slane %v4847_v40, 1  ;;  %v3440_v27 = vrot.slane %v4848_v43, 1  ;;  %v3632_v48 = vrot.slane %v4847_v40, 2 }
 0x2d7   : >> { %v6803_v56 = vadd.f32 %v2988_v34, %v2807_v21 }
 0x2d8   : >> { %v3439_v10 = vsel %vm405_vm0, %v3437_v1, %v3438_v62  ;;  %v3441_v61 = vsel %vm405_vm0, %v3438_v62, %v3440_v27 }
 0x2da   : >> { %v2607_v22 = vpop.f32.mrf.mxu2 }
 0x2db   : >> { %v2643_v11 = vadd.f32 %v2607_v22, %v2429_v51 }
 0x2dc   : >> { %v2772_v7 = vpop.f32.mrf.mxu3  ;;  %v2431_v5 = vpop.f32.mrf.mxu1 }
 0x2dd   : >> { %v2808_v41 = vadd.f32 %v2772_v7, %v2643_v11  ;;  %v2432_v34 = vadd.f32 %v2431_v5, %v6704_v39  ;;  %v3631_v39 = vrot.slane %v4846_v54, 2  ;;  %v3098_v7 = vpack.c.bf16 %v3058_v16, %v6631_v18 }
 0x2de   : >> { %v2993_v19 = vpop.f32.mrf.mxu0  ;;  %v3481_v5 = vpack.c.bf16 %v3441_v61, %v3439_v10  ;;  %v3062_v18 = vrot.slane %v6621_v24, 2  ;;  %v3074_v61 = vrot.slane %v6712_v8, 2 }
 0x2df   : >> { %3186 = vmatmul.bf16.gmra.mxu1 %v3097_v28  ;;  %3351 = vmatmul.bf16.gmra.mxu2 %v3262_v60  ;;  %v6813_v47 = vadd.f32 %v2990_v14, %v2808_v41  ;;  %v3634_v14 = vrot.slane %v4848_v43, 2  ;;  %v3633_v45 = vsel %vm681_vm1, %v3631_v39, %v3632_v48  ;;  %v3263_v28 = vpack.c.bf16 %v4847_v40, %v4846_v54  ;;  %v4850_v43 = vld [vmem:[%s6200_s14 + $0x1af] sm:$0xff] }
 0x2e1   : >> { %3569 = vmatmul.bf16.gmra.mxu3 %v3480_v57  ;;  %3763 = vmatmul.bf16.gmra.mxu0 %v3674_v32  ;;  %v3635_v25 = vsel %vm681_vm1, %v3632_v48, %v3634_v14  ;;  %v3063_v48 = vsel %vm681_vm1, %v6655_v31, %v3062_v18 }
 0x2e2   : >> { %v2610_v20 = vpop.f32.mrf.mxu2  ;;  %v3675_v0 = vpack.c.bf16 %v3635_v25, %v3633_v45  ;;  %v3075_v45 = vrot.slane %v6715_v59, 2 }
 0x2e3   : >> { %v2644_v44 = vadd.f32 %v2610_v20, %v2432_v34  ;;  %v4851_v20 = vld [vmem:[%s6200_s14 + $0x1b7] sm:$0x3] }
 0x2e4   : >> { %v2775_v9 = vpop.f32.mrf.mxu3  ;;  %v2433_v17 = vpop.f32.mrf.mxu1  ;;  %v3445_v1 = vrot.slane %v4851_v20, 1  ;;  %v6853_v59 = vsel %vm681_vm1, %v3074_v61, %v3075_v45 }
 0x2e5   : >> { %v2809_v21 = vadd.f32 %v2775_v9, %v2644_v44  ;;  %v2434_v51 = vadd.f32 %v2433_v17, %v6726_v2  ;;  %v3443_v17 = vrot.slane %v4850_v43, 1 }
 0x2e6   : >> { %v2995_v13 = vpop.f32.mrf.mxu0 }
 0x2e7   : >> { %v6820_v35 = vadd.f32 %v2993_v19, %v2809_v21  ;;  %v4849_v19 = vld [vmem:[%s6200_s14 + $0x1a7] sm:$0xff]  ;;  %v3637_v21 = vrot.slane %v4850_v43, 2  ;;  %v3446_v14 = vsel %vm405_vm0, %v3443_v17, %v3445_v1 }
 0x2e8   : >> { %v3442_v9 = vrot.slane %v4849_v19, 1 }
 0x2ea   : >> { %v2612_v22 = vpop.f32.mrf.mxu2  ;;  %v3444_v24 = vsel %vm405_vm0, %v3442_v9, %v3443_v17 }
 0x2eb   : >> { %v2645_v11 = vadd.f32 %v2612_v22, %v2434_v51  ;;  %v3639_v51 = vrot.slane %v4851_v20, 2 }
 0x2ec   : >> { %v2777_v2 = vpop.f32.mrf.mxu3  ;;  %v2436_v60 = vpop.f32.mrf.mxu1 }
 0x2ed   : >> { %v2810_v57 = vadd.f32 %v2777_v2, %v2645_v11  ;;  %v2437_v32 = vadd.f32 %v2436_v60, %v6751_v38  ;;  %v3636_v38 = vrot.slane %v4849_v19, 2  ;;  %v3640_v10 = vsel %vm681_vm1, %v3637_v21, %v3639_v51 }
 0x2ee   : >> { %v2998_v41 = vpop.f32.mrf.mxu0  ;;  %v3099_v11 = vpack.c.bf16 %v3063_v48, %v6664_v4  ;;  %v3264_v2 = vpack.c.bf16 %v4850_v43, %v4849_v19  ;;  %v4853_v19 = vld [vmem:[%s6200_s14 + $0x1cf] sm:$0xff]  ;;  %v4854_v43 = vld [vmem:[%s6200_s14 + $0x1d7] sm:$0x3]  ;;  %v3077_v51 = vrot.slane %v6718_v33, 2 }
 0x2ef   : >> { %3191 = vmatmul.bf16.gmra.mxu1 %v3098_v7  ;;  %3356 = vmatmul.bf16.gmra.mxu2 %v3263_v28  ;;  %v6830_v34 = vadd.f32 %v2995_v13, %v2810_v57  ;;  %v3638_v16 = vsel %vm681_vm1, %v3636_v38, %v3637_v21  ;;  %v3482_v7 = vpack.c.bf16 %v3446_v14, %v3444_v24  ;;  %v3448_v17 = vrot.slane %v4853_v19, 1 }
 0x2f0   : >> { %v3676_v28 = vpack.c.bf16 %v3640_v10, %v3638_v16  ;;  %v3450_v1 = vrot.slane %v4854_v43, 1 }
 0x2f1   : >> { %3574 = vmatmul.bf16.gmra.mxu3 %v3481_v5  ;;  %3768 = vmatmul.bf16.gmra.mxu0 %v3675_v0  ;;  %v6849_v0 = vld [vmem:[%s6200_s14 + $0x1f7] sm:$0x3] }
 0x2f2   : >> { %v2615_v29 = vpop.f32.mrf.mxu2  ;;  %v3649_v8 = vrot.slane %v6849_v0, 2  ;;  %v3451_v14 = vsel %vm405_vm0, %v3448_v17, %v3450_v1 }
 0x2f3   : >> { %v2646_v54 = vadd.f32 %v2615_v29, %v2437_v32 }
 0x2f4   : >> { %v2780_v40 = vpop.f32.mrf.mxu3  ;;  %v2438_v44 = vpop.f32.mrf.mxu1  ;;  %v6858_v4 = vsel %vm681_vm1, %v3075_v45, %v3649_v8 }
 0x2f5   : >> { %v2811_v62 = vadd.f32 %v2780_v40, %v2646_v54  ;;  %v2439_v27 = vadd.f32 %v2438_v44, %v6767_v3  ;;  %v3678_v20 = vpack.c.bf16 %v6858_v4, %v6853_v59  ;;  %v3067_v40 = vrot.slane %v6648_v46, 2 }
 0x2f6   : >> { %v3000_v39 = vpop.f32.mrf.mxu0 }
 0x2f7   : >> { %v6837_v13 = vadd.f32 %v2998_v41, %v2811_v62  ;;  %v4852_v41 = vld [vmem:[%s6200_s14 + $0x1c7] sm:$0xff]  ;;  %v3068_v48 = vsel %vm681_vm1, %v6688_v50, %v3067_v40 }
 0x2f8   : >> { %v3447_v9 = vrot.slane %v4852_v41, 1 }
 0x2fa   : >> { %v2617_v3 = vpop.f32.mrf.mxu2  ;;  %v3449_v24 = vsel %vm405_vm0, %v3447_v9, %v3448_v17 }
 0x2fb   : >> { %v2647_v25 = vadd.f32 %v2617_v3, %v2439_v27  ;;  %v3641_v27 = vrot.slane %v4852_v41, 2 }
 0x2fc   : >> { %v2782_v22 = vpop.f32.mrf.mxu3  ;;  %v2441_v31 = vpop.f32.mrf.mxu1 }
 0x2fd   : >> { %v2812_v60 = vadd.f32 %v2782_v22, %v2647_v25  ;;  %v2442_v32 = vadd.f32 %v2441_v31, %v6709_v15  ;;  %v3644_v15 = vrot.slane %v4854_v43, 2  ;;  %v3100_v22 = vpack.c.bf16 %v3068_v48, %v6697_v49 }
 0x2fe   : >> { %v3003_v5 = vpop.f32.mrf.mxu0 }
 0x2ff   : >> { %3196 = vmatmul.bf16.gmra.mxu1 %v3099_v11  ;;  %3361 = vmatmul.bf16.gmra.mxu2 %v3264_v2  ;;  %v6855_v57 = vadd.f32 %v3000_v39, %v2812_v60  ;;  %v3642_v39 = vrot.slane %v4853_v19, 2  ;;  %v3265_v11 = vpack.c.bf16 %v4853_v19, %v4852_v41  ;;  %v3483_v2 = vpack.c.bf16 %v3451_v14, %v3449_v24 }
 0x300   : >> { %v3072_v41 = vrot.slane %v6681_v55, 2 }
 0x301   : >> { %3579 = vmatmul.bf16.gmra.mxu3 %v3482_v7  ;;  %3773 = vmatmul.bf16.gmra.mxu0 %v3676_v28  ;;  %v3643_v16 = vsel %vm681_vm1, %v3641_v27, %v3642_v39  ;;  %v3645_v10 = vsel %vm681_vm1, %v3642_v39, %v3644_v15  ;;  %v6879_v28 = vsel %vm681_vm1, %v3075_v45, %v3077_v51  ;;  %v4859_v27 = vld [vmem:[%s6200_s14 + $0x20f] sm:$0xff] }
 0x302   : >> { %v2620_v29 = vpop.f32.mrf.mxu2  ;;  %v3677_v31 = vpack.c.bf16 %v3645_v10, %v3643_v16  ;;  %v3458_v24 = vrot.slane %v4859_v27, 1  ;;  %v3652_v10 = vrot.slane %v4859_v27, 2 }
 0x303   : >> { %v2648_v18 = vadd.f32 %v2620_v29, %v2442_v32  ;;  %v3455_v29 = vrot.slane %v6849_v0, 1 }
 0x304   : >> { %v2785_v54 = vpop.f32.mrf.mxu3  ;;  %v2443_v44 = vpop.f32.mrf.mxu1 }
 0x305   : >> { %v2813_v38 = vadd.f32 %v2785_v54, %v2648_v18  ;;  %v2444_v46 = vadd.f32 %v2443_v44, %v6746_v42  ;;  %v3102_v42 = vpack.c.bf16 %v6879_v28, %v6853_v59  ;;  %v3073_v54 = vsel %vm681_vm1, %v6724_v23, %v3072_v41 }
 0x306   : >> { %v3005_v62 = vpop.f32.mrf.mxu0  ;;  %v3101_v17 = vpack.c.bf16 %v3073_v54, %v6736_v36  ;;  %v4860_v36 = vld [vmem:[%s6200_s14 + $0x217] sm:$0x3] }
 0x307   : >> { %v6867_v21 = vadd.f32 %v3003_v5, %v2813_v38 }
 0x30a   : >> { %v2622_v61 = vpop.f32.mrf.mxu2 }
 0x30b   : >> { %v2649_v3 = vadd.f32 %v2622_v61, %v2444_v46  ;;  %v3460_v46 = vrot.slane %v4860_v36, 1  ;;  %v3654_v61 = vrot.slane %v4860_v36, 2 }
 0x30c   : >> { %v2787_v25 = vpop.f32.mrf.mxu3  ;;  %v2446_v33 = vpop.f32.mrf.mxu1 }
 0x30d   : >> { %v2814_v50 = vadd.f32 %v2787_v25, %v2649_v3  ;;  %v2447_v49 = vadd.f32 %v2446_v33, %v6761_v37  ;;  %v3456_v37 = vsel %vm405_vm0, %v6731_v53, %v3455_v29  ;;  %v3461_v4 = vsel %vm405_vm0, %v3458_v24, %v3460_v46 }
 0x30e   : >> { %v3008_v7 = vpop.f32.mrf.mxu0  ;;  %v3484_v0 = vpack.c.bf16 %v3456_v37, %v6742_v6  ;;  %v3655_v25 = vsel %vm681_vm1, %v3652_v10, %v3654_v61 }
 0x30f   : >> { %3201 = vmatmul.bf16.gmra.mxu1 %v3100_v22  ;;  %3366 = vmatmul.bf16.gmra.mxu2 %v3265_v11  ;;  %v6883_v60 = vadd.f32 %v3005_v62, %v2814_v50 }
 0x311   : >> { %3584 = vmatmul.bf16.gmra.mxu3 %v3483_v2  ;;  %3778 = vmatmul.bf16.gmra.mxu0 %v3677_v31 }
 0x312   : >> { %v2625_v5 = vpop.f32.mrf.mxu2 }
 0x313   : >> { %v2650_v8 = vadd.f32 %v2625_v5, %v2447_v49 }
 0x314   : >> { %v2790_v32 = vpop.f32.mrf.mxu3  ;;  %v2448_v19 = vpop.f32.mrf.mxu1 }
 0x315   : >> { %v2815_v43 = vadd.f32 %v2790_v32, %v2650_v8  ;;  %v2449_v40 = vadd.f32 %v2448_v19, %v6777_v26  ;;  %v4858_v26 = vld [vmem:[%s6200_s14 + $0x207] sm:$0xff]  ;;  %s5006_s14 = smul.u32 192, %s5272_s22  ;;  %s2108_s22 = sadd.s32 1, %s5272_s22  }
 0x316   : >> { %v3010_v45 = vpop.f32.mrf.mxu0  ;;  %v3457_v48 = vrot.slane %v4858_v26, 1  ;;  %v3651_v16 = vrot.slane %v4858_v26, 2  ;;  %v3267_v2 = vpack.c.bf16 %v4859_v27, %v4858_v26  ;;  %p2105_p5 = scmp.ge.s32.totalorder %s2108_s22, 2  }
 0x317   : >> { %v6888_v18 = vadd.f32 %v3008_v7, %v2815_v43  ;;  %s6928_s25 = scalar_lea.vmem %s5351_s18, %s5006_s14 }
 0x318   : >> { %v3459_v59 = vsel %vm405_vm0, %v3457_v48, %v3458_v24  ;;  %v7045_v48 = vld [vmem:[#allocation6_spill] sm:$0xff] }
 0x319   : >> { %v3485_v50 = vpack.c.bf16 %v3461_v4, %v3459_v59  ;;  %v6931_v24 = vperm.slane %v7045_v48, 0 }
 0x31a   : >> { %v2627_v44 = vpop.f32.mrf.mxu2 }
 0x31b   : >> { %v2651_v55 = vadd.f32 %v2627_v44, %v2449_v40  ;;  %v7043_v40 = vld [vmem:[#allocation10_spill] sm:$0xff] }
 0x31c   : >> { %v2792_v9 = vpop.f32.mrf.mxu3  ;;  %v2451_v1 = vpop.f32.mrf.mxu1 }
 0x31d   : >> { %v2816_v38 = vadd.f32 %v2792_v9, %v2651_v55  ;;  %v2452_v53 = vadd.f32 %v2451_v1, %v6720_v52 }
 0x31e   : >> { %v3013_v62 = vpop.f32.mrf.mxu0 }
 0x31f   : >> { %3206 = vmatmul.bf16.gmra.mxu1 %v3101_v17  ;;  %3371 = vmatmul.bf16.gmra.mxu2 %v6755_v58  ;;  %v6898_v23 = vadd.f32 %v3010_v45, %v2816_v38 }
 0x321   : >> { %3589 = vmatmul.bf16.gmra.mxu3 %v3484_v0  ;;  %3783 = vmatmul.bf16.gmra.mxu0 %v3678_v20  ;;  %v3653_v20 = vsel %vm681_vm1, %v3651_v16, %v3652_v10 }
 0x322   : >> { %v2630_v39 = vpop.f32.mrf.mxu2  ;;  %v3679_v7 = vpack.c.bf16 %v3655_v25, %v3653_v20 }
 0x323   : >> { %v2652_v15 = vadd.f32 %v2630_v39, %v2452_v53  ;;  %v7044_v39 = vld [vmem:[#allocation5_spill] sm:$0xff] }
 0x324   : >> { %v2795_v6 = vpop.f32.mrf.mxu3  ;;  %v2453_v51 = vpop.f32.mrf.mxu1 }
 0x325   : >> { %v2817_v58 = vadd.f32 %v2795_v6, %v2652_v15  ;;  %v2454_v52 = vadd.f32 %v2453_v51, %v6748_v30  ;;  %v7042_v30 = vld [vmem:[#allocation9_spill] sm:$0xff]  ;;  %v6925_v15 = vperm.slane %v7044_v39, 0 }
 0x326   : >> { %v3015_v14 = vpop.f32.mrf.mxu0 }
 0x327   : >> { %v6907_v3 = vadd.f32 %v3013_v62, %v2817_v58  ;;  %v5007_v58 = vld [vmem:[%s6928_s25 + $0x19] sm:$0xff] }
 0x32a   : >> { %v2632_v22 = vpop.f32.mrf.mxu2 }
 0x32b   : >> { %v2653_v11 = vadd.f32 %v2632_v22, %v2454_v52 }
 0x32c   : >> { %v2797_v33 = vpop.f32.mrf.mxu3  ;;  %v2456_v31 = vpop.f32.mrf.mxu1 }
 0x32d   : >> { %v2818_v28 = vadd.f32 %v2797_v33, %v2653_v11  ;;  %v2457_v8 = vadd.f32 %v2456_v31, %v7042_v30  ;;  %v5008_v33 = vld [vmem:[%s6928_s25 + $0x21] sm:$0xff] }
 0x32e   : >> { %v3018_v49 = vpop.f32.mrf.mxu0 }
 0x32f   : >> { %3211 = vmatmul.bf16.gmra.mxu1 %v3102_v42  ;;  %3376 = vmatmul.bf16.gmra.mxu2 %v3267_v2  ;;  %v6914_v5 = vadd.f32 %v3015_v14, %v2818_v28 }
 0x331   : >> { %3594 = vmatmul.bf16.gmra.mxu3 %v3485_v50  ;;  %3788 = vmatmul.bf16.gmra.mxu0 %v3679_v7 }
 0x332   : >> { %v2635_v32 = vpop.f32.mrf.mxu2 }
 0x333   : >> { %v2654_v41 = vadd.f32 %v2635_v32, %v2457_v8 }
 0x334   : >> { %v2800_v19 = vpop.f32.mrf.mxu3  ;;  %v2458_v43 = vpop.f32.mrf.mxu1 }
 0x335   : >> { %v2819_v45 = vadd.f32 %v2800_v19, %v2654_v41  ;;  %v2459_v37 = vadd.f32 %v2458_v43, %v7043_v40 }
 0x336   : >> { %v3020_v29 = vpop.f32.mrf.mxu0 }
 0x337   : >> { %v6917_v54 = vadd.f32 %v3018_v49, %v2819_v45 }
 0x33a   : >> { %v2637_v44 = vpop.f32.mrf.mxu2 }
 0x33b   : >> { %v2655_v42 = vadd.f32 %v2637_v44, %v2459_v37 }
 0x33c   : >> { %v2802_v55 = vpop.f32.mrf.mxu3  ;;  %v3177_v9 = vpop.f32.mrf.mxu1 }
 0x33d   : >> { %v2820_v17 = vadd.f32 %v2802_v55, %v2655_v42  ;;  %v3217_v38 = vadd.f32 %v3177_v9, %v6784_v63 }
 0x33e   : >> { %v3754_v1 = vpop.f32.mrf.mxu0 }
 0x33f   : >> { %v6920_v0 = vadd.f32 %v3020_v29, %v2820_v17 }
 0x342   : >> { %v3342_v62 = vpop.f32.mrf.mxu2 }
 0x343   : >> { %v3382_v53 = vadd.f32 %v3342_v62, %v3217_v38 }
 0x344   : >> { %v3560_v26 = vpop.f32.mrf.mxu3  ;;  %v3179_v27 = vpop.f32.mrf.mxu1 }
 0x345   : >> { %v3600_v36 = vadd.f32 %v3560_v26, %v3382_v53  ;;  %v3218_v46 = vadd.f32 %v3179_v27, %v6796_v12 }
 0x346   : >> { %v3756_v6 = vpop.f32.mrf.mxu0 }
 0x347   : >> { %v3794_v51 = vadd.f32 %v3754_v1, %v3600_v36 }
 0x349   : >> { %v3832_v63 = vmul.f32 %v6925_v15, %v3794_v51 }
 0x34a   : >> { %v3344_v14 = vpop.f32.mrf.mxu2 }
 0x34b   : >> { %v3851_v16 = vadd.f32 %v6931_v24, %v3832_v63  ;;  %v3383_v10 = vadd.f32 %v3344_v14, %v3218_v46 }
 0x34c   : >> { %v3562_v61 = vpop.f32.mrf.mxu3  ;;  %v3182_v59 = vpop.f32.mrf.mxu1 }
 0x34d   : >> { %v3867_v52 = vadd.f32 %v5007_v58, %v3851_v16  ;;  %v3601_v4 = vadd.f32 %v3562_v61, %v3383_v10  ;;  %v3219_v11 = vadd.f32 %v3182_v59, %v6803_v56  ;;  %v5009_v56 = vld [vmem:[%s6928_s25 + $0x31] sm:$0xff] }
 0x34e   : >> { %v3759_v20 = vpop.f32.mrf.mxu0 }
 0x34f   : >> { %v3883_v25 = vmax.f32 %v3867_v52, 0.0  ;;  %v3795_v22 = vadd.f32 %v3756_v6, %v3601_v4 }
 0x351   : >> { %3901 = vst [vmem:[%s6939_s27] sm:$0xff] %v3883_v25  ;;  %v3833_v12 = vmul.f32 %v6925_v15, %v3795_v22 }
 0x352   : >> { %v3347_v2 = vpop.f32.mrf.mxu2 }
 0x353   : >> { %v3852_v31 = vadd.f32 %v6931_v24, %v3833_v12  ;;  %v3384_v50 = vadd.f32 %v3347_v2, %v3219_v11 }
 0x354   : >> { %v3565_v7 = vpop.f32.mrf.mxu3  ;;  %v3184_v28 = vpop.f32.mrf.mxu1 }
 0x355   : >> { %v3868_v49 = vadd.f32 %v5008_v33, %v3852_v31  ;;  %v3602_v30 = vadd.f32 %v3565_v7, %v3384_v50  ;;  %v3220_v43 = vadd.f32 %v3184_v28, %v6813_v47  ;;  %v5010_v47 = vld [vmem:[%s6928_s25 + $0x39] sm:$0xff] }
 0x356   : >> { %v3761_v8 = vpop.f32.mrf.mxu0 }
 0x357   : >> { %v3884_v32 = vmax.f32 %v3868_v49, 0.0  ;;  %v3796_v41 = vadd.f32 %v3759_v20, %v3602_v30 }
 0x359   : >> { %3902 = vst [vmem:[%s6939_s27 + $0x8] sm:$0xff] %v3884_v32  ;;  %v3834_v19 = vmul.f32 %v6925_v15, %v3796_v41 }
 0x35a   : >> { %v3349_v45 = vpop.f32.mrf.mxu2 }
 0x35b   : >> { %v3853_v29 = vadd.f32 %v6931_v24, %v3834_v19  ;;  %v3385_v40 = vadd.f32 %v3349_v45, %v3220_v43 }
 0x35c   : >> { %v3567_v37 = vpop.f32.mrf.mxu3  ;;  %v3187_v44 = vpop.f32.mrf.mxu1 }
 0x35d   : >> { %v3869_v42 = vadd.f32 %v5009_v56, %v3853_v29  ;;  %v3603_v55 = vadd.f32 %v3567_v37, %v3385_v40  ;;  %v3221_v62 = vadd.f32 %v3187_v44, %v6820_v35  ;;  %v5011_v35 = vld [vmem:[%s6928_s25 + $0x49] sm:$0xff] }
 0x35e   : >> { %v3764_v9 = vpop.f32.mrf.mxu0 }
 0x35f   : >> { %v3885_v17 = vmax.f32 %v3869_v42, 0.0  ;;  %v3797_v1 = vadd.f32 %v3761_v8, %v3603_v55 }
 0x361   : >> { %3903 = vst [vmem:[%s6939_s27 + $0x10] sm:$0xff] %v3885_v17  ;;  %v3835_v38 = vmul.f32 %v6925_v15, %v3797_v1 }
 0x362   : >> { %v3352_v53 = vpop.f32.mrf.mxu2 }
 0x363   : >> { %v3854_v26 = vadd.f32 %v6931_v24, %v3835_v38  ;;  %v3386_v27 = vadd.f32 %v3352_v53, %v3221_v62 }
 0x364   : >> { %v3570_v36 = vpop.f32.mrf.mxu3  ;;  %v3189_v39 = vpop.f32.mrf.mxu1 }
 0x365   : >> { %v3870_v6 = vadd.f32 %v5010_v47, %v3854_v26  ;;  %v3604_v51 = vadd.f32 %v3570_v36, %v3386_v27  ;;  %v3222_v14 = vadd.f32 %v3189_v39, %v6830_v34  ;;  %v5012_v34 = vld [vmem:[%s6928_s25 + $0x51] sm:$0xff] }
 0x366   : >> { %v3766_v48 = vpop.f32.mrf.mxu0 }
 0x367   : >> { %v3886_v63 = vmax.f32 %v3870_v6, 0.0  ;;  %v3798_v46 = vadd.f32 %v3764_v9, %v3604_v51 }
 0x369   : >> { %3904 = vst [vmem:[%s6939_s27 + $0x18] sm:$0xff] %v3886_v63  ;;  %v3836_v58 = vmul.f32 %v6925_v15, %v3798_v46 }
 0x36a   : >> { %v3354_v16 = vpop.f32.mrf.mxu2 }
 0x36b   : >> { %v3855_v10 = vadd.f32 %v6931_v24, %v3836_v58  ;;  %v3387_v61 = vadd.f32 %v3354_v16, %v3222_v14 }
 0x36c   : >> { %v3572_v59 = vpop.f32.mrf.mxu3  ;;  %v3192_v52 = vpop.f32.mrf.mxu1 }
 0x36d   : >> { %v3871_v4 = vadd.f32 %v5011_v35, %v3855_v10  ;;  %v3605_v20 = vadd.f32 %v3572_v59, %v3387_v61  ;;  %v3223_v33 = vadd.f32 %v3192_v52, %v6837_v13  ;;  %v5013_v13 = vld [vmem:[%s6928_s25 + $0x61] sm:$0xff] }
 0x36e   : >> { %v3769_v25 = vpop.f32.mrf.mxu0 }
 0x36f   : >> { %v3887_v22 = vmax.f32 %v3871_v4, 0.0  ;;  %v3799_v12 = vadd.f32 %v3766_v48, %v3605_v20 }
 0x371   : >> { %3905 = vst [vmem:[%s6939_s27 + $0x20] sm:$0xff] %v3887_v22  ;;  %v3837_v11 = vmul.f32 %v6925_v15, %v3799_v12 }
 0x372   : >> { %v3357_v2 = vpop.f32.mrf.mxu2 }
 0x373   : >> { %v3856_v31 = vadd.f32 %v6931_v24, %v3837_v11  ;;  %v3388_v50 = vadd.f32 %v3357_v2, %v3223_v33 }
 0x374   : >> { %v3575_v7 = vpop.f32.mrf.mxu3  ;;  %v3194_v28 = vpop.f32.mrf.mxu1 }
 0x375   : >> { %v3872_v49 = vadd.f32 %v5012_v34, %v3856_v31  ;;  %v3606_v30 = vadd.f32 %v3575_v7, %v3388_v50  ;;  %v3224_v43 = vadd.f32 %v3194_v28, %v6855_v57  ;;  %v5014_v57 = vld [vmem:[%s6928_s25 + $0x69] sm:$0xff] }
 0x376   : >> { %v3771_v8 = vpop.f32.mrf.mxu0 }
 0x377   : >> { %v3888_v32 = vmax.f32 %v3872_v49, 0.0  ;;  %v3800_v41 = vadd.f32 %v3769_v25, %v3606_v30 }
 0x379   : >> { %3906 = vst [vmem:[%s6939_s27 + $0x28] sm:$0xff] %v3888_v32  ;;  %v3838_v19 = vmul.f32 %v6925_v15, %v3800_v41 }
 0x37a   : >> { %v3359_v56 = vpop.f32.mrf.mxu2 }
 0x37b   : >> { %v3857_v45 = vadd.f32 %v6931_v24, %v3838_v19  ;;  %v3389_v29 = vadd.f32 %v3359_v56, %v3224_v43 }
 0x37c   : >> { %v3577_v40 = vpop.f32.mrf.mxu3  ;;  %v3197_v37 = vpop.f32.mrf.mxu1 }
 0x37d   : >> { %v3873_v44 = vadd.f32 %v5013_v13, %v3857_v45  ;;  %v3607_v42 = vadd.f32 %v3577_v40, %v3389_v29  ;;  %v3225_v38 = vadd.f32 %v3197_v37, %v6867_v21  ;;  %v5015_v21 = vld [vmem:[%s6928_s25 + $0x79] sm:$0xff] }
 0x37e   : >> { %v3774_v55 = vpop.f32.mrf.mxu0 }
 0x37f   : >> { %v3889_v9 = vmax.f32 %v3873_v44, 0.0  ;;  %v3801_v17 = vadd.f32 %v3771_v8, %v3607_v42 }
 0x381   : >> { %3907 = vst [vmem:[%s6939_s27 + $0x30] sm:$0xff] %v3889_v9  ;;  %v3839_v1 = vmul.f32 %v6925_v15, %v3801_v17 }
 0x382   : >> { %v3362_v62 = vpop.f32.mrf.mxu2 }
 0x383   : >> { %v3858_v47 = vadd.f32 %v6931_v24, %v3839_v1  ;;  %v3390_v53 = vadd.f32 %v3362_v62, %v3225_v38 }
 0x384   : >> { %v3580_v26 = vpop.f32.mrf.mxu3  ;;  %v3199_v27 = vpop.f32.mrf.mxu1 }
 0x385   : >> { %v3874_v36 = vadd.f32 %v5014_v57, %v3858_v47  ;;  %v3608_v39 = vadd.f32 %v3580_v26, %v3390_v53  ;;  %v3226_v46 = vadd.f32 %v3199_v27, %v6883_v60  ;;  %v5016_v60 = vld [vmem:[%s6928_s25 + $0x81] sm:$0xff] }
 0x386   : >> { %v3776_v6 = vpop.f32.mrf.mxu0 }
 0x387   : >> { %v3890_v51 = vmax.f32 %v3874_v36, 0.0  ;;  %v3802_v48 = vadd.f32 %v3774_v55, %v3608_v39  ;;  %v5019_v36 = vld [vmem:[%s6928_s25 + $0xa9] sm:$0xff] }
 0x389   : >> { %3908 = vst [vmem:[%s6939_s27 + $0x38] sm:$0xff] %v3890_v51  ;;  %v3840_v63 = vmul.f32 %v6925_v15, %v3802_v48 }
 0x38a   : >> { %v3364_v58 = vpop.f32.mrf.mxu2 }
 0x38b   : >> { %v3859_v14 = vadd.f32 %v6931_v24, %v3840_v63  ;;  %v3391_v35 = vadd.f32 %v3364_v58, %v3226_v46 }
 0x38c   : >> { %v3582_v16 = vpop.f32.mrf.mxu3  ;;  %v3202_v10 = vpop.f32.mrf.mxu1 }
 0x38d   : >> { %v3875_v61 = vadd.f32 %v5015_v21, %v3859_v14  ;;  %v3609_v59 = vadd.f32 %v3582_v16, %v3391_v35  ;;  %v3227_v22 = vadd.f32 %v3202_v10, %v6888_v18  ;;  %v5017_v18 = vld [vmem:[%s6928_s25 + $0x91] sm:$0xff] }
 0x38e   : >> { %v3779_v52 = vpop.f32.mrf.mxu0 }
 0x38f   : >> { %v3891_v4 = vmax.f32 %v3875_v61, 0.0  ;;  %v3803_v20 = vadd.f32 %v3776_v6, %v3609_v59 }
 0x391   : >> { %3909 = vst [vmem:[%s6939_s27 + $0x40] sm:$0xff] %v3891_v4  ;;  %v3841_v25 = vmul.f32 %v6925_v15, %v3803_v20 }
 0x392   : >> { %v3367_v12 = vpop.f32.mrf.mxu2 }
 0x393   : >> { %v3860_v11 = vadd.f32 %v6931_v24, %v3841_v25  ;;  %v3392_v33 = vadd.f32 %v3367_v12, %v3227_v22 }
 0x394   : >> { %v3585_v34 = vpop.f32.mrf.mxu3  ;;  %v3204_v2 = vpop.f32.mrf.mxu1 }
 0x395   : >> { %v3876_v31 = vadd.f32 %v5016_v60, %v3860_v11  ;;  %v3610_v50 = vadd.f32 %v3585_v34, %v3392_v33  ;;  %v3228_v8 = vadd.f32 %v3204_v2, %v6898_v23  ;;  %v5018_v23 = vld [vmem:[%s6928_s25 + $0x99] sm:$0xff] }
 0x396   : >> { %v3781_v7 = vpop.f32.mrf.mxu0 }
 0x397   : >> { %v3892_v28 = vmax.f32 %v3876_v31, 0.0  ;;  %v3804_v49 = vadd.f32 %v3779_v52, %v3610_v50 }
 0x399   : >> { %3910 = vst [vmem:[%s6939_s27 + $0x48] sm:$0xff] %v3892_v28  ;;  %v3842_v30 = vmul.f32 %v6925_v15, %v3804_v49 }
 0x39a   : >> { %v3369_v32 = vpop.f32.mrf.mxu2 }
 0x39b   : >> { %v3861_v41 = vadd.f32 %v6931_v24, %v3842_v30  ;;  %v3393_v19 = vadd.f32 %v3369_v32, %v3228_v8  ;;  %v5022_v32 = vld [vmem:[%s6928_s25 + $0xc9] sm:$0xff] }
 0x39c   : >> { %v3587_v43 = vpop.f32.mrf.mxu3  ;;  %v3207_v13 = vpop.f32.mrf.mxu1 }
 0x39d   : >> { %v3877_v56 = vadd.f32 %v5017_v18, %v3861_v41  ;;  %v3611_v45 = vadd.f32 %v3587_v43, %v3393_v19  ;;  %v3229_v42 = vadd.f32 %v3207_v13, %v6907_v3 }
 0x39e   : >> { %v3784_v37 = vpop.f32.mrf.mxu0 }
 0x39f   : >> { %v3893_v29 = vmax.f32 %v3877_v56, 0.0  ;;  %v3805_v40 = vadd.f32 %v3781_v7, %v3611_v45 }
 0x3a1   : >> { %3911 = vst [vmem:[%s6939_s27 + $0x50] sm:$0xff] %v3893_v29  ;;  %v3843_v44 = vmul.f32 %v6925_v15, %v3805_v40 }
 0x3a2   : >> { %v3372_v55 = vpop.f32.mrf.mxu2 }
 0x3a3   : >> { %v3862_v9 = vadd.f32 %v6931_v24, %v3843_v44  ;;  %v3394_v17 = vadd.f32 %v3372_v55, %v3229_v42 }
 0x3a4   : >> { %v3590_v1 = vpop.f32.mrf.mxu3  ;;  %v3209_v38 = vpop.f32.mrf.mxu1 }
 0x3a5   : >> { %v3878_v57 = vadd.f32 %v5018_v23, %v3862_v9  ;;  %v3612_v62 = vadd.f32 %v3590_v1, %v3394_v17  ;;  %v3230_v27 = vadd.f32 %v3209_v38, %v6914_v5  ;;  %v5020_v5 = vld [vmem:[%s6928_s25 + $0xb1] sm:$0xff] }
 0x3a6   : >> { %v3786_v3 = vpop.f32.mrf.mxu0 }
 0x3a7   : >> { %v3894_v47 = vmax.f32 %v3878_v57, 0.0  ;;  %v3806_v53 = vadd.f32 %v3784_v37, %v3612_v62 }
 0x3a9   : >> { %3912 = vst [vmem:[%s6939_s27 + $0x58] sm:$0xff] %v3894_v47  ;;  %v3844_v26 = vmul.f32 %v6925_v15, %v3806_v53 }
 0x3aa   : >> { %v3374_v39 = vpop.f32.mrf.mxu2 }
 0x3ab   : >> { %v3863_v6 = vadd.f32 %v6931_v24, %v3844_v26  ;;  %v3395_v51 = vadd.f32 %v3374_v39, %v3230_v27 }
 0x3ac   : >> { %v3592_v48 = vpop.f32.mrf.mxu3  ;;  %v3212_v63 = vpop.f32.mrf.mxu1 }
 0x3ad   : >> { %v3879_v46 = vadd.f32 %v5019_v36, %v3863_v6  ;;  %v3613_v21 = vadd.f32 %v3592_v48, %v3395_v51  ;;  %v3231_v16 = vadd.f32 %v3212_v63, %v6917_v54  ;;  %v5021_v54 = vld [vmem:[%s6928_s25 + $0xc1] sm:$0xff] }
 0x3ae   : >> { %v3789_v4 = vpop.f32.mrf.mxu0 }
 0x3af   : >> { %v3895_v58 = vmax.f32 %v3879_v46, 0.0  ;;  %v3807_v14 = vadd.f32 %v3786_v3, %v3613_v21 }
 0x3b1   : >> { %3913 = vst [vmem:[%s6939_s27 + $0x60] sm:$0xff] %v3895_v58  ;;  %v3845_v35 = vmul.f32 %v6925_v15, %v3807_v14 }
 0x3b2   : >> { %v3377_v10 = vpop.f32.mrf.mxu2 }
 0x3b3   : >> { %v3864_v61 = vadd.f32 %v6931_v24, %v3845_v35  ;;  %v3396_v59 = vadd.f32 %v3377_v10, %v3231_v16 }
 0x3b4   : >> { %v3595_v52 = vpop.f32.mrf.mxu3  ;;  %v3214_v22 = vpop.f32.mrf.mxu1 }
 0x3b5   : >> { %v3880_v20 = vadd.f32 %v5020_v5, %v3864_v61  ;;  %v3614_v25 = vadd.f32 %v3595_v52, %v3396_v59  ;;  %v3232_v33 = vadd.f32 %v3214_v22, %v6920_v0 }
 0x3b6   : >> { %v3791_v49 = vpop.f32.mrf.mxu0 }
 0x3b7   : >> { %v3896_v60 = vmax.f32 %v3880_v20, 0.0  ;;  %v3808_v12 = vadd.f32 %v3789_v4, %v3614_v25 }
 0x3b9   : >> { %3914 = vst [vmem:[%s6939_s27 + $0x68] sm:$0xff] %v3896_v60  ;;  %v3846_v11 = vmul.f32 %v6925_v15, %v3808_v12 }
 0x3ba   : >> { %v3379_v34 = vpop.f32.mrf.mxu2 }
 0x3bb   : >> { %v3865_v2 = vadd.f32 %v6931_v24, %v3846_v11  ;;  %v3397_v31 = vadd.f32 %v3379_v34, %v3232_v33 }
 0x3bc   : >> { %v3597_v50 = vpop.f32.mrf.mxu3 }
 0x3bd   : >> { %v3881_v7 = vadd.f32 %v5021_v54, %v3865_v2  ;;  %v3615_v28 = vadd.f32 %v3597_v50, %v3397_v31 }
 0x3bf   : >> { %v3897_v30 = vmax.f32 %v3881_v7, 0.0  ;;  %v3809_v8 = vadd.f32 %v3791_v49, %v3615_v28 }
 0x3c1   : >> { %3915 = vst [vmem:[%s6939_s27 + $0x70] sm:$0xff] %v3897_v30  ;;  %v3847_v18 = vmul.f32 %v6925_v15, %v3809_v8 }
 0x3c3   : >> { %v3866_v41 = vadd.f32 %v6931_v24, %v3847_v18 }
 0x3c5   : >> { %v3882_v19 = vadd.f32 %v5022_v32, %v3866_v41  ;;  %2107 = sbr.rel (!%p2105_p5) target bundleno = 511 (0x1ff), region = 131 }
 0x3c7   : >> { %v3898_v0 = vmax.f32 %v3882_v19, 0.0 }
 0x3c9   : >> { %3916 = vst [vmem:[%s6939_s27 + $0x78] sm:$0xff] %v3898_v0 }
 0x3ca PF: > { %s17_s24 = sadd.s32 1, %s5264_s24  }
 0x3cb   : > { %p14_p6 = scmp.ge.s32.totalorder %s17_s24, 4  }
 0x3cd   :  { %16 = sbr.rel (!%p14_p6) target bundleno = 1 (0x1), region = 142 }

</bundles_post_ra>
